<compile_context>
chip_gen: v7x
topology: tpu7x:2x2x1
jax: 0.10.0
libtpu: 0.0.40
codegen_flags: <defaults>
</compile_context>

<pallas_src>
import functools
import math

import jax
import jax.numpy as jnp
from jax import lax
from jax.experimental import pallas as pl
from jax.experimental.pallas import tpu as pltpu


def _round_up(n, m):
    return ((n + m - 1) // m) * m


# ----------------------------------------------------------------------------
# Fused Pallas kernel: all GRU layers + final Linear
# ----------------------------------------------------------------------------
def _fused_gru_fc_kernel(num_layers, *refs):
    """refs = (x_ref,
               [w_ih, w_hh, b_i, b_hn] * num_layers,
               fc_w_ref, fc_b_ref,
               out_ref,
               seq_scratch)

    x_ref:   (T, Bp, D0)       time-major input, batch padded to sublanes
    w_ih:    (D_in, 3*Hp)      per-gate lane-padded, pre-transposed (r, z, n)
    w_hh:    (Hp,   3*Hp)
    b_i:     (1,    3*Hp)      = b_ih with b_hh[r], b_hh[z] folded in
    b_hn:    (1,    Hp)        n-gate recurrent bias (must stay inside r*(...))
    fc_w:    (Hp, Op), fc_b: (1, Op)
    out_ref: (Bp, Op)
    seq_scratch: (T, Bp, Hp)   VMEM inter-layer sequence buffer
    """
    x_ref = refs[0]
    layer_refs = refs[1:1 + 4 * num_layers]
    fc_w_ref = refs[1 + 4 * num_layers]
    fc_b_ref = refs[2 + 4 * num_layers]
    out_ref = refs[3 + 4 * num_layers]
    seq_scratch = refs[4 + 4 * num_layers]

    T, Bp, _ = x_ref.shape
    Hp = fc_w_ref.shape[0]

    h = jnp.zeros((Bp, Hp), jnp.float32)
    for layer in range(num_layers):
        w_ih = layer_refs[4 * layer + 0][...]          # (D_in, 3*Hp)
        w_hh = layer_refs[4 * layer + 1][...]          # (Hp, 3*Hp)
        b_i = layer_refs[4 * layer + 2][...]           # (1, 3*Hp)
        b_hn = layer_refs[4 * layer + 3][...]          # (1, Hp)

        seq = x_ref[...] if layer == 0 else seq_scratch[...]
        d_in = seq.shape[-1]

        # Hoisted input-side matmul for the whole sequence (one big MXU op);
        # folded biases added once here, outside the serial recurrence.
        gi_all = (
            jnp.dot(seq.reshape(T * Bp, d_in), w_ih,
                    preferred_element_type=jnp.float32)
            + b_i
        ).reshape(T, Bp, 3 * Hp)

        h = jnp.zeros((Bp, Hp), jnp.float32)           # h0 == zeros per layer
        # Fully unrolled time recurrence (T static, small).
        for t in range(T):
            gi = gi_all[t]                                             # (Bp, 3*Hp)
            gh = jnp.dot(h, w_hh, preferred_element_type=jnp.float32)  # (Bp, 3*Hp)
            # Lane-aligned gate slices (offsets 0 / Hp / 2*Hp, multiples of 128).
            r = jax.nn.sigmoid(gi[:, 0:Hp] + gh[:, 0:Hp])
            z = jax.nn.sigmoid(gi[:, Hp:2 * Hp] + gh[:, Hp:2 * Hp])
            n = jnp.tanh(gi[:, 2 * Hp:3 * Hp] + r * (gh[:, 2 * Hp:3 * Hp] + b_hn))
            h = n + z * (h - n)                        # == (1-z)*n + z*h
            if layer + 1 < num_layers:
                seq_scratch[t] = h                     # feed next layer

    # Final Linear on last timestep's hidden state (lane-dense padded store).
    out_ref[...] = (
        jnp.dot(h, fc_w_ref[...], preferred_element_type=jnp.float32)
        + fc_b_ref[...]
    )


# ----------------------------------------------------------------------------
# One-time parameter packing (pre-transpose, per-gate lane padding, bias fold)
# ----------------------------------------------------------------------------
def pack_params(params, input_size, hidden_size, output_size):
    H = hidden_size
    Hp = _round_up(H, 128)

    layers_packed = []
    for layer_idx, layer in enumerate(params["gru"]):
        d_in = layer["w_ih"].shape[1]
        # Layer 0 keeps its true K (Mosaic pads lanes internally); deeper layers
        # consume the lane-padded hidden state, so their K is Hp.
        d_in_store = d_in if layer_idx == 0 else Hp

        w_ih = jnp.zeros((d_in_store, 3 * Hp), jnp.float32)
        w_hh = jnp.zeros((Hp, 3 * Hp), jnp.float32)
        b_i = jnp.zeros((1, 3 * Hp), jnp.float32)
        b_hn = jnp.zeros((1, Hp), jnp.float32)
        for g in range(3):                             # gate order: r, z, n
            w_ih = w_ih.at[:d_in, g * Hp:g * Hp + H].set(
                layer["w_ih"][g * H:(g + 1) * H, :].T.astype(jnp.float32))
            w_hh = w_hh.at[:H, g * Hp:g * Hp + H].set(
                layer["w_hh"][g * H:(g + 1) * H, :].T.astype(jnp.float32))
            bi_g = layer["b_ih"][g * H:(g + 1) * H].astype(jnp.float32)
            bh_g = layer["b_hh"][g * H:(g + 1) * H].astype(jnp.float32)
            if g < 2:
                # r/z: recurrent bias is additive with the input bias -> fold.
                b_i = b_i.at[0, g * Hp:g * Hp + H].set(bi_g + bh_g)
            else:
                # n: recurrent bias must stay inside r * (W_hn h + b_hn).
                b_i = b_i.at[0, g * Hp:g * Hp + H].set(bi_g)
                b_hn = b_hn.at[0, :H].set(bh_g)
        layers_packed.append((w_ih, w_hh, b_i, b_hn))

    O = output_size
    Op = _round_up(O, 128)
    fc_w = jnp.zeros((Hp, Op), jnp.float32).at[:H, :O].set(
        params["fc_w"].T.astype(jnp.float32))
    fc_b = jnp.zeros((1, Op), jnp.float32).at[0, :O].set(
        params["fc_b"].astype(jnp.float32))

    return {
        "layers": layers_packed,
        "fc_w": fc_w,
        "fc_b": fc_b,
        "in_dim": int(input_size),
        "hidden_p": int(Hp),
        "out_dim": int(O),
    }


# ----------------------------------------------------------------------------
# Forward wrapper: one pallas_call for the whole model
# ----------------------------------------------------------------------------
def gru_stock_forward(packed, x):
    """x: (B, T, input_size) PyTorch batch_first layout. Returns (B, output_size)."""
    B, T, D = x.shape
    Bp = _round_up(B, 8)
    Hp = packed["hidden_p"]
    O = packed["out_dim"]
    Op = packed["fc_w"].shape[1]
    num_layers = len(packed["layers"])

    # batch_first -> time-major; pad only the batch (sublane) dim to a multiple
    # of 8.  No lane padding / zero slab materialized on the host.
    x_tm = jnp.transpose(x.astype(jnp.float32), (1, 0, 2))        # (T, B, D)
    if Bp != B:
        x_tm = jnp.pad(x_tm, ((0, 0), (0, Bp - B), (0, 0)))

    args = [x_tm]
    for (w_ih, w_hh, b_i, b_hn) in packed["layers"]:
        args += [w_ih, w_hh, b_i, b_hn]
    args += [packed["fc_w"], packed["fc_b"]]

    vmem = pl.BlockSpec(memory_space=pltpu.MemorySpace.VMEM)
    out = pl.pallas_call(
        functools.partial(_fused_gru_fc_kernel, num_layers),
        out_shape=jax.ShapeDtypeStruct((Bp, Op), jnp.float32),
        in_specs=[vmem] * len(args),
        out_specs=vmem,
        scratch_shapes=[pltpu.VMEM((T, Bp, Hp), jnp.float32)],
    )(*args)
    return out[:B, :O]


# ----------------------------------------------------------------------------
# Deterministic parameter init (PyTorch nn.GRU / nn.Linear conventions)
# ----------------------------------------------------------------------------
def init_params(key, input_size, hidden_size, num_layers, output_size):
    H = hidden_size
    bound = 1.0 / math.sqrt(H)
    layers = []
    for layer_idx in range(num_layers):
        d_in = input_size if layer_idx == 0 else H
        key, k1, k2, k3, k4 = jax.random.split(key, 5)
        layers.append({
            "w_ih": jax.random.uniform(k1, (3 * H, d_in), jnp.float32, -bound, bound),
            "w_hh": jax.random.uniform(k2, (3 * H, H), jnp.float32, -bound, bound),
            "b_ih": jax.random.uniform(k3, (3 * H,), jnp.float32, -bound, bound),
            "b_hh": jax.random.uniform(k4, (3 * H,), jnp.float32, -bound, bound),
        })
    key, kf1, kf2 = jax.random.split(key, 3)
    fc_bound = 1.0 / math.sqrt(H)
    fc_w = jax.random.uniform(kf1, (output_size, H), jnp.float32, -fc_bound, fc_bound)
    fc_b = jax.random.uniform(kf2, (output_size,), jnp.float32, -fc_bound, fc_bound)
    return {"gru": layers, "fc_w": fc_w, "fc_b": fc_b}


# ----------------------------------------------------------------------------
# Pure-JAX reference (correctness check against nn.GRU semantics)
# ----------------------------------------------------------------------------
def gru_stock_forward_ref(params, x):
    x_tm = jnp.transpose(x, (1, 0, 2)).astype(jnp.float32)
    B = x.shape[0]
    for layer in params["gru"]:
        H = layer["w_hh"].shape[1]
        w_ih_t = layer["w_ih"].T
        w_hh_t = layer["w_hh"].T
        b_ih = layer["b_ih"]
        b_hh = layer["b_hh"]

        def step(h, x_t):
            gi = x_t @ w_ih_t + b_ih
            gh = h @ w_hh_t + b_hh
            r = jax.nn.sigmoid(gi[:, 0:H] + gh[:, 0:H])
            z = jax.nn.sigmoid(gi[:, H:2 * H] + gh[:, H:2 * H])
            n = jnp.tanh(gi[:, 2 * H:3 * H] + r * gh[:, 2 * H:3 * H])
            h_new = (1.0 - z) * n + z * h
            return h_new, h_new

        _, outs = lax.scan(step, jnp.zeros((B, H), jnp.float32), x_tm)
        x_tm = outs
    last = x_tm[-1]
    return last @ params["fc_w"].T + params["fc_b"]


# ----------------------------------------------------------------------------
if __name__ == "__main__":
    # Small shapes consistent with the module's forward:
    #   x: (batch=2, seq=8, input_size=4), hidden=32, num_layers=2, output=1
    B, T, INPUT, HIDDEN, LAYERS, OUTPUT = 2, 8, 4, 32, 2, 1

    key = jax.random.PRNGKey(0)
    key_p, key_x = jax.random.split(key)
    params = init_params(key_p, INPUT, HIDDEN, LAYERS, OUTPUT)
    packed = pack_params(params, INPUT, HIDDEN, OUTPUT)   # one-time packing
    x = jax.random.normal(key_x, (B, T, INPUT), jnp.float32)

    y = jax.block_until_ready(gru_stock_forward(packed, x))
    y_ref = jax.block_until_ready(gru_stock_forward_ref(params, x))

    assert y.shape == (B, OUTPUT)
    assert jnp.allclose(y, y_ref, atol=1e-4, rtol=1e-4), (y, y_ref)

    print("KERNEL_OK")
</pallas_src>

<mosaic_0001>
module attributes {stable_mosaic.version = 11 : i64} {
  func.func @_fused_gru_fc_kernel(%arg0: memref<8x8x4xf32, #tpu.memory_space<vmem>>, %arg1: memref<4x384xf32, #tpu.memory_space<vmem>>, %arg2: memref<128x384xf32, #tpu.memory_space<vmem>>, %arg3: memref<1x384xf32, #tpu.memory_space<vmem>>, %arg4: memref<1x128xf32, #tpu.memory_space<vmem>>, %arg5: memref<128x384xf32, #tpu.memory_space<vmem>>, %arg6: memref<128x384xf32, #tpu.memory_space<vmem>>, %arg7: memref<1x384xf32, #tpu.memory_space<vmem>>, %arg8: memref<1x128xf32, #tpu.memory_space<vmem>>, %arg9: memref<128x128xf32, #tpu.memory_space<vmem>>, %arg10: memref<1x128xf32, #tpu.memory_space<vmem>>, %arg11: memref<8x128xf32, #tpu.memory_space<vmem>>, %arg12: memref<8x8x128xf32, #tpu.memory_space<vmem>>) attributes {dimension_semantics = [], scalar_prefetch = 0 : i64, scratch_operands = 1 : i64, tpu.core_type = #tpu.core_type<tc>} {
    %c0 = arith.constant 0 : index
    %c0_0 = arith.constant 0 : index
    %0 = vector.load %arg1[%c0, %c0_0] : memref<4x384xf32, #tpu.memory_space<vmem>>, vector<4x384xf32>
    %c0_1 = arith.constant 0 : index
    %c0_2 = arith.constant 0 : index
    %1 = vector.load %arg2[%c0_1, %c0_2] : memref<128x384xf32, #tpu.memory_space<vmem>>, vector<128x384xf32>
    %c0_3 = arith.constant 0 : index
    %c0_4 = arith.constant 0 : index
    %2 = vector.load %arg3[%c0_3, %c0_4] : memref<1x384xf32, #tpu.memory_space<vmem>>, vector<1x384xf32>
    %c0_5 = arith.constant 0 : index
    %c0_6 = arith.constant 0 : index
    %3 = vector.load %arg4[%c0_5, %c0_6] : memref<1x128xf32, #tpu.memory_space<vmem>>, vector<1x128xf32>
    %c0_7 = arith.constant 0 : index
    %c0_8 = arith.constant 0 : index
    %c0_9 = arith.constant 0 : index
    %4 = vector.load %arg0[%c0_7, %c0_8, %c0_9] : memref<8x8x4xf32, #tpu.memory_space<vmem>>, vector<8x8x4xf32>
    %5 = vector.shape_cast %4 : vector<8x8x4xf32> to vector<64x4xf32>
    %cst = arith.constant dense<0.000000e+00> : vector<64x384xf32>
    %6 = tpu.matmul %5, %0, %cst {dimension_numbers = #tpu.dot_dimension_numbers<[1], [0], [0], [1], [0, 0, 1, 1], [], []>} : vector<64x4xf32>, vector<4x384xf32>, vector<64x384xf32> -> vector<64x384xf32>
    %7 = vector.broadcast %2 : vector<1x384xf32> to vector<64x384xf32>
    %8 = arith.addf %6, %7 : vector<64x384xf32>
    %9 = vector.shape_cast %8 : vector<64x384xf32> to vector<8x8x384xf32>
    %cst_10 = arith.constant 0.000000e+00 : f32
    %10 = vector.broadcast %cst_10 : f32 to vector<8x128xf32>
    %11 = vector.extract_strided_slice %9 {offsets = [0, 0, 0], sizes = [1, 8, 384], strides = [1, 1, 1]} : vector<8x8x384xf32> to vector<1x8x384xf32>
    %12 = vector.shape_cast %11 : vector<1x8x384xf32> to vector<8x384xf32>
    %cst_11 = arith.constant dense<0.000000e+00> : vector<8x384xf32>
    %13 = tpu.matmul %10, %1, %cst_11 {dimension_numbers = #tpu.dot_dimension_numbers<[1], [0], [0], [1], [0, 0, 1, 1], [], []>} : vector<8x128xf32>, vector<128x384xf32>, vector<8x384xf32> -> vector<8x384xf32>
    %14 = vector.extract_strided_slice %12 {offsets = [0, 0], sizes = [8, 128], strides = [1, 1]} : vector<8x384xf32> to vector<8x128xf32>
    %15 = vector.extract_strided_slice %13 {offsets = [0, 0], sizes = [8, 128], strides = [1, 1]} : vector<8x384xf32> to vector<8x128xf32>
    %16 = arith.addf %14, %15 : vector<8x128xf32>
    %17 = arith.negf %16 : vector<8x128xf32>
    %18 = math.exp %17 : vector<8x128xf32>
    %cst_12 = arith.constant 1.000000e+00 : f32
    %19 = vector.broadcast %cst_12 : f32 to vector<8x128xf32>
    %20 = arith.addf %19, %18 : vector<8x128xf32>
    %21 = arith.divf %19, %20 : vector<8x128xf32>
    %22 = vector.extract_strided_slice %12 {offsets = [0, 128], sizes = [8, 128], strides = [1, 1]} : vector<8x384xf32> to vector<8x128xf32>
    %23 = vector.extract_strided_slice %13 {offsets = [0, 128], sizes = [8, 128], strides = [1, 1]} : vector<8x384xf32> to vector<8x128xf32>
    %24 = arith.addf %22, %23 : vector<8x128xf32>
    %25 = arith.negf %24 : vector<8x128xf32>
    %26 = math.exp %25 : vector<8x128xf32>
    %cst_13 = arith.constant 1.000000e+00 : f32
    %27 = vector.broadcast %cst_13 : f32 to vector<8x128xf32>
    %28 = arith.addf %27, %26 : vector<8x128xf32>
    %29 = arith.divf %27, %28 : vector<8x128xf32>
    %30 = vector.extract_strided_slice %12 {offsets = [0, 256], sizes = [8, 128], strides = [1, 1]} : vector<8x384xf32> to vector<8x128xf32>
    %31 = vector.extract_strided_slice %13 {offsets = [0, 256], sizes = [8, 128], strides = [1, 1]} : vector<8x384xf32> to vector<8x128xf32>
    %32 = vector.broadcast %3 : vector<1x128xf32> to vector<8x128xf32>
    %33 = arith.addf %31, %32 : vector<8x128xf32>
    %34 = arith.mulf %21, %33 : vector<8x128xf32>
    %35 = arith.addf %30, %34 : vector<8x128xf32>
    %36 = math.tanh %35 : vector<8x128xf32>
    %37 = arith.subf %10, %36 : vector<8x128xf32>
    %38 = arith.mulf %29, %37 : vector<8x128xf32>
    %39 = arith.addf %36, %38 : vector<8x128xf32>
    %c0_14 = arith.constant 0 : index
    %c0_15 = arith.constant 0 : index
    %c0_16 = arith.constant 0 : index
    %40 = vector.load %arg12[%c0_14, %c0_15, %c0_16] : memref<8x8x128xf32, #tpu.memory_space<vmem>>, vector<1x8x128xf32>
    %41 = vector.shape_cast %40 : vector<1x8x128xf32> to vector<8x128xf32>
    %42 = vector.shape_cast %39 : vector<8x128xf32> to vector<1x8x128xf32>
    tpu.vector_store %arg12[%c0_14, %c0_15, %c0_16], %42 {strides = array<i32>} : memref<8x8x128xf32, #tpu.memory_space<vmem>>, vector<1x8x128xf32>,
    %43 = vector.extract_strided_slice %9 {offsets = [1, 0, 0], sizes = [1, 8, 384], strides = [1, 1, 1]} : vector<8x8x384xf32> to vector<1x8x384xf32>
    %44 = vector.shape_cast %43 : vector<1x8x384xf32> to vector<8x384xf32>
    %cst_17 = arith.constant dense<0.000000e+00> : vector<8x384xf32>
    %45 = tpu.matmul %39, %1, %cst_17 {dimension_numbers = #tpu.dot_dimension_numbers<[1], [0], [0], [1], [0, 0, 1, 1], [], []>} : vector<8x128xf32>, vector<128x384xf32>, vector<8x384xf32> -> vector<8x384xf32>
    %46 = vector.extract_strided_slice %44 {offsets = [0, 0], sizes = [8, 128], strides = [1, 1]} : vector<8x384xf32> to vector<8x128xf32>
    %47 = vector.extract_strided_slice %45 {offsets = [0, 0], sizes = [8, 128], strides = [1, 1]} : vector<8x384xf32> to vector<8x128xf32>
    %48 = arith.addf %46, %47 : vector<8x128xf32>
    %49 = arith.negf %48 : vector<8x128xf32>
    %50 = math.exp %49 : vector<8x128xf32>
    %cst_18 = arith.constant 1.000000e+00 : f32
    %51 = vector.broadcast %cst_18 : f32 to vector<8x128xf32>
    %52 = arith.addf %51, %50 : vector<8x128xf32>
    %53 = arith.divf %51, %52 : vector<8x128xf32>
    %54 = vector.extract_strided_slice %44 {offsets = [0, 128], sizes = [8, 128], strides = [1, 1]} : vector<8x384xf32> to vector<8x128xf32>
    %55 = vector.extract_strided_slice %45 {offsets = [0, 128], sizes = [8, 128], strides = [1, 1]} : vector<8x384xf32> to vector<8x128xf32>
    %56 = arith.addf %54, %55 : vector<8x128xf32>
    %57 = arith.negf %56 : vector<8x128xf32>
    %58 = math.exp %57 : vector<8x128xf32>
    %cst_19 = arith.constant 1.000000e+00 : f32
    %59 = vector.broadcast %cst_19 : f32 to vector<8x128xf32>
    %60 = arith.addf %59, %58 : vector<8x128xf32>
    %61 = arith.divf %59, %60 : vector<8x128xf32>
    %62 = vector.extract_strided_slice %44 {offsets = [0, 256], sizes = [8, 128], strides = [1, 1]} : vector<8x384xf32> to vector<8x128xf32>
    %63 = vector.extract_strided_slice %45 {offsets = [0, 256], sizes = [8, 128], strides = [1, 1]} : vector<8x384xf32> to vector<8x128xf32>
    %64 = vector.broadcast %3 : vector<1x128xf32> to vector<8x128xf32>
    %65 = arith.addf %63, %64 : vector<8x128xf32>
    %66 = arith.mulf %53, %65 : vector<8x128xf32>
    %67 = arith.addf %62, %66 : vector<8x128xf32>
    %68 = math.tanh %67 : vector<8x128xf32>
    %69 = arith.subf %39, %68 : vector<8x128xf32>
    %70 = arith.mulf %61, %69 : vector<8x128xf32>
    %71 = arith.addf %68, %70 : vector<8x128xf32>
    %c1 = arith.constant 1 : index
    %c0_20 = arith.constant 0 : index
    %c0_21 = arith.constant 0 : index
    %72 = vector.load %arg12[%c1, %c0_20, %c0_21] : memref<8x8x128xf32, #tpu.memory_space<vmem>>, vector<1x8x128xf32>
    %73 = vector.shape_cast %72 : vector<1x8x128xf32> to vector<8x128xf32>
    %74 = vector.shape_cast %71 : vector<8x128xf32> to vector<1x8x128xf32>
    tpu.vector_store %arg12[%c1, %c0_20, %c0_21], %74 {strides = array<i32>} : memref<8x8x128xf32, #tpu.memory_space<vmem>>, vector<1x8x128xf32>,
    %75 = vector.extract_strided_slice %9 {offsets = [2, 0, 0], sizes = [1, 8, 384], strides = [1, 1, 1]} : vector<8x8x384xf32> to vector<1x8x384xf32>
    %76 = vector.shape_cast %75 : vector<1x8x384xf32> to vector<8x384xf32>
    %cst_22 = arith.constant dense<0.000000e+00> : vector<8x384xf32>
    %77 = tpu.matmul %71, %1, %cst_22 {dimension_numbers = #tpu.dot_dimension_numbers<[1], [0], [0], [1], [0, 0, 1, 1], [], []>} : vector<8x128xf32>, vector<128x384xf32>, vector<8x384xf32> -> vector<8x384xf32>
    %78 = vector.extract_strided_slice %76 {offsets = [0, 0], sizes = [8, 128], strides = [1, 1]} : vector<8x384xf32> to vector<8x128xf32>
    %79 = vector.extract_strided_slice %77 {offsets = [0, 0], sizes = [8, 128], strides = [1, 1]} : vector<8x384xf32> to vector<8x128xf32>
    %80 = arith.addf %78, %79 : vector<8x128xf32>
    %81 = arith.negf %80 : vector<8x128xf32>
    %82 = math.exp %81 : vector<8x128xf32>
    %cst_23 = arith.constant 1.000000e+00 : f32
    %83 = vector.broadcast %cst_23 : f32 to vector<8x128xf32>
    %84 = arith.addf %83, %82 : vector<8x128xf32>
    %85 = arith.divf %83, %84 : vector<8x128xf32>
    %86 = vector.extract_strided_slice %76 {offsets = [0, 128], sizes = [8, 128], strides = [1, 1]} : vector<8x384xf32> to vector<8x128xf32>
    %87 = vector.extract_strided_slice %77 {offsets = [0, 128], sizes = [8, 128], strides = [1, 1]} : vector<8x384xf32> to vector<8x128xf32>
    %88 = arith.addf %86, %87 : vector<8x128xf32>
    %89 = arith.negf %88 : vector<8x128xf32>
    %90 = math.exp %89 : vector<8x128xf32>
    %cst_24 = arith.constant 1.000000e+00 : f32
    %91 = vector.broadcast %cst_24 : f32 to vector<8x128xf32>
    %92 = arith.addf %91, %90 : vector<8x128xf32>
    %93 = arith.divf %91, %92 : vector<8x128xf32>
    %94 = vector.extract_strided_slice %76 {offsets = [0, 256], sizes = [8, 128], strides = [1, 1]} : vector<8x384xf32> to vector<8x128xf32>
    %95 = vector.extract_strided_slice %77 {offsets = [0, 256], sizes = [8, 128], strides = [1, 1]} : vector<8x384xf32> to vector<8x128xf32>
    %96 = vector.broadcast %3 : vector<1x128xf32> to vector<8x128xf32>
    %97 = arith.addf %95, %96 : vector<8x128xf32>
    %98 = arith.mulf %85, %97 : vector<8x128xf32>
    %99 = arith.addf %94, %98 : vector<8x128xf32>
    %100 = math.tanh %99 : vector<8x128xf32>
    %101 = arith.subf %71, %100 : vector<8x128xf32>
    %102 = arith.mulf %93, %101 : vector<8x128xf32>
    %103 = arith.addf %100, %102 : vector<8x128xf32>
    %c2 = arith.constant 2 : index
    %c0_25 = arith.constant 0 : index
    %c0_26 = arith.constant 0 : index
    %104 = vector.load %arg12[%c2, %c0_25, %c0_26] : memref<8x8x128xf32, #tpu.memory_space<vmem>>, vector<1x8x128xf32>
    %105 = vector.shape_cast %104 : vector<1x8x128xf32> to vector<8x128xf32>
    %106 = vector.shape_cast %103 : vector<8x128xf32> to vector<1x8x128xf32>
    tpu.vector_store %arg12[%c2, %c0_25, %c0_26], %106 {strides = array<i32>} : memref<8x8x128xf32, #tpu.memory_space<vmem>>, vector<1x8x128xf32>,
    %107 = vector.extract_strided_slice %9 {offsets = [3, 0, 0], sizes = [1, 8, 384], strides = [1, 1, 1]} : vector<8x8x384xf32> to vector<1x8x384xf32>
    %108 = vector.shape_cast %107 : vector<1x8x384xf32> to vector<8x384xf32>
    %cst_27 = arith.constant dense<0.000000e+00> : vector<8x384xf32>
    %109 = tpu.matmul %103, %1, %cst_27 {dimension_numbers = #tpu.dot_dimension_numbers<[1], [0], [0], [1], [0, 0, 1, 1], [], []>} : vector<8x128xf32>, vector<128x384xf32>, vector<8x384xf32> -> vector<8x384xf32>
    %110 = vector.extract_strided_slice %108 {offsets = [0, 0], sizes = [8, 128], strides = [1, 1]} : vector<8x384xf32> to vector<8x128xf32>
    %111 = vector.extract_strided_slice %109 {offsets = [0, 0], sizes = [8, 128], strides = [1, 1]} : vector<8x384xf32> to vector<8x128xf32>
    %112 = arith.addf %110, %111 : vector<8x128xf32>
    %113 = arith.negf %112 : vector<8x128xf32>
    %114 = math.exp %113 : vector<8x128xf32>
    %cst_28 = arith.constant 1.000000e+00 : f32
    %115 = vector.broadcast %cst_28 : f32 to vector<8x128xf32>
    %116 = arith.addf %115, %114 : vector<8x128xf32>
    %117 = arith.divf %115, %116 : vector<8x128xf32>
    %118 = vector.extract_strided_slice %108 {offsets = [0, 128], sizes = [8, 128], strides = [1, 1]} : vector<8x384xf32> to vector<8x128xf32>
    %119 = vector.extract_strided_slice %109 {offsets = [0, 128], sizes = [8, 128], strides = [1, 1]} : vector<8x384xf32> to vector<8x128xf32>
    %120 = arith.addf %118, %119 : vector<8x128xf32>
    %121 = arith.negf %120 : vector<8x128xf32>
    %122 = math.exp %121 : vector<8x128xf32>
    %cst_29 = arith.constant 1.000000e+00 : f32
    %123 = vector.broadcast %cst_29 : f32 to vector<8x128xf32>
    %124 = arith.addf %123, %122 : vector<8x128xf32>
    %125 = arith.divf %123, %124 : vector<8x128xf32>
    %126 = vector.extract_strided_slice %108 {offsets = [0, 256], sizes = [8, 128], strides = [1, 1]} : vector<8x384xf32> to vector<8x128xf32>
    %127 = vector.extract_strided_slice %109 {offsets = [0, 256], sizes = [8, 128], strides = [1, 1]} : vector<8x384xf32> to vector<8x128xf32>
    %128 = vector.broadcast %3 : vector<1x128xf32> to vector<8x128xf32>
    %129 = arith.addf %127, %128 : vector<8x128xf32>
    %130 = arith.mulf %117, %129 : vector<8x128xf32>
    %131 = arith.addf %126, %130 : vector<8x128xf32>
    %132 = math.tanh %131 : vector<8x128xf32>
    %133 = arith.subf %103, %132 : vector<8x128xf32>
    %134 = arith.mulf %125, %133 : vector<8x128xf32>
    %135 = arith.addf %132, %134 : vector<8x128xf32>
    %c3 = arith.constant 3 : index
    %c0_30 = arith.constant 0 : index
    %c0_31 = arith.constant 0 : index
    %136 = vector.load %arg12[%c3, %c0_30, %c0_31] : memref<8x8x128xf32, #tpu.memory_space<vmem>>, vector<1x8x128xf32>
    %137 = vector.shape_cast %136 : vector<1x8x128xf32> to vector<8x128xf32>
    %138 = vector.shape_cast %135 : vector<8x128xf32> to vector<1x8x128xf32>
    tpu.vector_store %arg12[%c3, %c0_30, %c0_31], %138 {strides = array<i32>} : memref<8x8x128xf32, #tpu.memory_space<vmem>>, vector<1x8x128xf32>,
    %139 = vector.extract_strided_slice %9 {offsets = [4, 0, 0], sizes = [1, 8, 384], strides = [1, 1, 1]} : vector<8x8x384xf32> to vector<1x8x384xf32>
    %140 = vector.shape_cast %139 : vector<1x8x384xf32> to vector<8x384xf32>
    %cst_32 = arith.constant dense<0.000000e+00> : vector<8x384xf32>
    %141 = tpu.matmul %135, %1, %cst_32 {dimension_numbers = #tpu.dot_dimension_numbers<[1], [0], [0], [1], [0, 0, 1, 1], [], []>} : vector<8x128xf32>, vector<128x384xf32>, vector<8x384xf32> -> vector<8x384xf32>
    %142 = vector.extract_strided_slice %140 {offsets = [0, 0], sizes = [8, 128], strides = [1, 1]} : vector<8x384xf32> to vector<8x128xf32>
    %143 = vector.extract_strided_slice %141 {offsets = [0, 0], sizes = [8, 128], strides = [1, 1]} : vector<8x384xf32> to vector<8x128xf32>
    %144 = arith.addf %142, %143 : vector<8x128xf32>
    %145 = arith.negf %144 : vector<8x128xf32>
    %146 = math.exp %145 : vector<8x128xf32>
    %cst_33 = arith.constant 1.000000e+00 : f32
    %147 = vector.broadcast %cst_33 : f32 to vector<8x128xf32>
    %148 = arith.addf %147, %146 : vector<8x128xf32>
    %149 = arith.divf %147, %148 : vector<8x128xf32>
    %150 = vector.extract_strided_slice %140 {offsets = [0, 128], sizes = [8, 128], strides = [1, 1]} : vector<8x384xf32> to vector<8x128xf32>
    %151 = vector.extract_strided_slice %141 {offsets = [0, 128], sizes = [8, 128], strides = [1, 1]} : vector<8x384xf32> to vector<8x128xf32>
    %152 = arith.addf %150, %151 : vector<8x128xf32>
    %153 = arith.negf %152 : vector<8x128xf32>
    %154 = math.exp %153 : vector<8x128xf32>
    %cst_34 = arith.constant 1.000000e+00 : f32
    %155 = vector.broadcast %cst_34 : f32 to vector<8x128xf32>
    %156 = arith.addf %155, %154 : vector<8x128xf32>
    %157 = arith.divf %155, %156 : vector<8x128xf32>
    %158 = vector.extract_strided_slice %140 {offsets = [0, 256], sizes = [8, 128], strides = [1, 1]} : vector<8x384xf32> to vector<8x128xf32>
    %159 = vector.extract_strided_slice %141 {offsets = [0, 256], sizes = [8, 128], strides = [1, 1]} : vector<8x384xf32> to vector<8x128xf32>
    %160 = vector.broadcast %3 : vector<1x128xf32> to vector<8x128xf32>
    %161 = arith.addf %159, %160 : vector<8x128xf32>
    %162 = arith.mulf %149, %161 : vector<8x128xf32>
    %163 = arith.addf %158, %162 : vector<8x128xf32>
    %164 = math.tanh %163 : vector<8x128xf32>
    %165 = arith.subf %135, %164 : vector<8x128xf32>
    %166 = arith.mulf %157, %165 : vector<8x128xf32>
    %167 = arith.addf %164, %166 : vector<8x128xf32>
    %c4 = arith.constant 4 : index
    %c0_35 = arith.constant 0 : index
    %c0_36 = arith.constant 0 : index
    %168 = vector.load %arg12[%c4, %c0_35, %c0_36] : memref<8x8x128xf32, #tpu.memory_space<vmem>>, vector<1x8x128xf32>
    %169 = vector.shape_cast %168 : vector<1x8x128xf32> to vector<8x128xf32>
    %170 = vector.shape_cast %167 : vector<8x128xf32> to vector<1x8x128xf32>
    tpu.vector_store %arg12[%c4, %c0_35, %c0_36], %170 {strides = array<i32>} : memref<8x8x128xf32, #tpu.memory_space<vmem>>, vector<1x8x128xf32>,
    %171 = vector.extract_strided_slice %9 {offsets = [5, 0, 0], sizes = [1, 8, 384], strides = [1, 1, 1]} : vector<8x8x384xf32> to vector<1x8x384xf32>
    %172 = vector.shape_cast %171 : vector<1x8x384xf32> to vector<8x384xf32>
    %cst_37 = arith.constant dense<0.000000e+00> : vector<8x384xf32>
    %173 = tpu.matmul %167, %1, %cst_37 {dimension_numbers = #tpu.dot_dimension_numbers<[1], [0], [0], [1], [0, 0, 1, 1], [], []>} : vector<8x128xf32>, vector<128x384xf32>, vector<8x384xf32> -> vector<8x384xf32>
    %174 = vector.extract_strided_slice %172 {offsets = [0, 0], sizes = [8, 128], strides = [1, 1]} : vector<8x384xf32> to vector<8x128xf32>
    %175 = vector.extract_strided_slice %173 {offsets = [0, 0], sizes = [8, 128], strides = [1, 1]} : vector<8x384xf32> to vector<8x128xf32>
    %176 = arith.addf %174, %175 : vector<8x128xf32>
    %177 = arith.negf %176 : vector<8x128xf32>
    %178 = math.exp %177 : vector<8x128xf32>
    %cst_38 = arith.constant 1.000000e+00 : f32
    %179 = vector.broadcast %cst_38 : f32 to vector<8x128xf32>
    %180 = arith.addf %179, %178 : vector<8x128xf32>
    %181 = arith.divf %179, %180 : vector<8x128xf32>
    %182 = vector.extract_strided_slice %172 {offsets = [0, 128], sizes = [8, 128], strides = [1, 1]} : vector<8x384xf32> to vector<8x128xf32>
    %183 = vector.extract_strided_slice %173 {offsets = [0, 128], sizes = [8, 128], strides = [1, 1]} : vector<8x384xf32> to vector<8x128xf32>
    %184 = arith.addf %182, %183 : vector<8x128xf32>
    %185 = arith.negf %184 : vector<8x128xf32>
    %186 = math.exp %185 : vector<8x128xf32>
    %cst_39 = arith.constant 1.000000e+00 : f32
    %187 = vector.broadcast %cst_39 : f32 to vector<8x128xf32>
    %188 = arith.addf %187, %186 : vector<8x128xf32>
    %189 = arith.divf %187, %188 : vector<8x128xf32>
    %190 = vector.extract_strided_slice %172 {offsets = [0, 256], sizes = [8, 128], strides = [1, 1]} : vector<8x384xf32> to vector<8x128xf32>
    %191 = vector.extract_strided_slice %173 {offsets = [0, 256], sizes = [8, 128], strides = [1, 1]} : vector<8x384xf32> to vector<8x128xf32>
    %192 = vector.broadcast %3 : vector<1x128xf32> to vector<8x128xf32>
    %193 = arith.addf %191, %192 : vector<8x128xf32>
    %194 = arith.mulf %181, %193 : vector<8x128xf32>
    %195 = arith.addf %190, %194 : vector<8x128xf32>
    %196 = math.tanh %195 : vector<8x128xf32>
    %197 = arith.subf %167, %196 : vector<8x128xf32>
    %198 = arith.mulf %189, %197 : vector<8x128xf32>
    %199 = arith.addf %196, %198 : vector<8x128xf32>
    %c5 = arith.constant 5 : index
    %c0_40 = arith.constant 0 : index
    %c0_41 = arith.constant 0 : index
    %200 = vector.load %arg12[%c5, %c0_40, %c0_41] : memref<8x8x128xf32, #tpu.memory_space<vmem>>, vector<1x8x128xf32>
    %201 = vector.shape_cast %200 : vector<1x8x128xf32> to vector<8x128xf32>
    %202 = vector.shape_cast %199 : vector<8x128xf32> to vector<1x8x128xf32>
    tpu.vector_store %arg12[%c5, %c0_40, %c0_41], %202 {strides = array<i32>} : memref<8x8x128xf32, #tpu.memory_space<vmem>>, vector<1x8x128xf32>,
    %203 = vector.extract_strided_slice %9 {offsets = [6, 0, 0], sizes = [1, 8, 384], strides = [1, 1, 1]} : vector<8x8x384xf32> to vector<1x8x384xf32>
    %204 = vector.shape_cast %203 : vector<1x8x384xf32> to vector<8x384xf32>
    %cst_42 = arith.constant dense<0.000000e+00> : vector<8x384xf32>
    %205 = tpu.matmul %199, %1, %cst_42 {dimension_numbers = #tpu.dot_dimension_numbers<[1], [0], [0], [1], [0, 0, 1, 1], [], []>} : vector<8x128xf32>, vector<128x384xf32>, vector<8x384xf32> -> vector<8x384xf32>
    %206 = vector.extract_strided_slice %204 {offsets = [0, 0], sizes = [8, 128], strides = [1, 1]} : vector<8x384xf32> to vector<8x128xf32>
    %207 = vector.extract_strided_slice %205 {offsets = [0, 0], sizes = [8, 128], strides = [1, 1]} : vector<8x384xf32> to vector<8x128xf32>
    %208 = arith.addf %206, %207 : vector<8x128xf32>
    %209 = arith.negf %208 : vector<8x128xf32>
    %210 = math.exp %209 : vector<8x128xf32>
    %cst_43 = arith.constant 1.000000e+00 : f32
    %211 = vector.broadcast %cst_43 : f32 to vector<8x128xf32>
    %212 = arith.addf %211, %210 : vector<8x128xf32>
    %213 = arith.divf %211, %212 : vector<8x128xf32>
    %214 = vector.extract_strided_slice %204 {offsets = [0, 128], sizes = [8, 128], strides = [1, 1]} : vector<8x384xf32> to vector<8x128xf32>
    %215 = vector.extract_strided_slice %205 {offsets = [0, 128], sizes = [8, 128], strides = [1, 1]} : vector<8x384xf32> to vector<8x128xf32>
    %216 = arith.addf %214, %215 : vector<8x128xf32>
    %217 = arith.negf %216 : vector<8x128xf32>
    %218 = math.exp %217 : vector<8x128xf32>
    %cst_44 = arith.constant 1.000000e+00 : f32
    %219 = vector.broadcast %cst_44 : f32 to vector<8x128xf32>
    %220 = arith.addf %219, %218 : vector<8x128xf32>
    %221 = arith.divf %219, %220 : vector<8x128xf32>
    %222 = vector.extract_strided_slice %204 {offsets = [0, 256], sizes = [8, 128], strides = [1, 1]} : vector<8x384xf32> to vector<8x128xf32>
    %223 = vector.extract_strided_slice %205 {offsets = [0, 256], sizes = [8, 128], strides = [1, 1]} : vector<8x384xf32> to vector<8x128xf32>
    %224 = vector.broadcast %3 : vector<1x128xf32> to vector<8x128xf32>
    %225 = arith.addf %223, %224 : vector<8x128xf32>
    %226 = arith.mulf %213, %225 : vector<8x128xf32>
    %227 = arith.addf %222, %226 : vector<8x128xf32>
    %228 = math.tanh %227 : vector<8x128xf32>
    %229 = arith.subf %199, %228 : vector<8x128xf32>
    %230 = arith.mulf %221, %229 : vector<8x128xf32>
    %231 = arith.addf %228, %230 : vector<8x128xf32>
    %c6 = arith.constant 6 : index
    %c0_45 = arith.constant 0 : index
    %c0_46 = arith.constant 0 : index
    %232 = vector.load %arg12[%c6, %c0_45, %c0_46] : memref<8x8x128xf32, #tpu.memory_space<vmem>>, vector<1x8x128xf32>
    %233 = vector.shape_cast %232 : vector<1x8x128xf32> to vector<8x128xf32>
    %234 = vector.shape_cast %231 : vector<8x128xf32> to vector<1x8x128xf32>
    tpu.vector_store %arg12[%c6, %c0_45, %c0_46], %234 {strides = array<i32>} : memref<8x8x128xf32, #tpu.memory_space<vmem>>, vector<1x8x128xf32>,
    %235 = vector.extract_strided_slice %9 {offsets = [7, 0, 0], sizes = [1, 8, 384], strides = [1, 1, 1]} : vector<8x8x384xf32> to vector<1x8x384xf32>
    %236 = vector.shape_cast %235 : vector<1x8x384xf32> to vector<8x384xf32>
    %cst_47 = arith.constant dense<0.000000e+00> : vector<8x384xf32>
    %237 = tpu.matmul %231, %1, %cst_47 {dimension_numbers = #tpu.dot_dimension_numbers<[1], [0], [0], [1], [0, 0, 1, 1], [], []>} : vector<8x128xf32>, vector<128x384xf32>, vector<8x384xf32> -> vector<8x384xf32>
    %238 = vector.extract_strided_slice %236 {offsets = [0, 0], sizes = [8, 128], strides = [1, 1]} : vector<8x384xf32> to vector<8x128xf32>
    %239 = vector.extract_strided_slice %237 {offsets = [0, 0], sizes = [8, 128], strides = [1, 1]} : vector<8x384xf32> to vector<8x128xf32>
    %240 = arith.addf %238, %239 : vector<8x128xf32>
    %241 = arith.negf %240 : vector<8x128xf32>
    %242 = math.exp %241 : vector<8x128xf32>
    %cst_48 = arith.constant 1.000000e+00 : f32
    %243 = vector.broadcast %cst_48 : f32 to vector<8x128xf32>
    %244 = arith.addf %243, %242 : vector<8x128xf32>
    %245 = arith.divf %243, %244 : vector<8x128xf32>
    %246 = vector.extract_strided_slice %236 {offsets = [0, 128], sizes = [8, 128], strides = [1, 1]} : vector<8x384xf32> to vector<8x128xf32>
    %247 = vector.extract_strided_slice %237 {offsets = [0, 128], sizes = [8, 128], strides = [1, 1]} : vector<8x384xf32> to vector<8x128xf32>
    %248 = arith.addf %246, %247 : vector<8x128xf32>
    %249 = arith.negf %248 : vector<8x128xf32>
    %250 = math.exp %249 : vector<8x128xf32>
    %cst_49 = arith.constant 1.000000e+00 : f32
    %251 = vector.broadcast %cst_49 : f32 to vector<8x128xf32>
    %252 = arith.addf %251, %250 : vector<8x128xf32>
    %253 = arith.divf %251, %252 : vector<8x128xf32>
    %254 = vector.extract_strided_slice %236 {offsets = [0, 256], sizes = [8, 128], strides = [1, 1]} : vector<8x384xf32> to vector<8x128xf32>
    %255 = vector.extract_strided_slice %237 {offsets = [0, 256], sizes = [8, 128], strides = [1, 1]} : vector<8x384xf32> to vector<8x128xf32>
    %256 = vector.broadcast %3 : vector<1x128xf32> to vector<8x128xf32>
    %257 = arith.addf %255, %256 : vector<8x128xf32>
    %258 = arith.mulf %245, %257 : vector<8x128xf32>
    %259 = arith.addf %254, %258 : vector<8x128xf32>
    %260 = math.tanh %259 : vector<8x128xf32>
    %261 = arith.subf %231, %260 : vector<8x128xf32>
    %262 = arith.mulf %253, %261 : vector<8x128xf32>
    %263 = arith.addf %260, %262 : vector<8x128xf32>
    %c7 = arith.constant 7 : index
    %c0_50 = arith.constant 0 : index
    %c0_51 = arith.constant 0 : index
    %264 = vector.load %arg12[%c7, %c0_50, %c0_51] : memref<8x8x128xf32, #tpu.memory_space<vmem>>, vector<1x8x128xf32>
    %265 = vector.shape_cast %264 : vector<1x8x128xf32> to vector<8x128xf32>
    %266 = vector.shape_cast %263 : vector<8x128xf32> to vector<1x8x128xf32>
    tpu.vector_store %arg12[%c7, %c0_50, %c0_51], %266 {strides = array<i32>} : memref<8x8x128xf32, #tpu.memory_space<vmem>>, vector<1x8x128xf32>,
    %c0_52 = arith.constant 0 : index
    %c0_53 = arith.constant 0 : index
    %267 = vector.load %arg5[%c0_52, %c0_53] : memref<128x384xf32, #tpu.memory_space<vmem>>, vector<128x384xf32>
    %c0_54 = arith.constant 0 : index
    %c0_55 = arith.constant 0 : index
    %268 = vector.load %arg6[%c0_54, %c0_55] : memref<128x384xf32, #tpu.memory_space<vmem>>, vector<128x384xf32>
    %c0_56 = arith.constant 0 : index
    %c0_57 = arith.constant 0 : index
    %269 = vector.load %arg7[%c0_56, %c0_57] : memref<1x384xf32, #tpu.memory_space<vmem>>, vector<1x384xf32>
    %c0_58 = arith.constant 0 : index
    %c0_59 = arith.constant 0 : index
    %270 = vector.load %arg8[%c0_58, %c0_59] : memref<1x128xf32, #tpu.memory_space<vmem>>, vector<1x128xf32>
    %c0_60 = arith.constant 0 : index
    %c0_61 = arith.constant 0 : index
    %c0_62 = arith.constant 0 : index
    %271 = vector.load %arg12[%c0_60, %c0_61, %c0_62] : memref<8x8x128xf32, #tpu.memory_space<vmem>>, vector<8x8x128xf32>
    %272 = vector.shape_cast %271 : vector<8x8x128xf32> to vector<64x128xf32>
    %cst_63 = arith.constant dense<0.000000e+00> : vector<64x384xf32>
    %273 = tpu.matmul %272, %267, %cst_63 {dimension_numbers = #tpu.dot_dimension_numbers<[1], [0], [0], [1], [0, 0, 1, 1], [], []>} : vector<64x128xf32>, vector<128x384xf32>, vector<64x384xf32> -> vector<64x384xf32>
    %274 = vector.broadcast %269 : vector<1x384xf32> to vector<64x384xf32>
    %275 = arith.addf %273, %274 : vector<64x384xf32>
    %276 = vector.shape_cast %275 : vector<64x384xf32> to vector<8x8x384xf32>
    %cst_64 = arith.constant 0.000000e+00 : f32
    %277 = vector.broadcast %cst_64 : f32 to vector<8x128xf32>
    %278 = vector.extract_strided_slice %276 {offsets = [0, 0, 0], sizes = [1, 8, 384], strides = [1, 1, 1]} : vector<8x8x384xf32> to vector<1x8x384xf32>
    %279 = vector.shape_cast %278 : vector<1x8x384xf32> to vector<8x384xf32>
    %cst_65 = arith.constant dense<0.000000e+00> : vector<8x384xf32>
    %280 = tpu.matmul %277, %268, %cst_65 {dimension_numbers = #tpu.dot_dimension_numbers<[1], [0], [0], [1], [0, 0, 1, 1], [], []>} : vector<8x128xf32>, vector<128x384xf32>, vector<8x384xf32> -> vector<8x384xf32>
    %281 = vector.extract_strided_slice %279 {offsets = [0, 0], sizes = [8, 128], strides = [1, 1]} : vector<8x384xf32> to vector<8x128xf32>
    %282 = vector.extract_strided_slice %280 {offsets = [0, 0], sizes = [8, 128], strides = [1, 1]} : vector<8x384xf32> to vector<8x128xf32>
    %283 = arith.addf %281, %282 : vector<8x128xf32>
    %284 = arith.negf %283 : vector<8x128xf32>
    %285 = math.exp %284 : vector<8x128xf32>
    %cst_66 = arith.constant 1.000000e+00 : f32
    %286 = vector.broadcast %cst_66 : f32 to vector<8x128xf32>
    %287 = arith.addf %286, %285 : vector<8x128xf32>
    %288 = arith.divf %286, %287 : vector<8x128xf32>
    %289 = vector.extract_strided_slice %279 {offsets = [0, 128], sizes = [8, 128], strides = [1, 1]} : vector<8x384xf32> to vector<8x128xf32>
    %290 = vector.extract_strided_slice %280 {offsets = [0, 128], sizes = [8, 128], strides = [1, 1]} : vector<8x384xf32> to vector<8x128xf32>
    %291 = arith.addf %289, %290 : vector<8x128xf32>
    %292 = arith.negf %291 : vector<8x128xf32>
    %293 = math.exp %292 : vector<8x128xf32>
    %cst_67 = arith.constant 1.000000e+00 : f32
    %294 = vector.broadcast %cst_67 : f32 to vector<8x128xf32>
    %295 = arith.addf %294, %293 : vector<8x128xf32>
    %296 = arith.divf %294, %295 : vector<8x128xf32>
    %297 = vector.extract_strided_slice %279 {offsets = [0, 256], sizes = [8, 128], strides = [1, 1]} : vector<8x384xf32> to vector<8x128xf32>
    %298 = vector.extract_strided_slice %280 {offsets = [0, 256], sizes = [8, 128], strides = [1, 1]} : vector<8x384xf32> to vector<8x128xf32>
    %299 = vector.broadcast %270 : vector<1x128xf32> to vector<8x128xf32>
    %300 = arith.addf %298, %299 : vector<8x128xf32>
    %301 = arith.mulf %288, %300 : vector<8x128xf32>
    %302 = arith.addf %297, %301 : vector<8x128xf32>
    %303 = math.tanh %302 : vector<8x128xf32>
    %304 = arith.subf %277, %303 : vector<8x128xf32>
    %305 = arith.mulf %296, %304 : vector<8x128xf32>
    %306 = arith.addf %303, %305 : vector<8x128xf32>
    %307 = vector.extract_strided_slice %276 {offsets = [1, 0, 0], sizes = [1, 8, 384], strides = [1, 1, 1]} : vector<8x8x384xf32> to vector<1x8x384xf32>
    %308 = vector.shape_cast %307 : vector<1x8x384xf32> to vector<8x384xf32>
    %cst_68 = arith.constant dense<0.000000e+00> : vector<8x384xf32>
    %309 = tpu.matmul %306, %268, %cst_68 {dimension_numbers = #tpu.dot_dimension_numbers<[1], [0], [0], [1], [0, 0, 1, 1], [], []>} : vector<8x128xf32>, vector<128x384xf32>, vector<8x384xf32> -> vector<8x384xf32>
    %310 = vector.extract_strided_slice %308 {offsets = [0, 0], sizes = [8, 128], strides = [1, 1]} : vector<8x384xf32> to vector<8x128xf32>
    %311 = vector.extract_strided_slice %309 {offsets = [0, 0], sizes = [8, 128], strides = [1, 1]} : vector<8x384xf32> to vector<8x128xf32>
    %312 = arith.addf %310, %311 : vector<8x128xf32>
    %313 = arith.negf %312 : vector<8x128xf32>
    %314 = math.exp %313 : vector<8x128xf32>
    %cst_69 = arith.constant 1.000000e+00 : f32
    %315 = vector.broadcast %cst_69 : f32 to vector<8x128xf32>
    %316 = arith.addf %315, %314 : vector<8x128xf32>
    %317 = arith.divf %315, %316 : vector<8x128xf32>
    %318 = vector.extract_strided_slice %308 {offsets = [0, 128], sizes = [8, 128], strides = [1, 1]} : vector<8x384xf32> to vector<8x128xf32>
    %319 = vector.extract_strided_slice %309 {offsets = [0, 128], sizes = [8, 128], strides = [1, 1]} : vector<8x384xf32> to vector<8x128xf32>
    %320 = arith.addf %318, %319 : vector<8x128xf32>
    %321 = arith.negf %320 : vector<8x128xf32>
    %322 = math.exp %321 : vector<8x128xf32>
    %cst_70 = arith.constant 1.000000e+00 : f32
    %323 = vector.broadcast %cst_70 : f32 to vector<8x128xf32>
    %324 = arith.addf %323, %322 : vector<8x128xf32>
    %325 = arith.divf %323, %324 : vector<8x128xf32>
    %326 = vector.extract_strided_slice %308 {offsets = [0, 256], sizes = [8, 128], strides = [1, 1]} : vector<8x384xf32> to vector<8x128xf32>
    %327 = vector.extract_strided_slice %309 {offsets = [0, 256], sizes = [8, 128], strides = [1, 1]} : vector<8x384xf32> to vector<8x128xf32>
    %328 = vector.broadcast %270 : vector<1x128xf32> to vector<8x128xf32>
    %329 = arith.addf %327, %328 : vector<8x128xf32>
    %330 = arith.mulf %317, %329 : vector<8x128xf32>
    %331 = arith.addf %326, %330 : vector<8x128xf32>
    %332 = math.tanh %331 : vector<8x128xf32>
    %333 = arith.subf %306, %332 : vector<8x128xf32>
    %334 = arith.mulf %325, %333 : vector<8x128xf32>
    %335 = arith.addf %332, %334 : vector<8x128xf32>
    %336 = vector.extract_strided_slice %276 {offsets = [2, 0, 0], sizes = [1, 8, 384], strides = [1, 1, 1]} : vector<8x8x384xf32> to vector<1x8x384xf32>
    %337 = vector.shape_cast %336 : vector<1x8x384xf32> to vector<8x384xf32>
    %cst_71 = arith.constant dense<0.000000e+00> : vector<8x384xf32>
    %338 = tpu.matmul %335, %268, %cst_71 {dimension_numbers = #tpu.dot_dimension_numbers<[1], [0], [0], [1], [0, 0, 1, 1], [], []>} : vector<8x128xf32>, vector<128x384xf32>, vector<8x384xf32> -> vector<8x384xf32>
    %339 = vector.extract_strided_slice %337 {offsets = [0, 0], sizes = [8, 128], strides = [1, 1]} : vector<8x384xf32> to vector<8x128xf32>
    %340 = vector.extract_strided_slice %338 {offsets = [0, 0], sizes = [8, 128], strides = [1, 1]} : vector<8x384xf32> to vector<8x128xf32>
    %341 = arith.addf %339, %340 : vector<8x128xf32>
    %342 = arith.negf %341 : vector<8x128xf32>
    %343 = math.exp %342 : vector<8x128xf32>
    %cst_72 = arith.constant 1.000000e+00 : f32
    %344 = vector.broadcast %cst_72 : f32 to vector<8x128xf32>
    %345 = arith.addf %344, %343 : vector<8x128xf32>
    %346 = arith.divf %344, %345 : vector<8x128xf32>
    %347 = vector.extract_strided_slice %337 {offsets = [0, 128], sizes = [8, 128], strides = [1, 1]} : vector<8x384xf32> to vector<8x128xf32>
    %348 = vector.extract_strided_slice %338 {offsets = [0, 128], sizes = [8, 128], strides = [1, 1]} : vector<8x384xf32> to vector<8x128xf32>
    %349 = arith.addf %347, %348 : vector<8x128xf32>
    %350 = arith.negf %349 : vector<8x128xf32>
    %351 = math.exp %350 : vector<8x128xf32>
    %cst_73 = arith.constant 1.000000e+00 : f32
    %352 = vector.broadcast %cst_73 : f32 to vector<8x128xf32>
    %353 = arith.addf %352, %351 : vector<8x128xf32>
    %354 = arith.divf %352, %353 : vector<8x128xf32>
    %355 = vector.extract_strided_slice %337 {offsets = [0, 256], sizes = [8, 128], strides = [1, 1]} : vector<8x384xf32> to vector<8x128xf32>
    %356 = vector.extract_strided_slice %338 {offsets = [0, 256], sizes = [8, 128], strides = [1, 1]} : vector<8x384xf32> to vector<8x128xf32>
    %357 = vector.broadcast %270 : vector<1x128xf32> to vector<8x128xf32>
    %358 = arith.addf %356, %357 : vector<8x128xf32>
    %359 = arith.mulf %346, %358 : vector<8x128xf32>
    %360 = arith.addf %355, %359 : vector<8x128xf32>
    %361 = math.tanh %360 : vector<8x128xf32>
    %362 = arith.subf %335, %361 : vector<8x128xf32>
    %363 = arith.mulf %354, %362 : vector<8x128xf32>
    %364 = arith.addf %361, %363 : vector<8x128xf32>
    %365 = vector.extract_strided_slice %276 {offsets = [3, 0, 0], sizes = [1, 8, 384], strides = [1, 1, 1]} : vector<8x8x384xf32> to vector<1x8x384xf32>
    %366 = vector.shape_cast %365 : vector<1x8x384xf32> to vector<8x384xf32>
    %cst_74 = arith.constant dense<0.000000e+00> : vector<8x384xf32>
    %367 = tpu.matmul %364, %268, %cst_74 {dimension_numbers = #tpu.dot_dimension_numbers<[1], [0], [0], [1], [0, 0, 1, 1], [], []>} : vector<8x128xf32>, vector<128x384xf32>, vector<8x384xf32> -> vector<8x384xf32>
    %368 = vector.extract_strided_slice %366 {offsets = [0, 0], sizes = [8, 128], strides = [1, 1]} : vector<8x384xf32> to vector<8x128xf32>
    %369 = vector.extract_strided_slice %367 {offsets = [0, 0], sizes = [8, 128], strides = [1, 1]} : vector<8x384xf32> to vector<8x128xf32>
    %370 = arith.addf %368, %369 : vector<8x128xf32>
    %371 = arith.negf %370 : vector<8x128xf32>
    %372 = math.exp %371 : vector<8x128xf32>
    %cst_75 = arith.constant 1.000000e+00 : f32
    %373 = vector.broadcast %cst_75 : f32 to vector<8x128xf32>
    %374 = arith.addf %373, %372 : vector<8x128xf32>
    %375 = arith.divf %373, %374 : vector<8x128xf32>
    %376 = vector.extract_strided_slice %366 {offsets = [0, 128], sizes = [8, 128], strides = [1, 1]} : vector<8x384xf32> to vector<8x128xf32>
    %377 = vector.extract_strided_slice %367 {offsets = [0, 128], sizes = [8, 128], strides = [1, 1]} : vector<8x384xf32> to vector<8x128xf32>
    %378 = arith.addf %376, %377 : vector<8x128xf32>
    %379 = arith.negf %378 : vector<8x128xf32>
    %380 = math.exp %379 : vector<8x128xf32>
    %cst_76 = arith.constant 1.000000e+00 : f32
    %381 = vector.broadcast %cst_76 : f32 to vector<8x128xf32>
    %382 = arith.addf %381, %380 : vector<8x128xf32>
    %383 = arith.divf %381, %382 : vector<8x128xf32>
    %384 = vector.extract_strided_slice %366 {offsets = [0, 256], sizes = [8, 128], strides = [1, 1]} : vector<8x384xf32> to vector<8x128xf32>
    %385 = vector.extract_strided_slice %367 {offsets = [0, 256], sizes = [8, 128], strides = [1, 1]} : vector<8x384xf32> to vector<8x128xf32>
    %386 = vector.broadcast %270 : vector<1x128xf32> to vector<8x128xf32>
    %387 = arith.addf %385, %386 : vector<8x128xf32>
    %388 = arith.mulf %375, %387 : vector<8x128xf32>
    %389 = arith.addf %384, %388 : vector<8x128xf32>
    %390 = math.tanh %389 : vector<8x128xf32>
    %391 = arith.subf %364, %390 : vector<8x128xf32>
    %392 = arith.mulf %383, %391 : vector<8x128xf32>
    %393 = arith.addf %390, %392 : vector<8x128xf32>
    %394 = vector.extract_strided_slice %276 {offsets = [4, 0, 0], sizes = [1, 8, 384], strides = [1, 1, 1]} : vector<8x8x384xf32> to vector<1x8x384xf32>
    %395 = vector.shape_cast %394 : vector<1x8x384xf32> to vector<8x384xf32>
    %cst_77 = arith.constant dense<0.000000e+00> : vector<8x384xf32>
    %396 = tpu.matmul %393, %268, %cst_77 {dimension_numbers = #tpu.dot_dimension_numbers<[1], [0], [0], [1], [0, 0, 1, 1], [], []>} : vector<8x128xf32>, vector<128x384xf32>, vector<8x384xf32> -> vector<8x384xf32>
    %397 = vector.extract_strided_slice %395 {offsets = [0, 0], sizes = [8, 128], strides = [1, 1]} : vector<8x384xf32> to vector<8x128xf32>
    %398 = vector.extract_strided_slice %396 {offsets = [0, 0], sizes = [8, 128], strides = [1, 1]} : vector<8x384xf32> to vector<8x128xf32>
    %399 = arith.addf %397, %398 : vector<8x128xf32>
    %400 = arith.negf %399 : vector<8x128xf32>
    %401 = math.exp %400 : vector<8x128xf32>
    %cst_78 = arith.constant 1.000000e+00 : f32
    %402 = vector.broadcast %cst_78 : f32 to vector<8x128xf32>
    %403 = arith.addf %402, %401 : vector<8x128xf32>
    %404 = arith.divf %402, %403 : vector<8x128xf32>
    %405 = vector.extract_strided_slice %395 {offsets = [0, 128], sizes = [8, 128], strides = [1, 1]} : vector<8x384xf32> to vector<8x128xf32>
    %406 = vector.extract_strided_slice %396 {offsets = [0, 128], sizes = [8, 128], strides = [1, 1]} : vector<8x384xf32> to vector<8x128xf32>
    %407 = arith.addf %405, %406 : vector<8x128xf32>
    %408 = arith.negf %407 : vector<8x128xf32>
    %409 = math.exp %408 : vector<8x128xf32>
    %cst_79 = arith.constant 1.000000e+00 : f32
    %410 = vector.broadcast %cst_79 : f32 to vector<8x128xf32>
    %411 = arith.addf %410, %409 : vector<8x128xf32>
    %412 = arith.divf %410, %411 : vector<8x128xf32>
    %413 = vector.extract_strided_slice %395 {offsets = [0, 256], sizes = [8, 128], strides = [1, 1]} : vector<8x384xf32> to vector<8x128xf32>
    %414 = vector.extract_strided_slice %396 {offsets = [0, 256], sizes = [8, 128], strides = [1, 1]} : vector<8x384xf32> to vector<8x128xf32>
    %415 = vector.broadcast %270 : vector<1x128xf32> to vector<8x128xf32>
    %416 = arith.addf %414, %415 : vector<8x128xf32>
    %417 = arith.mulf %404, %416 : vector<8x128xf32>
    %418 = arith.addf %413, %417 : vector<8x128xf32>
    %419 = math.tanh %418 : vector<8x128xf32>
    %420 = arith.subf %393, %419 : vector<8x128xf32>
    %421 = arith.mulf %412, %420 : vector<8x128xf32>
    %422 = arith.addf %419, %421 : vector<8x128xf32>
    %423 = vector.extract_strided_slice %276 {offsets = [5, 0, 0], sizes = [1, 8, 384], strides = [1, 1, 1]} : vector<8x8x384xf32> to vector<1x8x384xf32>
    %424 = vector.shape_cast %423 : vector<1x8x384xf32> to vector<8x384xf32>
    %cst_80 = arith.constant dense<0.000000e+00> : vector<8x384xf32>
    %425 = tpu.matmul %422, %268, %cst_80 {dimension_numbers = #tpu.dot_dimension_numbers<[1], [0], [0], [1], [0, 0, 1, 1], [], []>} : vector<8x128xf32>, vector<128x384xf32>, vector<8x384xf32> -> vector<8x384xf32>
    %426 = vector.extract_strided_slice %424 {offsets = [0, 0], sizes = [8, 128], strides = [1, 1]} : vector<8x384xf32> to vector<8x128xf32>
    %427 = vector.extract_strided_slice %425 {offsets = [0, 0], sizes = [8, 128], strides = [1, 1]} : vector<8x384xf32> to vector<8x128xf32>
    %428 = arith.addf %426, %427 : vector<8x128xf32>
    %429 = arith.negf %428 : vector<8x128xf32>
    %430 = math.exp %429 : vector<8x128xf32>
    %cst_81 = arith.constant 1.000000e+00 : f32
    %431 = vector.broadcast %cst_81 : f32 to vector<8x128xf32>
    %432 = arith.addf %431, %430 : vector<8x128xf32>
    %433 = arith.divf %431, %432 : vector<8x128xf32>
    %434 = vector.extract_strided_slice %424 {offsets = [0, 128], sizes = [8, 128], strides = [1, 1]} : vector<8x384xf32> to vector<8x128xf32>
    %435 = vector.extract_strided_slice %425 {offsets = [0, 128], sizes = [8, 128], strides = [1, 1]} : vector<8x384xf32> to vector<8x128xf32>
    %436 = arith.addf %434, %435 : vector<8x128xf32>
    %437 = arith.negf %436 : vector<8x128xf32>
    %438 = math.exp %437 : vector<8x128xf32>
    %cst_82 = arith.constant 1.000000e+00 : f32
    %439 = vector.broadcast %cst_82 : f32 to vector<8x128xf32>
    %440 = arith.addf %439, %438 : vector<8x128xf32>
    %441 = arith.divf %439, %440 : vector<8x128xf32>
    %442 = vector.extract_strided_slice %424 {offsets = [0, 256], sizes = [8, 128], strides = [1, 1]} : vector<8x384xf32> to vector<8x128xf32>
    %443 = vector.extract_strided_slice %425 {offsets = [0, 256], sizes = [8, 128], strides = [1, 1]} : vector<8x384xf32> to vector<8x128xf32>
    %444 = vector.broadcast %270 : vector<1x128xf32> to vector<8x128xf32>
    %445 = arith.addf %443, %444 : vector<8x128xf32>
    %446 = arith.mulf %433, %445 : vector<8x128xf32>
    %447 = arith.addf %442, %446 : vector<8x128xf32>
    %448 = math.tanh %447 : vector<8x128xf32>
    %449 = arith.subf %422, %448 : vector<8x128xf32>
    %450 = arith.mulf %441, %449 : vector<8x128xf32>
    %451 = arith.addf %448, %450 : vector<8x128xf32>
    %452 = vector.extract_strided_slice %276 {offsets = [6, 0, 0], sizes = [1, 8, 384], strides = [1, 1, 1]} : vector<8x8x384xf32> to vector<1x8x384xf32>
    %453 = vector.shape_cast %452 : vector<1x8x384xf32> to vector<8x384xf32>
    %cst_83 = arith.constant dense<0.000000e+00> : vector<8x384xf32>
    %454 = tpu.matmul %451, %268, %cst_83 {dimension_numbers = #tpu.dot_dimension_numbers<[1], [0], [0], [1], [0, 0, 1, 1], [], []>} : vector<8x128xf32>, vector<128x384xf32>, vector<8x384xf32> -> vector<8x384xf32>
    %455 = vector.extract_strided_slice %453 {offsets = [0, 0], sizes = [8, 128], strides = [1, 1]} : vector<8x384xf32> to vector<8x128xf32>
    %456 = vector.extract_strided_slice %454 {offsets = [0, 0], sizes = [8, 128], strides = [1, 1]} : vector<8x384xf32> to vector<8x128xf32>
    %457 = arith.addf %455, %456 : vector<8x128xf32>
    %458 = arith.negf %457 : vector<8x128xf32>
    %459 = math.exp %458 : vector<8x128xf32>
    %cst_84 = arith.constant 1.000000e+00 : f32
    %460 = vector.broadcast %cst_84 : f32 to vector<8x128xf32>
    %461 = arith.addf %460, %459 : vector<8x128xf32>
    %462 = arith.divf %460, %461 : vector<8x128xf32>
    %463 = vector.extract_strided_slice %453 {offsets = [0, 128], sizes = [8, 128], strides = [1, 1]} : vector<8x384xf32> to vector<8x128xf32>
    %464 = vector.extract_strided_slice %454 {offsets = [0, 128], sizes = [8, 128], strides = [1, 1]} : vector<8x384xf32> to vector<8x128xf32>
    %465 = arith.addf %463, %464 : vector<8x128xf32>
    %466 = arith.negf %465 : vector<8x128xf32>
    %467 = math.exp %466 : vector<8x128xf32>
    %cst_85 = arith.constant 1.000000e+00 : f32
    %468 = vector.broadcast %cst_85 : f32 to vector<8x128xf32>
    %469 = arith.addf %468, %467 : vector<8x128xf32>
    %470 = arith.divf %468, %469 : vector<8x128xf32>
    %471 = vector.extract_strided_slice %453 {offsets = [0, 256], sizes = [8, 128], strides = [1, 1]} : vector<8x384xf32> to vector<8x128xf32>
    %472 = vector.extract_strided_slice %454 {offsets = [0, 256], sizes = [8, 128], strides = [1, 1]} : vector<8x384xf32> to vector<8x128xf32>
    %473 = vector.broadcast %270 : vector<1x128xf32> to vector<8x128xf32>
    %474 = arith.addf %472, %473 : vector<8x128xf32>
    %475 = arith.mulf %462, %474 : vector<8x128xf32>
    %476 = arith.addf %471, %475 : vector<8x128xf32>
    %477 = math.tanh %476 : vector<8x128xf32>
    %478 = arith.subf %451, %477 : vector<8x128xf32>
    %479 = arith.mulf %470, %478 : vector<8x128xf32>
    %480 = arith.addf %477, %479 : vector<8x128xf32>
    %481 = vector.extract_strided_slice %276 {offsets = [7, 0, 0], sizes = [1, 8, 384], strides = [1, 1, 1]} : vector<8x8x384xf32> to vector<1x8x384xf32>
    %482 = vector.shape_cast %481 : vector<1x8x384xf32> to vector<8x384xf32>
    %cst_86 = arith.constant dense<0.000000e+00> : vector<8x384xf32>
    %483 = tpu.matmul %480, %268, %cst_86 {dimension_numbers = #tpu.dot_dimension_numbers<[1], [0], [0], [1], [0, 0, 1, 1], [], []>} : vector<8x128xf32>, vector<128x384xf32>, vector<8x384xf32> -> vector<8x384xf32>
    %484 = vector.extract_strided_slice %482 {offsets = [0, 0], sizes = [8, 128], strides = [1, 1]} : vector<8x384xf32> to vector<8x128xf32>
    %485 = vector.extract_strided_slice %483 {offsets = [0, 0], sizes = [8, 128], strides = [1, 1]} : vector<8x384xf32> to vector<8x128xf32>
    %486 = arith.addf %484, %485 : vector<8x128xf32>
    %487 = arith.negf %486 : vector<8x128xf32>
    %488 = math.exp %487 : vector<8x128xf32>
    %cst_87 = arith.constant 1.000000e+00 : f32
    %489 = vector.broadcast %cst_87 : f32 to vector<8x128xf32>
    %490 = arith.addf %489, %488 : vector<8x128xf32>
    %491 = arith.divf %489, %490 : vector<8x128xf32>
    %492 = vector.extract_strided_slice %482 {offsets = [0, 128], sizes = [8, 128], strides = [1, 1]} : vector<8x384xf32> to vector<8x128xf32>
    %493 = vector.extract_strided_slice %483 {offsets = [0, 128], sizes = [8, 128], strides = [1, 1]} : vector<8x384xf32> to vector<8x128xf32>
    %494 = arith.addf %492, %493 : vector<8x128xf32>
    %495 = arith.negf %494 : vector<8x128xf32>
    %496 = math.exp %495 : vector<8x128xf32>
    %cst_88 = arith.constant 1.000000e+00 : f32
    %497 = vector.broadcast %cst_88 : f32 to vector<8x128xf32>
    %498 = arith.addf %497, %496 : vector<8x128xf32>
    %499 = arith.divf %497, %498 : vector<8x128xf32>
    %500 = vector.extract_strided_slice %482 {offsets = [0, 256], sizes = [8, 128], strides = [1, 1]} : vector<8x384xf32> to vector<8x128xf32>
    %501 = vector.extract_strided_slice %483 {offsets = [0, 256], sizes = [8, 128], strides = [1, 1]} : vector<8x384xf32> to vector<8x128xf32>
    %502 = vector.broadcast %270 : vector<1x128xf32> to vector<8x128xf32>
    %503 = arith.addf %501, %502 : vector<8x128xf32>
    %504 = arith.mulf %491, %503 : vector<8x128xf32>
    %505 = arith.addf %500, %504 : vector<8x128xf32>
    %506 = math.tanh %505 : vector<8x128xf32>
    %507 = arith.subf %480, %506 : vector<8x128xf32>
    %508 = arith.mulf %499, %507 : vector<8x128xf32>
    %509 = arith.addf %506, %508 : vector<8x128xf32>
    %c0_89 = arith.constant 0 : index
    %c0_90 = arith.constant 0 : index
    %510 = vector.load %arg9[%c0_89, %c0_90] : memref<128x128xf32, #tpu.memory_space<vmem>>, vector<128x128xf32>
    %cst_91 = arith.constant dense<0.000000e+00> : vector<8x128xf32>
    %511 = tpu.matmul %509, %510, %cst_91 {dimension_numbers = #tpu.dot_dimension_numbers<[1], [0], [0], [1], [0, 0, 1, 1], [], []>} : vector<8x128xf32>, vector<128x128xf32>, vector<8x128xf32> -> vector<8x128xf32>
    %c0_92 = arith.constant 0 : index
    %c0_93 = arith.constant 0 : index
    %512 = vector.load %arg10[%c0_92, %c0_93] : memref<1x128xf32, #tpu.memory_space<vmem>>, vector<1x128xf32>
    %513 = vector.broadcast %512 : vector<1x128xf32> to vector<8x128xf32>
    %514 = arith.addf %511, %513 : vector<8x128xf32>
    %c0_94 = arith.constant 0 : index
    %c0_95 = arith.constant 0 : index
    %515 = vector.load %arg11[%c0_94, %c0_95] : memref<8x128xf32, #tpu.memory_space<vmem>>, vector<8x128xf32>
    tpu.vector_store %arg11[%c0_94, %c0_95], %514 {strides = array<i32>} : memref<8x128xf32, #tpu.memory_space<vmem>>, vector<8x128xf32>,
    return
  }
}

</mosaic_0001>

<bundles_post_ra>
// kernel: tpu_custom_call.1
= control target key start
LH: loop header
LB: loop body
LE: loop exit
PB: predicated region body
PF: predicated region fallthrough
CT: control target
= control target key end

     0   :  { %16 = vsyncpa [#allocation4], 0  ;;  %s7095_s0 = inlined_call_operand.vmem [shape: f32[8,8,4], index: 0, kind: input, shape index: {}]   ;;  %s7096_s1 = inlined_call_operand.hbm [shape: f32[4,384], index: 1, kind: input, shape index: {}]   ;;  %s7097_s2 = inlined_call_operand.hbm [shape: f32[128,384], index: 2, kind: input, shape index: {}]   ;;  %s7098_s3 = inlined_call_operand.hbm [shape: f32[1,384], index: 3, kind: input, shape index: {}]   ;;  %s7099_s4 = inlined_call_operand.vmem [shape: f32[1,128], index: 4, kind: input, shape index: {}]   ;;  %s7100_s5 = inlined_call_operand.hbm [shape: f32[128,384], index: 5, kind: input, shape index: {}]   ;;  %s7101_s6 = inlined_call_operand.hbm [shape: f32[128,384], index: 6, kind: input, shape index: {}]   ;;  %s7102_s7 = inlined_call_operand.hbm [shape: f32[1,384], index: 7, kind: input, shape index: {}]   ;;  %s7103_s8 = inlined_call_operand.vmem [shape: f32[1,128], index: 8, kind: input, shape index: {}]   ;;  %s7104_s9 = inlined_call_operand.vmem [shape: f32[128,128], index: 9, kind: input, shape index: {}]   ;;  %s7105_s10 = inlined_call_operand.vmem [shape: f32[1,128], index: 10, kind: input, shape index: {}]   ;;  %s7106_s11 = inlined_call_operand.hbm [shape: f32[8,128], index: 11, kind: output, shape index: {}]  }
   0x1   :  { %17 = vsyncpa [#allocation7], 0 }
   0x2   :  { %18 = vsyncpa [#allocation10], 0 }
   0x3   :  { %19 = vsyncpa [#allocation13], 0 }
   0x4   :  { %20 = vsyncpa [#allocation5], 0  ;;  %s5930_s17 = smov [#allocation6]   ;;  %s5766_s21 = scalar_lea.hbm %s7097_s2, 6144 }
   0x5   :  { %s38_s18 = sshll.u32 %s5930_s17, 4  ;;  %p5767_p0 = scmp.ne.s32.totalorder %s7097_s2, %s5766_s21  ;;  %s39_s18 = int_to_ptr.vmem [resolvable:$true] %s38_s18 }
   0x6   :  { %p5770_p1 = scmp.lt.u32.totalorder %s5766_s21, %s7097_s2 }
   0x8   :  { %p5772_p2 = pnand %p5770_p1, %p5767_p0 }
   0xa   :  { %5775 = shalt.err (!%p5772_p2)
}
   0xb   :  { %s5776_s26 = scalar_lea.vmem %s39_s18, 6144  ;;  %p5781_p4 = scmp.lt.s32.totalorder %s39_s18, %s39_s18 }
   0xc   :  { %p5777_p3 = scmp.ne.s32.totalorder %s39_s18, %s5776_s26  ;;  %p5782_p5 = scmp.lt.s32.totalorder %s5776_s26, %s5776_s26 }
   0xe   :  { %p5783_p6 = por %p5782_p5, %p5781_p4 }
  0x10   :  { %p5784_p7 = pnand %p5783_p6, %p5777_p3 }
  0x12   :  { %5787 = shalt.err (!%p5784_p7)
}
  0x13   :  { %s5931_s27 = smov 384   ;;  %s5932_s28 = smov 24  }
  0x14   :  { %44 = dma.hbm_to_vmem [thread:$0]  %s7097_s2, 6144, %s39_s18, [#allocation7], %s5931_s27, %s5931_s27, %s5932_s28  }
  0x15   :  { %s5933_s12 = smov [#allocation9]   ;;  %s5934_s14 = smov [#allocation3]  }
  0x16   :  { %s62_s13 = sshll.u32 %s5933_s12, 4  ;;  %s29_s15 = sshll.u32 %s5934_s14, 4  ;;  %s63_s13 = int_to_ptr.vmem [resolvable:$true] %s62_s13  ;;  %s30_s15 = int_to_ptr.vmem [resolvable:$true] %s29_s15 }
  0x17   :  { %s5788_s19 = scalar_lea.hbm %s7100_s5, 6144 }
  0x18   :  { %p5789_p8 = scmp.ne.s32.totalorder %s7100_s5, %s5788_s19  ;;  %p5792_p9 = scmp.lt.u32.totalorder %s5788_s19, %s7100_s5 }
  0x1a   :  { %p5794_p10 = pnand %p5792_p9, %p5789_p8 }
  0x1c   :  { %5797 = shalt.err (!%p5794_p10)
}
  0x1d   :  { %s5798_s2 = scalar_lea.vmem %s63_s13, 6144  ;;  %p5803_p12 = scmp.lt.s32.totalorder %s63_s13, %s63_s13 }
  0x1e   :  { %p5799_p11 = scmp.ne.s32.totalorder %s63_s13, %s5798_s2  ;;  %p5804_p13 = scmp.lt.s32.totalorder %s5798_s2, %s5798_s2 }
  0x20   :  { %p5805_p0 = por %p5804_p13, %p5803_p12 }
  0x22   :  { %p5806_p1 = pnand %p5805_p0, %p5799_p11 }
  0x24   :  { %5809 = shalt.err (!%p5806_p1)
}
  0x25   :  { %68 = dma.hbm_to_vmem [thread:$0]  %s7100_s5, 6144, %s63_s13, [#allocation10], %s5931_s27, %s5931_s27, %s5932_s28  }
  0x26   :  { %s5810_s29 = scalar_lea.hbm %s7096_s1, 192 }
  0x27   :  { %p5811_p2 = scmp.ne.s32.totalorder %s7096_s1, %s5810_s29  ;;  %p5814_p3 = scmp.lt.u32.totalorder %s5810_s29, %s7096_s1 }
  0x29   :  { %p5816_p4 = pnand %p5814_p3, %p5811_p2 }
  0x2b   :  { %5819 = shalt.err (!%p5816_p4)
}
  0x2c   :  { %s5820_s17 = scalar_lea.vmem %s30_s15, 192  ;;  %p5825_p6 = scmp.lt.s32.totalorder %s30_s15, %s30_s15 }
  0x2d   :  { %p5821_p5 = scmp.ne.s32.totalorder %s30_s15, %s5820_s17  ;;  %p5826_p7 = scmp.lt.s32.totalorder %s5820_s17, %s5820_s17 }
  0x2f   :  { %p5827_p8 = por %p5826_p7, %p5825_p6 }
  0x31   :  { %p5828_p9 = pnand %p5827_p8, %p5821_p5 }
  0x33   :  { %5831 = shalt.err (!%p5828_p9)
}
  0x34   :  { %32 = dma.hbm_to_vmem [thread:$0]  %s7096_s1, 192, %s30_s15, [#allocation4]  }
  0x35   :  { %s5935_s19 = smov [#allocation8]   ;;  %s5936_s21 = smov [#allocation11]  }
  0x36   :  { %s51_s20 = sshll.u32 %s5935_s19, 4  ;;  %s74_s22 = sshll.u32 %s5936_s21, 4  ;;  %s52_s20 = int_to_ptr.vmem [resolvable:$true] %s51_s20  ;;  %s75_s22 = int_to_ptr.vmem [resolvable:$true] %s74_s22 }
  0x37   :  { %s5832_s18 = scalar_lea.hbm %s7098_s3, 48 }
  0x38   :  { %p5833_p10 = scmp.ne.s32.totalorder %s7098_s3, %s5832_s18  ;;  %p5836_p11 = scmp.lt.u32.totalorder %s5832_s18, %s7098_s3 }
  0x3a   :  { %p5838_p12 = pnand %p5836_p11, %p5833_p10 }
  0x3c   :  { %5841 = shalt.err (!%p5838_p12)
}
  0x3d   :  { %s5842_s1 = scalar_lea.vmem %s52_s20, 48  ;;  %s5846_s15 = scalar_lea.vmem %s52_s20, 64 }
  0x3e   :  { %p5843_p13 = scmp.ne.s32.totalorder %s52_s20, %s5842_s1  ;;  %p5847_p0 = scmp.lt.s32.totalorder %s52_s20, %s52_s20 }
  0x3f   :  { %p5848_p1 = scmp.lt.s32.totalorder %s5846_s15, %s5842_s1 }
  0x41   :  { %p5849_p2 = por %p5848_p1, %p5847_p0 }
  0x43   :  { %p5850_p3 = pnand %p5849_p2, %p5843_p13 }
  0x45   :  { %5853 = shalt.err (!%p5850_p3)
}
  0x46   :  { %54 = dma.hbm_to_vmem [thread:$0]  %s7098_s3, 48, %s52_s20, [#allocation7]  }
  0x47   :  { %s5854_s17 = scalar_lea.hbm %s7101_s6, 6144 }
  0x48   :  { %p5855_p4 = scmp.ne.s32.totalorder %s7101_s6, %s5854_s17  ;;  %p5858_p5 = scmp.lt.u32.totalorder %s5854_s17, %s7101_s6 }
  0x4a   :  { %p5860_p6 = pnand %p5858_p5, %p5855_p4 }
  0x4c   :  { %5863 = shalt.err (!%p5860_p6)
}
  0x4d   :  { %s5864_s23 = scalar_lea.vmem %s75_s22, 6144  ;;  %p5869_p8 = scmp.lt.s32.totalorder %s75_s22, %s75_s22 }
  0x4e   :  { %p5865_p7 = scmp.ne.s32.totalorder %s75_s22, %s5864_s23  ;;  %p5870_p9 = scmp.lt.s32.totalorder %s5864_s23, %s5864_s23 }
  0x50   :  { %p5871_p10 = por %p5870_p9, %p5869_p8 }
  0x52   :  { %p5872_p11 = pnand %p5871_p10, %p5865_p7 }
  0x54   :  { %5875 = shalt.err (!%p5872_p11)
}
  0x55   :  { %80 = dma.hbm_to_vmem [thread:$0]  %s7101_s6, 6144, %s75_s22, [#allocation10], %s5931_s27, %s5931_s27, %s5932_s28  }
  0x56   :  { %s5937_s2 = smov [#allocation12]   ;;  %s5876_s26 = scalar_lea.hbm %s7102_s7, 48 }
  0x57   :  { %s87_s18 = sshll.u32 %s5937_s2, 4  ;;  %p5877_p12 = scmp.ne.s32.totalorder %s7102_s7, %s5876_s26  ;;  %s88_s18 = int_to_ptr.vmem [resolvable:$true] %s87_s18 }
  0x58   :  { %p5880_p13 = scmp.lt.u32.totalorder %s5876_s26, %s7102_s7 }
  0x5a   :  { %p5882_p0 = pnand %p5880_p13, %p5877_p12 }
  0x5c   :  { %5885 = shalt.err (!%p5882_p0)
}
  0x5d   :  { %s5886_s12 = scalar_lea.vmem %s88_s18, 48  ;;  %s5890_s6 = scalar_lea.vmem %s88_s18, 64 }
  0x5e   :  { %p5887_p1 = scmp.ne.s32.totalorder %s88_s18, %s5886_s12  ;;  %p5891_p2 = scmp.lt.s32.totalorder %s88_s18, %s88_s18 }
  0x5f   :  { %p5892_p3 = scmp.lt.s32.totalorder %s5890_s6, %s5886_s12 }
  0x61   :  { %p5893_p4 = por %p5892_p3, %p5891_p2 }
  0x63   :  { %p5894_p5 = pnand %p5893_p4, %p5887_p1 }
  0x65   :  { %5897 = shalt.err (!%p5894_p5)
}
  0x66   :  { %90 = dma.hbm_to_vmem [thread:$0]  %s7102_s7, 48, %s88_s18, [#allocation13]  }
  0x67   :  { %5920 = dma.done.wait [#allocation4], 192  }
  0x68   :  { %5921 = vsyncadd [#allocation4], 4294967104 }
  0x69   :  { %5922 = dma.done.wait [#allocation7], 6192  }
  0x6a   :  { %5923 = vsyncadd [#allocation7], 4294961104 }
  0x6b   :  { %5924 = dma.done.wait [#allocation10], 12288  }
  0x6c   :  { %5925 = vsyncadd [#allocation10], 4294955008 }
  0x6d   :  { %5926 = dma.done.wait [#allocation13], 48  }
  0x6e   :  { %5927 = vsyncadd [#allocation13], 4294967248  ;;  %v5938_v0 = vmov 0.0   ;;  %v115_v1 = vld [vmem:[#allocation3] sm:$0xff]  ;;  %vm219_vm0 = vcmask 1043456   ;;  %vm194_vm1 = vcmask 31744  }
  0x6f   :  { %290 = vmatprep.mubr.f32.mxu0 %v5938_v0  ;;  %v167_v2 = vld [vmem:[%s7095_s0] sm:$0xff]  ;;  %v118_v3 = vld [vmem:[#allocation6 + $0x8] sm:$0xff]  ;;  %v193_v4 = vcombine.high %v115_v1, %v115_v1  ;;  %v121_v5 = vld [vmem:[#allocation6 + $0x20] sm:$0xff]  ;;  %v5939_v34 = vmov 0.0|0.0   ;;  %vm5940_vm2 = vmmov 0   ;;  %s5941_s28 = smov [#allocation14]  }
  0x70   :  { %v117_v6 = vld [vmem:[#allocation6] sm:$0xff]  ;;  %v120_v7 = vld [vmem:[#allocation6 + $0x18] sm:$0xff]  ;;  %3893 = vmatprep.mubr.msk.f32.mxu1 %vm194_vm1, %v167_v2  ;;  %v6088_v8 = vpack.c.bf16 %v121_v5, %v118_v3  ;;  %v127_v11 = vld [vmem:[#allocation6 + $0x50] sm:$0xff]  ;;  %s3503_s22 = sshll.u32 %s5941_s28, 4  ;;  %s3504_s22 = int_to_ptr.vmem [resolvable:$true] %s3503_s22 }
  0x71   :  { %v6090_v9 = vpack.c.bf16 %v120_v7, %v117_v6  ;;  %v124_v10 = vld [vmem:[#allocation6 + $0x38] sm:$0xff]  ;;  %3515 = vmatprep.subr.msk.mxu0 %vm219_vm0, %v193_v4  ;;  %v123_v13 = vld [vmem:[#allocation6 + $0x30] sm:$0xff]  ;;  %v126_v14 = vld [vmem:[#allocation6 + $0x48] sm:$0xff]  ;;  %s5898_s14 = scalar_lea.vmem %s3504_s22, 128  ;;  %p5903_p7 = scmp.lt.s32.totalorder %s3504_s22, %s3504_s22 }
  0x72   :  { %v6093_v12 = vpack.c.bf16 %v127_v11, %v124_v10  ;;  %3516 = vmatpush1.msk.msra.mxu0 %vm219_vm0, %v115_v1  ;;  %v130_v15 = vld [vmem:[#allocation6 + $0x68] sm:$0xff]  ;;  %v133_v16 = vld [vmem:[#allocation6 + $0x80] sm:$0xff]  ;;  %v6103_v18 = vpack.c.bf16 %v126_v14, %v123_v13  ;;  %v132_v21 = vld [vmem:[#allocation6 + $0x78] sm:$0xff]  ;;  %p5899_p6 = scmp.ne.s32.totalorder %s3504_s22, %s5898_s14  ;;  %p5904_p8 = scmp.lt.s32.totalorder %s5898_s14, %s5898_s14 }
  0x73   :  { %3517 = vmatmul.mubr.msk.f32.vlgmr.msra.gmra.mrb[0].mxu0 %vm194_vm1, %v167_v2  ;;  %4545 = vmatprep.subr.bf16.mxu0 %v6088_v8  ;;  %v168_v17 = vld [vmem:[%s7095_s0 + $0x8] sm:$0xff]  ;;  %v6106_v19 = vpack.c.bf16 %v133_v16, %v130_v15  ;;  %v139_v23 = vld [vmem:[#allocation6 + $0xb0] sm:$0xff]  ;;  %v169_v24 = vld [vmem:[%s7095_s0 + $0x10] sm:$0xff] }
  0x74   :  { %4547 = vmatpush1.bf16.msra.mxu0 %v6090_v9  ;;  %296 = vmatprep.mubr.f32.mxu0 %v5938_v0  ;;  %v129_v20 = vld [vmem:[#allocation6 + $0x60] sm:$0xff]  ;;  %v136_v22 = vld [vmem:[#allocation6 + $0x98] sm:$0xff]  ;;  %v135_v28 = vld [vmem:[#allocation6 + $0x90] sm:$0xff]  ;;  %p5905_p9 = por %p5904_p8, %p5903_p7 }
  0x75   :  { %4549 = vmatprep.subr.bf16.mxu0 %v6093_v12  ;;  %v6114_v25 = vpack.c.bf16 %v132_v21, %v129_v20  ;;  %v116_v26 = vld [vmem:[#allocation3 + $0x8] sm:$0xf]  ;;  %v6117_v27 = vpack.c.bf16 %v139_v23, %v136_v22  ;;  %v138_v29 = vld [vmem:[#allocation6 + $0xa8] sm:$0xff]  ;;  %v145_v31 = vld [vmem:[#allocation6 + $0xe0] sm:$0xff] }
  0x76   :  { %v142_v30 = vld [vmem:[#allocation6 + $0xc8] sm:$0xff]  ;;  %3891 = vmatprep.subr.msk.mxu1 %vm219_vm0, %v116_v26  ;;  %v119_v32 = vld [vmem:[#allocation6 + $0x10] sm:$0xff]  ;;  %v6130_v37 = vpack.c.bf16 %v138_v29, %v135_v28  ;;  %v125_v38 = vld [vmem:[#allocation6 + $0x40] sm:$0xff]  ;;  %v176_v29 = vlaneseq  ;;  %p5906_p10 = pnand %p5905_p9, %p5899_p6 }
  0x77   :  { %3518 = vmatmul.mubr.msk.f32.gmra.mrb[2].mxu0 %vm194_vm1, %v168_v17  ;;  %3892 = vmatpush3.msk.msra.mxu1 %vm219_vm0, %v116_v26  ;;  %v122_v33 = vld [vmem:[#allocation6 + $0x28] sm:$0xff]  ;;  %v6133_v39 = vpack.c.bf16 %v145_v31, %v142_v30  ;;  %v141_v40 = vld [vmem:[#allocation6 + $0xc0] sm:$0xff]  ;;  %v144_v41 = vld [vmem:[#allocation6 + $0xd8] sm:$0xff] }
  0x78   :  { %4551 = vmatpush1.bf16.msra.mxu0 %v6103_v18  ;;  %302 = vmatprep.mubr.f32.mxu0 %v5938_v0  ;;  %v6123_v35 = vpack.c.bf16 %v122_v33, %v119_v32  ;;  %v170_v36 = vld [vmem:[%s7095_s0 + $0x18] sm:$0xff]  ;;  %v128_v42 = vld [vmem:[#allocation6 + $0x58] sm:$0xff]  ;;  %v6147_v49 = vpack.c.bf16 %v144_v41, %v141_v40  ;;  %v157_v54 = vld [vmem:[#allocation6 + $0x140] sm:$0xff]  ;;  %v6257_v30 = vshrl.u32 %v176_v29, 7 }
  0x79   :  { %4553 = vmatprep.subr.bf16.mxu0 %v6106_v19  ;;  %4576 = vmatprep.subr.bf16.mxu1 %v5939_v34  ;;  %v148_v43 = vld [vmem:[#allocation6 + $0xf8] sm:$0xff]  ;;  %v151_v44 = vld [vmem:[#allocation6 + $0x110] sm:$0xff]  ;;  %v6137_v45 = vpack.c.bf16 %v128_v42, %v125_v38  ;;  %v134_v47 = vld [vmem:[#allocation6 + $0x88] sm:$0xff] }
  0x7a   :  { %3894 = vmatmul.mubr.msk.f32.vlgmr.msra.gmra.mrb[0].mxu1 %vm194_vm1, %v168_v17  ;;  %v131_v46 = vld [vmem:[#allocation6 + $0x70] sm:$0xff]  ;;  %v6150_v50 = vpack.c.bf16 %v151_v44, %v148_v43  ;;  %v150_v52 = vld [vmem:[#allocation6 + $0x108] sm:$0xff]  ;;  %v137_v56 = vld [vmem:[#allocation6 + $0xa0] sm:$0xff]  ;;  %v186_v31 = vsub.s32 2, %v6257_v30 }
  0x7b   :  { %3519 = vmatmul.mubr.msk.f32.gmra.mrb[4].mxu0 %vm194_vm1, %v169_v24  ;;  %4578 = vmatpush3.bf16.msra.mxu1 %v6123_v35  ;;  %v171_v48 = vld [vmem:[%s7095_s0 + $0x20] sm:$0xff]  ;;  %v154_v53 = vld [vmem:[#allocation6 + $0x128] sm:$0xff]  ;;  %v6154_v55 = vpack.c.bf16 %v134_v47, %v131_v46  ;;  %v172_v58 = vld [vmem:[%s7095_s0 + $0x28] sm:$0xff] }
  0x7c   :  { %4555 = vmatpush1.bf16.msra.mxu0 %v6114_v25  ;;  %308 = vmatprep.mubr.f32.mxu0 %v5938_v0  ;;  %v147_v51 = vld [vmem:[#allocation6 + $0xf0] sm:$0xff]  ;;  %v140_v57 = vld [vmem:[#allocation6 + $0xb8] sm:$0xff]  ;;  %v173_v60 = vld [vmem:[%s7095_s0 + $0x30] sm:$0xff]  ;;  %v6170_v61 = vpack.c.bf16 %v157_v54, %v154_v53 }
  0x7d   :  { %4557 = vmatprep.subr.bf16.mxu0 %v6117_v27  ;;  %3896 = vmatprep.mubr.msk.f32.mxu1 %vm194_vm1, %v169_v24  ;;  %v6164_v59 = vpack.c.bf16 %v150_v52, %v147_v51  ;;  %v153_v62 = vld [vmem:[#allocation6 + $0x120] sm:$0xff]  ;;  %v156_v63 = vld [vmem:[#allocation6 + $0x138] sm:$0xff]  ;;  %v163_v2 = vld [vmem:[#allocation6 + $0x170] sm:$0xff]  ;;  %v6174_v3 = vpack.c.bf16 %v140_v57, %v137_v56  ;;  %v178_v57 = vsub.s32 0, %v6257_v30 }
  0x7e   :  { %4579 = vmatprep.subr.bf16.mxu1 %v5939_v34  ;;  %3897 = vmatmul.mubr.msk.f32.gmra.mrb[2].mxu1 %vm194_vm1, %v170_v36  ;;  %v160_v1 = vld [vmem:[#allocation6 + $0x158] sm:$0xff]  ;;  %v143_v4 = vld [vmem:[#allocation6 + $0xd0] sm:$0xff]  ;;  %v146_v5 = vld [vmem:[#allocation6 + $0xe8] sm:$0xff]  ;;  %v6181_v6 = vpack.c.bf16 %v156_v63, %v153_v62  ;;  %v182_v63 = vsub.s32 1, %v6257_v30 }
  0x7f   :  { %3520 = vmatmul.mubr.msk.f32.gmra.mrb[6].mxu0 %vm194_vm1, %v170_v36  ;;  %4581 = vmatpush3.bf16.msra.mxu1 %v6137_v45  ;;  %v174_v7 = vld [vmem:[%s7095_s0 + $0x38] sm:$0xff]  ;;  %v6187_v10 = vpack.c.bf16 %v163_v2, %v160_v1  ;;  %v6191_v14 = vpack.c.bf16 %v146_v5, %v143_v4  ;;  %v149_v15 = vld [vmem:[#allocation6 + $0x100] sm:$0xff]  ;;  %v152_v16 = vld [vmem:[#allocation6 + $0x118] sm:$0xff] }
  0x80   :  { %4559 = vmatpush1.bf16.msra.mxu0 %v6130_v37  ;;  %314 = vmatprep.mubr.f32.mxu0 %v5938_v0  ;;  %v159_v11 = vld [vmem:[#allocation6 + $0x150] sm:$0xff]  ;;  %v162_v13 = vld [vmem:[#allocation6 + $0x168] sm:$0xff]  ;;  %v6203_v20 = vpack.c.bf16 %v152_v16, %v149_v15  ;;  %v161_v24 = vld [vmem:[#allocation6 + $0x160] sm:$0xff] }
  0x81   :  { %4561 = vmatprep.subr.bf16.mxu0 %v6133_v39  ;;  %3899 = vmatprep.mubr.msk.f32.mxu1 %vm194_vm1, %v171_v48  ;;  %v6199_v17 = vpack.c.bf16 %v162_v13, %v159_v11  ;;  %v155_v21 = vld [vmem:[#allocation6 + $0x130] sm:$0xff]  ;;  %v158_v22 = vld [vmem:[#allocation6 + $0x148] sm:$0xff]  ;;  %v164_v26 = vld [vmem:[#allocation6 + $0x178] sm:$0xff] }
  0x82   :  { %4582 = vmatprep.subr.bf16.mxu1 %v5939_v34  ;;  %3900 = vmatmul.mubr.msk.f32.gmra.mrb[4].mxu1 %vm194_vm1, %v172_v58  ;;  %v6211_v23 = vpack.c.bf16 %v158_v22, %v155_v21  ;;  %v6219_v28 = vpack.c.bf16 %v164_v26, %v161_v24  ;;  %v165_v32 = vld [vmem:[#allocation8] sm:$0x7]  ;;  %v6291_v21 = vld [vmem:[%s7099_s4] ss:$0 sm:$0xff] }
  0x83   :  { %3521 = vmatmul.mubr.msk.f32.gmra.mrb[8].mxu0 %vm194_vm1, %v171_v48  ;;  %4584 = vmatpush3.bf16.msra.mxu1 %v6154_v55  ;;  %v187_v33 = vrot.slane %v165_v32, %v186_v31  ;;  %v6285_v4 = vrot.slane %v165_v32, %v182_v63 }
  0x84   :  { %4563 = vmatpush1.bf16.msra.mxu0 %v6147_v49  ;;  %320 = vmatprep.mubr.f32.mxu0 %v5938_v0 }
  0x85   :  { %4565 = vmatprep.subr.bf16.mxu0 %v6150_v50  ;;  %3902 = vmatprep.mubr.msk.f32.mxu1 %vm194_vm1, %v173_v60 }
  0x86   :  { %4585 = vmatprep.subr.bf16.mxu1 %v5939_v34  ;;  %3903 = vmatmul.mubr.msk.f32.gmra.mrb[6].mxu1 %vm194_vm1, %v174_v7 }
  0x87   :  { %3522 = vmatmul.mubr.msk.f32.gmra.mrb[10].mxu0 %vm194_vm1, %v172_v58  ;;  %4587 = vmatpush3.bf16.msra.mxu1 %v6174_v3  ;;  %v6279_v58 = vrot.slane %v165_v32, %v178_v57 }
  0x88   :  { %4567 = vmatpush1.bf16.msra.mxu0 %v6164_v59  ;;  %326 = vmatprep.mubr.f32.mxu0 %v5938_v0 }
  0x89   :  { %4569 = vmatprep.subr.bf16.mxu0 %v6170_v61  ;;  %3937 = vmatprep.mubr.msk.f32.mxu1 %vm5940_vm2, %v5938_v0 }
  0x8a   :  { %4588 = vmatprep.subr.bf16.mxu1 %v5939_v34 }
  0x8b   :  { %3523 = vmatmul.mubr.msk.f32.gmra.mrb[12].mxu0 %vm194_vm1, %v173_v60  ;;  %4590 = vmatpush3.bf16.msra.mxu1 %v6191_v14 }
  0x8c   :  { %4571 = vmatpush1.bf16.msra.mxu0 %v6181_v6  ;;  %332 = vmatprep.mubr.f32.mxu0 %v5938_v0 }
  0x8d   :  { %4573 = vmatprep.subr.bf16.mxu0 %v6187_v10  ;;  %4591 = vmatprep.subr.bf16.mxu1 %v5939_v34 }
  0x8f   :  { %3524 = vmatmul.mubr.msk.f32.gmra.mrb[14].mxu0 %vm194_vm1, %v174_v7  ;;  %4593 = vmatpush3.bf16.msra.mxu1 %v6203_v20 }
  0x90   :  { %4575 = vmatpush1.bf16.msra.mxu0 %v6199_v17  ;;  %508 = vmatprep.mubr.f32.mxu0 %v5938_v0 }
  0x91   :  { %4601 = vmatprep.subr.bf16.mxu0 %v6088_v8  ;;  %4594 = vmatprep.subr.bf16.mxu1 %v5939_v34 }
  0x93   :  { %509 = vmatmul.mubr.f32.vlgmr.msra.gmra.mrb[0].mxu0 %v5938_v0  ;;  %4596 = vmatpush3.bf16.msra.mxu1 %v6211_v23 }
  0x94   :  { %4603 = vmatpush1.bf16.msra.mxu0 %v6090_v9  ;;  %677 = vmatprep.mubr.f32.mxu0 %v5938_v0 }
  0x95   :  { %4605 = vmatprep.subr.bf16.mxu0 %v6093_v12  ;;  %4597 = vmatprep.subr.bf16.mxu1 %v5939_v34 }
  0x97   :  { %4599 = vmatpush3.bf16.msra.mxu1 %v6219_v28 }
  0x98   :  { %4607 = vmatpush1.bf16.msra.mxu0 %v6103_v18  ;;  %4632 = vmatprep.subr.bf16.mxu1 %v5939_v34 }
  0x99   :  { %4609 = vmatprep.subr.bf16.mxu0 %v6106_v19 }
  0x9a   :  { %3938 = vmatmul.mubr.f32.vlgmr.msra.gmra.mrb[8].mxu1 %v5938_v0 }
  0x9b   :  { %4634 = vmatpush3.bf16.msra.mxu1 %v6123_v35  ;;  %3972 = vmatprep.mubr.msk.f32.mxu1 %vm5940_vm2, %v5938_v0 }
  0x9c   :  { %4611 = vmatpush1.bf16.msra.mxu0 %v6114_v25  ;;  %4635 = vmatprep.subr.bf16.mxu1 %v5939_v34 }
  0x9d   :  { %4613 = vmatprep.subr.bf16.mxu0 %v6117_v27 }
  0x9f   :  { %4637 = vmatpush3.bf16.msra.mxu1 %v6137_v45 }
  0xa0   :  { %4615 = vmatpush1.bf16.msra.mxu0 %v6130_v37  ;;  %4638 = vmatprep.subr.bf16.mxu1 %v5939_v34 }
  0xa1   :  { %4617 = vmatprep.subr.bf16.mxu0 %v6133_v39 }
  0xa3   :  { %4640 = vmatpush3.bf16.msra.mxu1 %v6154_v55 }
  0xa4   :  { %4619 = vmatpush1.bf16.msra.mxu0 %v6147_v49  ;;  %4641 = vmatprep.subr.bf16.mxu1 %v5939_v34 }
  0xa5   :  { %4621 = vmatprep.subr.bf16.mxu0 %v6150_v50 }
  0xa7   :  { %4643 = vmatpush3.bf16.msra.mxu1 %v6174_v3 }
  0xa8   :  { %4623 = vmatpush1.bf16.msra.mxu0 %v6164_v59  ;;  %4644 = vmatprep.subr.bf16.mxu1 %v5939_v34 }
  0xa9   :  { %4625 = vmatprep.subr.bf16.mxu0 %v6170_v61 }
  0xab   :  { %4646 = vmatpush3.bf16.msra.mxu1 %v6191_v14 }
  0xac   :  { %4627 = vmatpush1.bf16.msra.mxu0 %v6181_v6  ;;  %4647 = vmatprep.subr.bf16.mxu1 %v5939_v34 }
  0xad   :  { %4629 = vmatprep.subr.bf16.mxu0 %v6187_v10 }
  0xaf   :  { %4649 = vmatpush3.bf16.msra.mxu1 %v6203_v20 }
  0xb0   :  { %4631 = vmatpush1.bf16.msra.mxu0 %v6199_v17  ;;  %4650 = vmatprep.subr.bf16.mxu1 %v5939_v34 }
  0xb1   :  { %4657 = vmatprep.subr.bf16.mxu0 %v6088_v8 }
  0xb3   :  { %4652 = vmatpush3.bf16.msra.mxu1 %v6211_v23 }
  0xb4   :  { %4653 = vmatprep.subr.bf16.mxu1 %v5939_v34 }
  0xb7   :  { %4655 = vmatpush3.bf16.msra.mxu1 %v6219_v28 }
  0xb8   :  { %4688 = vmatprep.subr.bf16.mxu1 %v5939_v34 }
 0x14d   :  { %v3895_v36 = vpop.f32.mrb[0].mxu1 }
 0x14e   :  { %v6262_v38 = vadd.f32 %v3895_v36, %v187_v33  ;;  %v405_v40 = vpop.f32.mrb[1].mxu1 }
 0x14f   :  { %v406_v29 = vadd.f32 %v405_v40, %v187_v33 }
 0x151   :  { %v3898_v41 = vpop.f32.mrb[2].mxu1 }
 0x152   :  { %v6264_v42 = vadd.f32 %v3898_v41, %v187_v33  ;;  %v415_v43 = vpop.f32.mrb[3].mxu1 }
 0x153   :  { %v6266_v44 = vadd.f32 %v415_v43, %v187_v33 }
 0x155   :  { %v3901_v46 = vpop.f32.mrb[4].mxu1 }
 0x156   :  { %v6268_v47 = vadd.f32 %v3901_v46, %v187_v33  ;;  %v425_v48 = vpop.f32.mrb[5].mxu1 }
 0x157   :  { %v6270_v51 = vadd.f32 %v425_v48, %v187_v33 }
 0x159   :  { %v3904_v52 = vpop.f32.mrb[6].mxu1 }
 0x15a   :  { %v6272_v53 = vadd.f32 %v3904_v52, %v187_v33  ;;  %v435_v54 = vpop.f32.mrb[7].mxu1 }
 0x15b   :  { %v6274_v56 = vadd.f32 %v435_v54, %v187_v33 }
 0x166   :  { %v510_v60 = vpop.f32.mrb[0].mxu0 }
 0x167   :  { %v5528_v62 = vadd.f32 %v510_v60, %v6279_v58  ;;  %v512_v1 = vpop.f32.mrb[1].mxu0 }
 0x168   :  { %v5529_v5 = vadd.f32 %v512_v1, %v6285_v4 }
 0x169   :  { %v3534_v2 = vmul.f32 -1.442695, %v5528_v62 }
 0x16a   :  { %v3535_v13 = vmul.f32 -1.442695, %v5529_v5 }
 0x16b   :  { %5605 = vpow2.f32 %v3534_v2 }
 0x16c   :  { %5607 = vpow2.f32 %v3535_v13 }
 0x16d   :  { %v581_v7 = vpop.f32.mrb[8].mxu1 }
 0x16e   :  { %v3939_v11 = vpop.f32.mrb[9].mxu1  ;;  %v605_v22 = vadd.f32 %v6291_v21, %v581_v7 }
 0x175   :  { %v5606_v15 = vpop.eup %5605 }
 0x176   :  { %v589_v16 = vadd.f32 1.0, %v5606_v15  ;;  %v5608_v24 = vpop.eup %5607 }
 0x177   :  { %v596_v36 = vadd.f32 1.0, %v5608_v24 }
 0x178   :  { %5609 = vrcp.f32 %v589_v16 }
 0x182   :  { %v5610_v26 = vpop.eup %5609 }
 0x183   :  { %v606_v32 = vmul.f32 %v5610_v26, %v605_v22 }
 0x185   :  { %v607_v41 = vadd.f32 %v606_v32, %v406_v29 }
 0x187   :  { %5611 = vtanh.f32 %v607_v41 }
 0x188   :  { %5613 = vrcp.f32 %v596_v36 }
 0x191   :  { %v5612_v43 = vpop.eup %5611 }
 0x192   :  { %v609_v46 = vsub.f32 0.0, %v5612_v43  ;;  %v5614_v48 = vpop.eup %5613 }
 0x194   :  { %v610_v52 = vmul.f32 %v5614_v48, %v609_v46 }
 0x196   :  { %v6294_v54 = vadd.f32 %v5612_v43, %v610_v52 }
 0x198   :  { %678 = vmatmul.mubr.f32.vlgmr.msra.gmra.mrb[2].mxu0 %v6294_v54  ;;  %3973 = vmatmul.mubr.f32.vlgmr.msra.gmra.mrb[10].mxu1 %v6294_v54 }
 0x199   :  { %4659 = vmatpush1.bf16.msra.mxu0 %v6090_v9  ;;  %4690 = vmatpush3.bf16.msra.mxu1 %v6123_v35 }
 0x19a   :  { %4661 = vmatprep.subr.bf16.mxu0 %v6093_v12  ;;  %4691 = vmatprep.subr.bf16.mxu1 %v5939_v34 }
 0x19b   :  { %841 = vmatprep.mubr.f32.mxu0 %v5938_v0  ;;  %4007 = vmatprep.mubr.msk.f32.mxu1 %vm5940_vm2, %v5938_v0 }
 0x19d   :  { %4663 = vmatpush1.bf16.msra.mxu0 %v6103_v18  ;;  %4693 = vmatpush3.bf16.msra.mxu1 %v6137_v45 }
 0x19e   :  { %4665 = vmatprep.subr.bf16.mxu0 %v6106_v19  ;;  %4694 = vmatprep.subr.bf16.mxu1 %v5939_v34 }
 0x1a1   :  { %4667 = vmatpush1.bf16.msra.mxu0 %v6114_v25  ;;  %4696 = vmatpush3.bf16.msra.mxu1 %v6154_v55 }
 0x1a2   :  { %4669 = vmatprep.subr.bf16.mxu0 %v6117_v27  ;;  %4697 = vmatprep.subr.bf16.mxu1 %v5939_v34 }
 0x1a5   :  { %4671 = vmatpush1.bf16.msra.mxu0 %v6130_v37  ;;  %4699 = vmatpush3.bf16.msra.mxu1 %v6174_v3 }
 0x1a6   :  { %4673 = vmatprep.subr.bf16.mxu0 %v6133_v39  ;;  %4700 = vmatprep.subr.bf16.mxu1 %v5939_v34 }
 0x1a9   :  { %4675 = vmatpush1.bf16.msra.mxu0 %v6147_v49  ;;  %4702 = vmatpush3.bf16.msra.mxu1 %v6191_v14 }
 0x1aa   :  { %4677 = vmatprep.subr.bf16.mxu0 %v6150_v50  ;;  %4703 = vmatprep.subr.bf16.mxu1 %v5939_v34 }
 0x1ad   :  { %4679 = vmatpush1.bf16.msra.mxu0 %v6164_v59  ;;  %4705 = vmatpush3.bf16.msra.mxu1 %v6203_v20 }
 0x1ae   :  { %4681 = vmatprep.subr.bf16.mxu0 %v6170_v61  ;;  %4706 = vmatprep.subr.bf16.mxu1 %v5939_v34 }
 0x1b1   :  { %4683 = vmatpush1.bf16.msra.mxu0 %v6181_v6  ;;  %4708 = vmatpush3.bf16.msra.mxu1 %v6211_v23 }
 0x1b2   :  { %4685 = vmatprep.subr.bf16.mxu0 %v6187_v10  ;;  %4709 = vmatprep.subr.bf16.mxu1 %v5939_v34 }
 0x1b5   :  { %4687 = vmatpush1.bf16.msra.mxu0 %v6199_v17  ;;  %4711 = vmatpush3.bf16.msra.mxu1 %v6219_v28 }
 0x1b6   :  { %4713 = vmatprep.subr.bf16.mxu0 %v6088_v8  ;;  %4744 = vmatprep.subr.bf16.mxu1 %v5939_v34 }
 0x26b   :  { %v679_v33 = vpop.f32.mrb[2].mxu0  ;;  %v750_v40 = vpop.f32.mrb[10].mxu1 }
 0x26c   :  { %v5530_v60 = vadd.f32 %v679_v33, %v6279_v58  ;;  %v681_v62 = vpop.f32.mrb[3].mxu0  ;;  %v3974_v1 = vpop.f32.mrb[11].mxu1  ;;  %v768_v16 = vadd.f32 %v6291_v21, %v750_v40 }
 0x26d   :  { %v5531_v5 = vadd.f32 %v681_v62, %v6285_v4 }
 0x26e   :  { %v3537_v2 = vmul.f32 -1.442695, %v5530_v60 }
 0x26f   :  { %v3538_v7 = vmul.f32 -1.442695, %v5531_v5 }
 0x270   :  { %5615 = vpow2.f32 %v3537_v2 }
 0x271   :  { %5617 = vpow2.f32 %v3538_v7 }
 0x27a   :  { %v5616_v11 = vpop.eup %5615 }
 0x27b   :  { %v758_v13 = vadd.f32 1.0, %v5616_v11  ;;  %v5618_v15 = vpop.eup %5617 }
 0x27c   :  { %v765_v29 = vadd.f32 1.0, %v5618_v15 }
 0x27d   :  { %5619 = vrcp.f32 %v758_v13 }
 0x287   :  { %v5620_v22 = vpop.eup %5619 }
 0x288   :  { %v769_v24 = vmul.f32 %v5620_v22, %v768_v16 }
 0x28a   :  { %v770_v26 = vadd.f32 %v769_v24, %v6262_v38 }
 0x28c   :  { %5621 = vtanh.f32 %v770_v26 }
 0x28d   :  { %5623 = vrcp.f32 %v765_v29 }
 0x296   :  { %v5622_v32 = vpop.eup %5621 }
 0x297   :  { %v772_v36 = vsub.f32 %v6294_v54, %v5622_v32  ;;  %v5624_v41 = vpop.eup %5623 }
 0x299   :  { %v773_v43 = vmul.f32 %v5624_v41, %v772_v36 }
 0x29b   :  { %v6338_v46 = vadd.f32 %v5622_v32, %v773_v43 }
 0x29d   :  { %842 = vmatmul.mubr.f32.vlgmr.msra.gmra.mrb[4].mxu0 %v6338_v46  ;;  %4008 = vmatmul.mubr.f32.vlgmr.msra.gmra.mrb[12].mxu1 %v6338_v46 }
 0x29e   :  { %4715 = vmatpush1.bf16.msra.mxu0 %v6090_v9  ;;  %4746 = vmatpush3.bf16.msra.mxu1 %v6123_v35 }
 0x29f   :  { %4717 = vmatprep.subr.bf16.mxu0 %v6093_v12  ;;  %4747 = vmatprep.subr.bf16.mxu1 %v5939_v34 }
 0x2a0   :  { %1005 = vmatprep.mubr.f32.mxu0 %v5938_v0  ;;  %4042 = vmatprep.mubr.msk.f32.mxu1 %vm5940_vm2, %v5938_v0 }
 0x2a2   :  { %4719 = vmatpush1.bf16.msra.mxu0 %v6103_v18  ;;  %4749 = vmatpush3.bf16.msra.mxu1 %v6137_v45 }
 0x2a3   :  { %4721 = vmatprep.subr.bf16.mxu0 %v6106_v19  ;;  %4750 = vmatprep.subr.bf16.mxu1 %v5939_v34 }
 0x2a6   :  { %4723 = vmatpush1.bf16.msra.mxu0 %v6114_v25  ;;  %4752 = vmatpush3.bf16.msra.mxu1 %v6154_v55 }
 0x2a7   :  { %4725 = vmatprep.subr.bf16.mxu0 %v6117_v27  ;;  %4753 = vmatprep.subr.bf16.mxu1 %v5939_v34 }
 0x2aa   :  { %4727 = vmatpush1.bf16.msra.mxu0 %v6130_v37  ;;  %4755 = vmatpush3.bf16.msra.mxu1 %v6174_v3 }
 0x2ab   :  { %4729 = vmatprep.subr.bf16.mxu0 %v6133_v39  ;;  %4756 = vmatprep.subr.bf16.mxu1 %v5939_v34 }
 0x2ae   :  { %4731 = vmatpush1.bf16.msra.mxu0 %v6147_v49  ;;  %4758 = vmatpush3.bf16.msra.mxu1 %v6191_v14 }
 0x2af   :  { %4733 = vmatprep.subr.bf16.mxu0 %v6150_v50  ;;  %4759 = vmatprep.subr.bf16.mxu1 %v5939_v34 }
 0x2b2   :  { %4735 = vmatpush1.bf16.msra.mxu0 %v6164_v59  ;;  %4761 = vmatpush3.bf16.msra.mxu1 %v6203_v20 }
 0x2b3   :  { %4737 = vmatprep.subr.bf16.mxu0 %v6170_v61  ;;  %4762 = vmatprep.subr.bf16.mxu1 %v5939_v34 }
 0x2b6   :  { %4739 = vmatpush1.bf16.msra.mxu0 %v6181_v6  ;;  %4764 = vmatpush3.bf16.msra.mxu1 %v6211_v23 }
 0x2b7   :  { %4741 = vmatprep.subr.bf16.mxu0 %v6187_v10  ;;  %4765 = vmatprep.subr.bf16.mxu1 %v5939_v34 }
 0x2ba   :  { %4743 = vmatpush1.bf16.msra.mxu0 %v6199_v17  ;;  %4767 = vmatpush3.bf16.msra.mxu1 %v6219_v28 }
 0x2bb   :  { %4769 = vmatprep.subr.bf16.mxu0 %v6088_v8  ;;  %4800 = vmatprep.subr.bf16.mxu1 %v5939_v34 }
 0x370   :  { %v843_v38 = vpop.f32.mrb[4].mxu0  ;;  %v914_v48 = vpop.f32.mrb[12].mxu1 }
 0x371   :  { %v5532_v52 = vadd.f32 %v843_v38, %v6279_v58  ;;  %v845_v33 = vpop.f32.mrb[5].mxu0  ;;  %v4009_v40 = vpop.f32.mrb[13].mxu1  ;;  %v932_v11 = vadd.f32 %v6291_v21, %v914_v48 }
 0x372   :  { %v5533_v62 = vadd.f32 %v845_v33, %v6285_v4 }
 0x373   :  { %v3539_v60 = vmul.f32 -1.442695, %v5532_v52 }
 0x374   :  { %v3540_v1 = vmul.f32 -1.442695, %v5533_v62 }
 0x375   :  { %5625 = vpow2.f32 %v3539_v60 }
 0x376   :  { %5627 = vpow2.f32 %v3540_v1 }
 0x37f   :  { %v5626_v2 = vpop.eup %5625 }
 0x380   :  { %v922_v5 = vadd.f32 1.0, %v5626_v2  ;;  %v5628_v7 = vpop.eup %5627 }
 0x381   :  { %v929_v22 = vadd.f32 1.0, %v5628_v7 }
 0x382   :  { %5629 = vrcp.f32 %v922_v5 }
 0x38c   :  { %v5630_v13 = vpop.eup %5629 }
 0x38d   :  { %v933_v15 = vmul.f32 %v5630_v13, %v932_v11 }
 0x38f   :  { %v934_v16 = vadd.f32 %v933_v15, %v6266_v44 }
 0x391   :  { %5631 = vtanh.f32 %v934_v16 }
 0x392   :  { %5633 = vrcp.f32 %v929_v22 }
 0x39b   :  { %v5632_v24 = vpop.eup %5631 }
 0x39c   :  { %v936_v26 = vsub.f32 %v6338_v46, %v5632_v24  ;;  %v5634_v29 = vpop.eup %5633 }
 0x39e   :  { %v937_v32 = vmul.f32 %v5634_v29, %v936_v26 }
 0x3a0   :  { %v6382_v36 = vadd.f32 %v5632_v24, %v937_v32 }
 0x3a2   :  { %1006 = vmatmul.mubr.f32.vlgmr.msra.gmra.mrb[6].mxu0 %v6382_v36  ;;  %4043 = vmatmul.mubr.f32.vlgmr.msra.gmra.mrb[14].mxu1 %v6382_v36 }
 0x3a3   :  { %4771 = vmatpush1.bf16.msra.mxu0 %v6090_v9  ;;  %4802 = vmatpush3.bf16.msra.mxu1 %v6123_v35 }
 0x3a4   :  { %4773 = vmatprep.subr.bf16.mxu0 %v6093_v12  ;;  %4803 = vmatprep.subr.bf16.mxu1 %v5939_v34 }
 0x3a5   :  { %1169 = vmatprep.mubr.f32.mxu0 %v5938_v0  ;;  %4077 = vmatprep.mubr.msk.f32.mxu1 %vm5940_vm2, %v5938_v0 }
 0x3a7   :  { %4775 = vmatpush1.bf16.msra.mxu0 %v6103_v18  ;;  %4805 = vmatpush3.bf16.msra.mxu1 %v6137_v45 }
 0x3a8   :  { %4777 = vmatprep.subr.bf16.mxu0 %v6106_v19  ;;  %4806 = vmatprep.subr.bf16.mxu1 %v5939_v34 }
 0x3ab   :  { %4779 = vmatpush1.bf16.msra.mxu0 %v6114_v25  ;;  %4808 = vmatpush3.bf16.msra.mxu1 %v6154_v55 }
 0x3ac   :  { %4781 = vmatprep.subr.bf16.mxu0 %v6117_v27  ;;  %4809 = vmatprep.subr.bf16.mxu1 %v5939_v34 }
 0x3af   :  { %4783 = vmatpush1.bf16.msra.mxu0 %v6130_v37  ;;  %4811 = vmatpush3.bf16.msra.mxu1 %v6174_v3 }
 0x3b0   :  { %4785 = vmatprep.subr.bf16.mxu0 %v6133_v39  ;;  %4812 = vmatprep.subr.bf16.mxu1 %v5939_v34 }
 0x3b3   :  { %4787 = vmatpush1.bf16.msra.mxu0 %v6147_v49  ;;  %4814 = vmatpush3.bf16.msra.mxu1 %v6191_v14 }
 0x3b4   :  { %4789 = vmatprep.subr.bf16.mxu0 %v6150_v50  ;;  %4815 = vmatprep.subr.bf16.mxu1 %v5939_v34 }
 0x3b7   :  { %4791 = vmatpush1.bf16.msra.mxu0 %v6164_v59  ;;  %4817 = vmatpush3.bf16.msra.mxu1 %v6203_v20 }
 0x3b8   :  { %4793 = vmatprep.subr.bf16.mxu0 %v6170_v61  ;;  %4818 = vmatprep.subr.bf16.mxu1 %v5939_v34 }
 0x3bb   :  { %4795 = vmatpush1.bf16.msra.mxu0 %v6181_v6  ;;  %4820 = vmatpush3.bf16.msra.mxu1 %v6211_v23 }
 0x3bc   :  { %4797 = vmatprep.subr.bf16.mxu0 %v6187_v10  ;;  %4821 = vmatprep.subr.bf16.mxu1 %v5939_v34 }
 0x3bf   :  { %4799 = vmatpush1.bf16.msra.mxu0 %v6199_v17  ;;  %4823 = vmatpush3.bf16.msra.mxu1 %v6219_v28 }
 0x3c0   :  { %4825 = vmatprep.subr.bf16.mxu0 %v6088_v8  ;;  %4856 = vmatprep.subr.bf16.mxu1 %v5939_v34 }
 0x475   :  { %v1007_v44 = vpop.f32.mrb[6].mxu0  ;;  %v1078_v41 = vpop.f32.mrb[14].mxu1 }
 0x476   :  { %v5534_v43 = vadd.f32 %v1007_v44, %v6279_v58  ;;  %v1009_v38 = vpop.f32.mrb[7].mxu0  ;;  %v4044_v48 = vpop.f32.mrb[15].mxu1  ;;  %v1096_v2 = vadd.f32 %v6291_v21, %v1078_v41 }
 0x477   :  { %v5535_v33 = vadd.f32 %v1009_v38, %v6285_v4 }
 0x478   :  { %v3541_v52 = vmul.f32 -1.442695, %v5534_v43 }
 0x479   :  { %v3542_v40 = vmul.f32 -1.442695, %v5535_v33 }
 0x47a   :  { %5635 = vpow2.f32 %v3541_v52 }
 0x47b   :  { %5637 = vpow2.f32 %v3542_v40 }
 0x484   :  { %v5636_v60 = vpop.eup %5635 }
 0x485   :  { %v1086_v62 = vadd.f32 1.0, %v5636_v60  ;;  %v5638_v1 = vpop.eup %5637 }
 0x486   :  { %v1093_v13 = vadd.f32 1.0, %v5638_v1 }
 0x487   :  { %5639 = vrcp.f32 %v1086_v62 }
 0x491   :  { %v5640_v5 = vpop.eup %5639 }
 0x492   :  { %v1097_v7 = vmul.f32 %v5640_v5, %v1096_v2 }
 0x494   :  { %v1098_v11 = vadd.f32 %v1097_v7, %v6264_v42 }
 0x496   :  { %5641 = vtanh.f32 %v1098_v11 }
 0x497   :  { %5643 = vrcp.f32 %v1093_v13 }
 0x4a0   :  { %v5642_v15 = vpop.eup %5641 }
 0x4a1   :  { %v1100_v16 = vsub.f32 %v6382_v36, %v5642_v15  ;;  %v5644_v22 = vpop.eup %5643 }
 0x4a3   :  { %v1101_v24 = vmul.f32 %v5644_v22, %v1100_v16 }
 0x4a5   :  { %v6426_v26 = vadd.f32 %v5642_v15, %v1101_v24 }
 0x4a7   :  { %1170 = vmatmul.mubr.f32.vlgmr.msra.gmra.mrb[8].mxu0 %v6426_v26  ;;  %4078 = vmatmul.mubr.f32.vlgmr.msra.gmra.mrb[16].mxu1 %v6426_v26 }
 0x4a8   :  { %4827 = vmatpush1.bf16.msra.mxu0 %v6090_v9  ;;  %4858 = vmatpush3.bf16.msra.mxu1 %v6123_v35 }
 0x4a9   :  { %4829 = vmatprep.subr.bf16.mxu0 %v6093_v12  ;;  %4859 = vmatprep.subr.bf16.mxu1 %v5939_v34 }
 0x4aa   :  { %1333 = vmatprep.mubr.f32.mxu0 %v5938_v0  ;;  %4112 = vmatprep.mubr.msk.f32.mxu1 %vm5940_vm2, %v5938_v0 }
 0x4ac   :  { %4831 = vmatpush1.bf16.msra.mxu0 %v6103_v18  ;;  %4861 = vmatpush3.bf16.msra.mxu1 %v6137_v45 }
 0x4ad   :  { %4833 = vmatprep.subr.bf16.mxu0 %v6106_v19  ;;  %4862 = vmatprep.subr.bf16.mxu1 %v5939_v34 }
 0x4b0   :  { %4835 = vmatpush1.bf16.msra.mxu0 %v6114_v25  ;;  %4864 = vmatpush3.bf16.msra.mxu1 %v6154_v55 }
 0x4b1   :  { %4837 = vmatprep.subr.bf16.mxu0 %v6117_v27  ;;  %4865 = vmatprep.subr.bf16.mxu1 %v5939_v34 }
 0x4b4   :  { %4839 = vmatpush1.bf16.msra.mxu0 %v6130_v37  ;;  %4867 = vmatpush3.bf16.msra.mxu1 %v6174_v3 }
 0x4b5   :  { %4841 = vmatprep.subr.bf16.mxu0 %v6133_v39  ;;  %4868 = vmatprep.subr.bf16.mxu1 %v5939_v34 }
 0x4b8   :  { %4843 = vmatpush1.bf16.msra.mxu0 %v6147_v49  ;;  %4870 = vmatpush3.bf16.msra.mxu1 %v6191_v14 }
 0x4b9   :  { %4845 = vmatprep.subr.bf16.mxu0 %v6150_v50  ;;  %4871 = vmatprep.subr.bf16.mxu1 %v5939_v34 }
 0x4bc   :  { %4847 = vmatpush1.bf16.msra.mxu0 %v6164_v59  ;;  %4873 = vmatpush3.bf16.msra.mxu1 %v6203_v20 }
 0x4bd   :  { %4849 = vmatprep.subr.bf16.mxu0 %v6170_v61  ;;  %4874 = vmatprep.subr.bf16.mxu1 %v5939_v34 }
 0x4c0   :  { %4851 = vmatpush1.bf16.msra.mxu0 %v6181_v6  ;;  %4876 = vmatpush3.bf16.msra.mxu1 %v6211_v23 }
 0x4c1   :  { %4853 = vmatprep.subr.bf16.mxu0 %v6187_v10  ;;  %4877 = vmatprep.subr.bf16.mxu1 %v5939_v34 }
 0x4c4   :  { %4855 = vmatpush1.bf16.msra.mxu0 %v6199_v17  ;;  %4879 = vmatpush3.bf16.msra.mxu1 %v6219_v28 }
 0x4c5   :  { %4881 = vmatprep.subr.bf16.mxu0 %v6088_v8  ;;  %4912 = vmatprep.subr.bf16.mxu1 %v5939_v34 }
 0x57a   :  { %v1171_v42 = vpop.f32.mrb[8].mxu0  ;;  %v1242_v29 = vpop.f32.mrb[16].mxu1 }
 0x57b   :  { %v5536_v32 = vadd.f32 %v1171_v42, %v6279_v58  ;;  %v1173_v44 = vpop.f32.mrb[9].mxu0  ;;  %v4079_v41 = vpop.f32.mrb[17].mxu1  ;;  %v1260_v60 = vadd.f32 %v6291_v21, %v1242_v29 }
 0x57c   :  { %v5537_v38 = vadd.f32 %v1173_v44, %v6285_v4 }
 0x57d   :  { %v3543_v43 = vmul.f32 -1.442695, %v5536_v32 }
 0x57e   :  { %v3544_v48 = vmul.f32 -1.442695, %v5537_v38 }
 0x57f   :  { %5645 = vpow2.f32 %v3543_v43 }
 0x580   :  { %5647 = vpow2.f32 %v3544_v48 }
 0x589   :  { %v5646_v52 = vpop.eup %5645 }
 0x58a   :  { %v1250_v33 = vadd.f32 1.0, %v5646_v52  ;;  %v5648_v40 = vpop.eup %5647 }
 0x58b   :  { %v1257_v5 = vadd.f32 1.0, %v5648_v40 }
 0x58c   :  { %5649 = vrcp.f32 %v1250_v33 }
 0x596   :  { %v5650_v62 = vpop.eup %5649 }
 0x597   :  { %v1261_v1 = vmul.f32 %v5650_v62, %v1260_v60 }
 0x599   :  { %v1262_v2 = vadd.f32 %v1261_v1, %v6270_v51 }
 0x59b   :  { %5651 = vtanh.f32 %v1262_v2 }
 0x59c   :  { %5653 = vrcp.f32 %v1257_v5 }
 0x5a5   :  { %v5652_v7 = vpop.eup %5651 }
 0x5a6   :  { %v1264_v11 = vsub.f32 %v6426_v26, %v5652_v7  ;;  %v5654_v13 = vpop.eup %5653 }
 0x5a8   :  { %v1265_v15 = vmul.f32 %v5654_v13, %v1264_v11  ;;  %v1761_v11 = vld [vmem:[#allocation9] sm:$0xff]  ;;  %v1764_v13 = vld [vmem:[#allocation9 + $0x18] sm:$0xff] }
 0x5aa   :  { %v6470_v16 = vadd.f32 %v5652_v7, %v1265_v15 }
 0x5ac   :  { %1334 = vmatmul.mubr.f32.vlgmr.msra.gmra.mrb[10].mxu0 %v6470_v16  ;;  %4113 = vmatmul.mubr.f32.vlgmr.msra.gmra.mrb[18].mxu1 %v6470_v16 }
 0x5ad   :  { %4883 = vmatpush1.bf16.msra.mxu0 %v6090_v9  ;;  %4914 = vmatpush3.bf16.msra.mxu1 %v6123_v35 }
 0x5ae   :  { %4885 = vmatprep.subr.bf16.mxu0 %v6093_v12  ;;  %4915 = vmatprep.subr.bf16.mxu1 %v5939_v34 }
 0x5af   :  { %1497 = vmatprep.mubr.f32.mxu0 %v5938_v0  ;;  %4147 = vmatprep.mubr.msk.f32.mxu1 %vm5940_vm2, %v5938_v0 }
 0x5b1   :  { %4887 = vmatpush1.bf16.msra.mxu0 %v6103_v18  ;;  %4917 = vmatpush3.bf16.msra.mxu1 %v6137_v45 }
 0x5b2   :  { %4889 = vmatprep.subr.bf16.mxu0 %v6106_v19  ;;  %4918 = vmatprep.subr.bf16.mxu1 %v5939_v34 }
 0x5b5   :  { %4891 = vmatpush1.bf16.msra.mxu0 %v6114_v25  ;;  %4920 = vmatpush3.bf16.msra.mxu1 %v6154_v55 }
 0x5b6   :  { %4893 = vmatprep.subr.bf16.mxu0 %v6117_v27  ;;  %4921 = vmatprep.subr.bf16.mxu1 %v5939_v34 }
 0x5b9   :  { %4895 = vmatpush1.bf16.msra.mxu0 %v6130_v37  ;;  %4923 = vmatpush3.bf16.msra.mxu1 %v6174_v3 }
 0x5ba   :  { %4897 = vmatprep.subr.bf16.mxu0 %v6133_v39  ;;  %4924 = vmatprep.subr.bf16.mxu1 %v5939_v34 }
 0x5bd   :  { %4899 = vmatpush1.bf16.msra.mxu0 %v6147_v49  ;;  %4926 = vmatpush3.bf16.msra.mxu1 %v6191_v14 }
 0x5be   :  { %4901 = vmatprep.subr.bf16.mxu0 %v6150_v50  ;;  %4927 = vmatprep.subr.bf16.mxu1 %v5939_v34 }
 0x5c1   :  { %4903 = vmatpush1.bf16.msra.mxu0 %v6164_v59  ;;  %4929 = vmatpush3.bf16.msra.mxu1 %v6203_v20 }
 0x5c2   :  { %4905 = vmatprep.subr.bf16.mxu0 %v6170_v61  ;;  %4930 = vmatprep.subr.bf16.mxu1 %v5939_v34 }
 0x5c5   :  { %4907 = vmatpush1.bf16.msra.mxu0 %v6181_v6  ;;  %4932 = vmatpush3.bf16.msra.mxu1 %v6211_v23 }
 0x5c6   :  { %4909 = vmatprep.subr.bf16.mxu0 %v6187_v10  ;;  %4933 = vmatprep.subr.bf16.mxu1 %v5939_v34 }
 0x5c9   :  { %4911 = vmatpush1.bf16.msra.mxu0 %v6199_v17  ;;  %4935 = vmatpush3.bf16.msra.mxu1 %v6219_v28 }
 0x5ca   :  { %4937 = vmatprep.subr.bf16.mxu0 %v6088_v8  ;;  %4968 = vmatprep.subr.bf16.mxu1 %v5939_v34 }
 0x67f   :  { %v1335_v51 = vpop.f32.mrb[10].mxu0  ;;  %v1406_v22 = vpop.f32.mrb[18].mxu1 }
 0x680   :  { %v5538_v24 = vadd.f32 %v1335_v51, %v6279_v58  ;;  %v1337_v42 = vpop.f32.mrb[11].mxu0  ;;  %v4114_v29 = vpop.f32.mrb[19].mxu1  ;;  %v1424_v8 = vadd.f32 %v6291_v21, %v1406_v22  ;;  %v1768_v51 = vld [vmem:[#allocation9 + $0x38] sm:$0xff]  ;;  %v1771_v22 = vld [vmem:[#allocation9 + $0x50] sm:$0xff] }
 0x681   :  { %v5539_v44 = vadd.f32 %v1337_v42, %v6285_v4  ;;  %v1769_v42 = vld [vmem:[#allocation9 + $0x40] sm:$0xff]  ;;  %v1772_v29 = vld [vmem:[#allocation9 + $0x58] sm:$0xff] }
 0x682   :  { %v3545_v32 = vmul.f32 -1.442695, %v5538_v24 }
 0x683   :  { %v3546_v41 = vmul.f32 -1.442695, %v5539_v44  ;;  %v4996_v44 = vpack.c.bf16 %v1771_v22, %v1768_v51  ;;  %v1799_v51 = vld [vmem:[#allocation9 + $0x130] sm:$0xff]  ;;  %v1802_v22 = vld [vmem:[#allocation9 + $0x148] sm:$0xff] }
 0x684   :  { %5655 = vpow2.f32 %v3545_v32  ;;  %v4994_v32 = vpack.c.bf16 %v1764_v13, %v1761_v11  ;;  %v1794_v11 = vld [vmem:[#allocation9 + $0x108] sm:$0xff] }
 0x685   :  { %5657 = vpow2.f32 %v3546_v41  ;;  %v1767_v41 = vld [vmem:[#allocation9 + $0x30] sm:$0xff]  ;;  %v1798_v13 = vld [vmem:[#allocation9 + $0x128] sm:$0xff] }
 0x68e   :  { %v5656_v43 = vpop.eup %5655 }
 0x68f   :  { %v1414_v38 = vadd.f32 1.0, %v5656_v43  ;;  %v5658_v48 = vpop.eup %5657  ;;  %v1774_v43 = vld [vmem:[#allocation9 + $0x68] sm:$0xff] }
 0x690   :  { %v1421_v60 = vadd.f32 1.0, %v5658_v48  ;;  %v1777_v48 = vld [vmem:[#allocation9 + $0x80] sm:$0xff] }
 0x691   :  { %5659 = vrcp.f32 %v1414_v38  ;;  %v5028_v38 = vpack.c.bf16 %v1772_v29, %v1769_v42  ;;  %v5048_v29 = vpack.c.bf16 %v1802_v22, %v1799_v51  ;;  %v1849_v51 = vld [vmem:[#allocation11 + $0x140] sm:$0xff] }
 0x692   :  { %v1845_v22 = vld [vmem:[#allocation11 + $0x120] sm:$0xff] }
 0x69b   :  { %v5660_v52 = vpop.eup %5659 }
 0x69c   :  { %v1425_v33 = vmul.f32 %v5660_v52, %v1424_v8  ;;  %v1775_v8 = vld [vmem:[#allocation9 + $0x70] sm:$0xff]  ;;  %v1778_v52 = vld [vmem:[#allocation9 + $0x88] sm:$0xff] }
 0x69e   :  { %v1426_v40 = vadd.f32 %v1425_v33, %v6268_v47 }
 0x6a0   :  { %5661 = vtanh.f32 %v1426_v40  ;;  %v5000_v40 = vpack.c.bf16 %v1777_v48, %v1774_v43  ;;  %v1805_v43 = vld [vmem:[#allocation9 + $0x160] sm:$0xff] }
 0x6a1   :  { %5663 = vrcp.f32 %v1421_v60  ;;  %v5032_v60 = vpack.c.bf16 %v1778_v52, %v1775_v8 }
 0x6aa   :  { %v5662_v62 = vpop.eup %5661 }
 0x6ab   :  { %v1428_v1 = vsub.f32 %v6470_v16, %v5662_v62  ;;  %v5664_v2 = vpop.eup %5663 }
 0x6ad   :  { %v1429_v5 = vmul.f32 %v5664_v2, %v1428_v1  ;;  %v1776_v1 = vld [vmem:[#allocation9 + $0x78] sm:$0xff] }
 0x6ae   :  { %v1780_v2 = vld [vmem:[#allocation9 + $0x98] sm:$0xff] }
 0x6af   :  { %v6514_v7 = vadd.f32 %v5662_v62, %v1429_v5  ;;  %v1773_v62 = vld [vmem:[#allocation9 + $0x60] sm:$0xff]  ;;  %v1783_v5 = vld [vmem:[#allocation9 + $0xb0] sm:$0xff] }
 0x6b1   :  { %1498 = vmatmul.mubr.f32.vlgmr.msra.gmra.mrb[12].mxu0 %v6514_v7  ;;  %4148 = vmatmul.mubr.f32.vlgmr.msra.gmra.mrb[20].mxu1 %v6514_v7 }
 0x6b2   :  { %4939 = vmatpush1.bf16.msra.mxu0 %v6090_v9  ;;  %4970 = vmatpush3.bf16.msra.mxu1 %v6123_v35  ;;  %v1762_v9 = vld [vmem:[#allocation9 + $0x8] sm:$0xff] }
 0x6b3   :  { %4941 = vmatprep.subr.bf16.mxu0 %v6093_v12  ;;  %4971 = vmatprep.subr.bf16.mxu1 %v5939_v34  ;;  %v1765_v12 = vld [vmem:[#allocation9 + $0x20] sm:$0xff] }
 0x6b4   :  { %1661 = vmatprep.mubr.f32.mxu0 %v5938_v0  ;;  %4182 = vmatprep.mubr.msk.f32.mxu1 %vm5940_vm2, %v5938_v0 }
 0x6b6   :  { %4943 = vmatpush1.bf16.msra.mxu0 %v6103_v18  ;;  %4973 = vmatpush3.bf16.msra.mxu1 %v6137_v45  ;;  %v1763_v18 = vld [vmem:[#allocation9 + $0x10] sm:$0xff] }
 0x6b7   :  { %4945 = vmatprep.subr.bf16.mxu0 %v6106_v19  ;;  %4974 = vmatprep.subr.bf16.mxu1 %v5939_v34  ;;  %v4992_v19 = vpack.c.bf16 %v1765_v12, %v1762_v9  ;;  %v1781_v9 = vld [vmem:[#allocation9 + $0xa0] sm:$0xff]  ;;  %v1784_v12 = vld [vmem:[#allocation9 + $0xb8] sm:$0xff] }
 0x6ba   :  { %4947 = vmatpush1.bf16.msra.mxu0 %v6114_v25  ;;  %4976 = vmatpush3.bf16.msra.mxu1 %v6154_v55  ;;  %v1766_v25 = vld [vmem:[#allocation9 + $0x28] sm:$0xff] }
 0x6bb   :  { %4949 = vmatprep.subr.bf16.mxu0 %v6117_v27  ;;  %4977 = vmatprep.subr.bf16.mxu1 %v5939_v34  ;;  %v5024_v27 = vpack.c.bf16 %v1766_v25, %v1763_v18  ;;  %v5002_v18 = vpack.c.bf16 %v1776_v1, %v1773_v62  ;;  %v5036_v25 = vpack.c.bf16 %v1784_v12, %v1781_v9  ;;  %v1809_v62 = vld [vmem:[#allocation11] sm:$0xff]  ;;  %v1818_v9 = vld [vmem:[#allocation11 + $0x48] sm:$0xff] }
 0x6be   :  { %4951 = vmatpush1.bf16.msra.mxu0 %v6130_v37  ;;  %4979 = vmatpush3.bf16.msra.mxu1 %v6174_v3 }
 0x6bf   :  { %4953 = vmatprep.subr.bf16.mxu0 %v6133_v39  ;;  %4980 = vmatprep.subr.bf16.mxu1 %v5939_v34 }
 0x6c2   :  { %4955 = vmatpush1.bf16.msra.mxu0 %v6147_v49  ;;  %4982 = vmatpush3.bf16.msra.mxu1 %v6191_v14 }
 0x6c3   :  { %4957 = vmatprep.subr.bf16.mxu0 %v6150_v50  ;;  %4983 = vmatprep.subr.bf16.mxu1 %v5939_v34 }
 0x6c6   :  { %4959 = vmatpush1.bf16.msra.mxu0 %v6164_v59  ;;  %4985 = vmatpush3.bf16.msra.mxu1 %v6203_v20 }
 0x6c7   :  { %4961 = vmatprep.subr.bf16.mxu0 %v6170_v61  ;;  %4986 = vmatprep.subr.bf16.mxu1 %v5939_v34 }
 0x6ca   :  { %4963 = vmatpush1.bf16.msra.mxu0 %v6181_v6  ;;  %4988 = vmatpush3.bf16.msra.mxu1 %v6211_v23 }
 0x6cb   :  { %4965 = vmatprep.subr.bf16.mxu0 %v6187_v10  ;;  %4989 = vmatprep.subr.bf16.mxu1 %v5939_v34 }
 0x6ce   :  { %4967 = vmatpush1.bf16.msra.mxu0 %v6199_v17  ;;  %4991 = vmatpush3.bf16.msra.mxu1 %v6219_v28 }
 0x6cf   :  { %4993 = vmatprep.subr.bf16.mxu0 %v4992_v19  ;;  %5025 = vmatprep.subr.bf16.mxu1 %v5024_v27  ;;  %v5004_v19 = vpack.c.bf16 %v1783_v5, %v1780_v2  ;;  %v1815_v5 = vld [vmem:[#allocation11 + $0x30] sm:$0xff] }
 0x6d0   :  { %v6591_v12 = vpack.c.bf16 %v1818_v9, %v1815_v5  ;;  %v1835_v5 = vld [vmem:[#allocation11 + $0xd0] sm:$0xff]  ;;  %v1838_v9 = vld [vmem:[#allocation11 + $0xe8] sm:$0xff] }
 0x784   :  { %v1499_v35 = vpop.f32.mrb[12].mxu0  ;;  %v1570_v37 = vpop.f32.mrb[20].mxu1 }
 0x785   :  { %v5540_v39 = vadd.f32 %v1499_v35, %v6279_v58  ;;  %v1501_v45 = vpop.f32.mrb[13].mxu0  ;;  %v4149_v49 = vpop.f32.mrb[21].mxu1  ;;  %v1588_v10 = vadd.f32 %v6291_v21, %v1570_v37  ;;  %v1782_v35 = vld [vmem:[#allocation9 + $0xa8] sm:$0xff] }
 0x786   :  { %v5541_v55 = vadd.f32 %v1501_v45, %v6285_v4  ;;  %v1786_v37 = vld [vmem:[#allocation9 + $0xc8] sm:$0xff]  ;;  %v1787_v45 = vld [vmem:[#allocation9 + $0xd0] sm:$0xff] }
 0x787   :  { %v3547_v50 = vmul.f32 -1.442695, %v5540_v39  ;;  %v1789_v39 = vld [vmem:[#allocation9 + $0xe0] sm:$0xff]  ;;  %v1790_v49 = vld [vmem:[#allocation9 + $0xe8] sm:$0xff] }
 0x788   :  { %v3548_v59 = vmul.f32 -1.442695, %v5541_v55  ;;  %v5008_v55 = vpack.c.bf16 %v1789_v39, %v1786_v37  ;;  %v1828_v39 = vld [vmem:[#allocation11 + $0x98] sm:$0xff] }
 0x789   :  { %5665 = vpow2.f32 %v3547_v50 }
 0x78a   :  { %5667 = vpow2.f32 %v3548_v59  ;;  %v5040_v59 = vpack.c.bf16 %v1790_v49, %v1787_v45  ;;  %v1831_v45 = vld [vmem:[#allocation11 + $0xb0] sm:$0xff] }
 0x78b   :  { %v6601_v49 = vpack.c.bf16 %v1831_v45, %v1828_v39  ;;  %v1847_v39 = vld [vmem:[#allocation11 + $0x130] sm:$0xff]  ;;  %v1850_v45 = vld [vmem:[#allocation11 + $0x148] sm:$0xff] }
 0x793   :  { %v5666_v61 = vpop.eup %5665 }
 0x794   :  { %v1578_v3 = vadd.f32 1.0, %v5666_v61  ;;  %v5668_v6 = vpop.eup %5667  ;;  %v1785_v61 = vld [vmem:[#allocation9 + $0xc0] sm:$0xff] }
 0x795   :  { %v1585_v23 = vadd.f32 1.0, %v5668_v6  ;;  %v1792_v6 = vld [vmem:[#allocation9 + $0xf8] sm:$0xff] }
 0x796   :  { %5669 = vrcp.f32 %v1578_v3  ;;  %v1788_v3 = vld [vmem:[#allocation9 + $0xd8] sm:$0xff] }
 0x7a0   :  { %v5670_v14 = vpop.eup %5669 }
 0x7a1   :  { %v1589_v17 = vmul.f32 %v5670_v14, %v1588_v10  ;;  %v1795_v10 = vld [vmem:[#allocation9 + $0x110] sm:$0xff]  ;;  %v1793_v14 = vld [vmem:[#allocation9 + $0x100] sm:$0xff] }
 0x7a3   :  { %v1590_v20 = vadd.f32 %v1589_v17, %v6274_v56  ;;  %v1770_v56 = vld [vmem:[#allocation9 + $0x48] sm:$0xff]  ;;  %v1796_v17 = vld [vmem:[#allocation9 + $0x118] sm:$0xff] }
 0x7a4   :  { %v4998_v33 = vpack.c.bf16 %v1770_v56, %v1767_v41  ;;  %v1804_v41 = vld [vmem:[#allocation9 + $0x158] sm:$0xff]  ;;  %v1807_v56 = vld [vmem:[#allocation9 + $0x170] sm:$0xff] }
 0x7a5   :  { %5671 = vtanh.f32 %v1590_v20  ;;  %v5010_v20 = vpack.c.bf16 %v1788_v3, %v1785_v61  ;;  %v5020_v8 = vpack.c.bf16 %v1807_v56, %v1804_v41  ;;  %v1834_v61 = vld [vmem:[#allocation11 + $0xc8] sm:$0xff]  ;;  %v1837_v3 = vld [vmem:[#allocation11 + $0xe0] sm:$0xff]  ;;  %v1852_v56 = vld [vmem:[#allocation11 + $0x158] sm:$0xff] }
 0x7a6   :  { %5673 = vrcp.f32 %v1585_v23  ;;  %v5012_v23 = vpack.c.bf16 %v1795_v10, %v1792_v6  ;;  %v6607_v6 = vpack.c.bf16 %v1837_v3, %v1834_v61  ;;  %v1833_v10 = vld [vmem:[#allocation11 + $0xc0] sm:$0xff]  ;;  %v1856_v61 = vld [vmem:[#allocation11 + $0x178] sm:$0xff] }
 0x7af   :  { %v5672_v28 = vpop.eup %5671 }
 0x7b0   :  { %v1592_v47 = vsub.f32 %v6514_v7, %v5672_v28  ;;  %v5674_v15 = vpop.eup %5673 }
 0x7b2   :  { %v1593_v24 = vmul.f32 %v5674_v15, %v1592_v47  ;;  %v1791_v47 = vld [vmem:[#allocation9 + $0xf0] sm:$0xff]  ;;  %v1801_v15 = vld [vmem:[#allocation9 + $0x140] sm:$0xff] }
 0x7b3   :  { %v5016_v42 = vpack.c.bf16 %v1801_v15, %v1798_v13  ;;  %v1846_v15 = vld [vmem:[#allocation11 + $0x128] sm:$0xff] }
 0x7b4   :  { %v6556_v21 = vadd.f32 %v5672_v28, %v1593_v24  ;;  %v5044_v28 = vpack.c.bf16 %v1796_v17, %v1793_v14  ;;  %v5014_v24 = vpack.c.bf16 %v1794_v11, %v1791_v47  ;;  %v1836_v14 = vld [vmem:[#allocation11 + $0xd8] sm:$0xff]  ;;  %v1839_v47 = vld [vmem:[#allocation11 + $0xf0] sm:$0xff]  ;;  %v1842_v11 = vld [vmem:[#allocation11 + $0x108] sm:$0xff] }
 0x7b5   :  { %v6609_v17 = vpack.c.bf16 %v1836_v14, %v1833_v10  ;;  %v6615_v13 = vpack.c.bf16 %v1842_v11, %v1839_v47 }
 0x7b6   :  { %1662 = vmatmul.mubr.f32.vlgmr.msra.gmra.mrb[14].mxu0 %v6556_v21  ;;  %4183 = vmatmul.mubr.f32.vlgmr.msra.gmra.mrb[22].mxu1 %v6556_v21 }
 0x7b7   :  { %4995 = vmatpush1.bf16.msra.mxu0 %v4994_v32  ;;  %5027 = vmatpush3.bf16.msra.mxu1 %v5024_v27  ;;  %v1779_v27 = vld [vmem:[#allocation9 + $0x90] sm:$0xff]  ;;  %v1797_v32 = vld [vmem:[#allocation9 + $0x120] sm:$0xff] }
 0x7b8   :  { %4217 = vmatprep.mubr.f32.mxu1 %v6294_v54  ;;  %4997 = vmatprep.subr.bf16.mxu0 %v4996_v44  ;;  %v5006_v50 = vpack.c.bf16 %v1782_v35, %v1779_v27  ;;  %v1800_v44 = vld [vmem:[#allocation9 + $0x138] sm:$0xff]  ;;  %v1821_v27 = vld [vmem:[#allocation11 + $0x60] sm:$0xff] }
 0x7b9   :  { %5029 = vmatprep.subr.bf16.mxu1 %v5028_v38  ;;  %1947 = vmatprep.mubr.f32.mxu0 %v5938_v0  ;;  %v5018_v48 = vpack.c.bf16 %v1800_v44, %v1797_v32  ;;  %v1824_v35 = vld [vmem:[#allocation11 + $0x78] sm:$0xff]  ;;  %v1814_v32 = vld [vmem:[#allocation11 + $0x28] sm:$0xff] }
 0x7ba   :  { %v6597_v37 = vpack.c.bf16 %v1824_v35, %v1821_v27  ;;  %v1844_v27 = vld [vmem:[#allocation11 + $0x118] sm:$0xff] }
 0x7bb   :  { %4999 = vmatpush1.bf16.msra.mxu0 %v4998_v33  ;;  %5031 = vmatpush3.bf16.msra.mxu1 %v5028_v38  ;;  %v1808_v38 = vld [vmem:[#allocation9 + $0x178] sm:$0xff]  ;;  %v1803_v33 = vld [vmem:[#allocation9 + $0x150] sm:$0xff] }
 0x7bc   :  { %5001 = vmatprep.subr.bf16.mxu0 %v5000_v40  ;;  %5033 = vmatprep.subr.bf16.mxu1 %v5032_v60  ;;  %v5052_v52 = vpack.c.bf16 %v1808_v38, %v1805_v43  ;;  %v1806_v40 = vld [vmem:[#allocation9 + $0x168] sm:$0xff]  ;;  %v1855_v43 = vld [vmem:[#allocation11 + $0x170] sm:$0xff] }
 0x7bd   :  { %v6629_v38 = vpack.c.bf16 %v1855_v43, %v1852_v56 }
 0x7bf   :  { %5003 = vmatpush1.bf16.msra.mxu0 %v5002_v18  ;;  %5035 = vmatpush3.bf16.msra.mxu1 %v5032_v60  ;;  %v5022_v60 = vpack.c.bf16 %v1806_v40, %v1803_v33  ;;  %v1822_v18 = vld [vmem:[#allocation11 + $0x68] sm:$0xff]  ;;  %v1817_v33 = vld [vmem:[#allocation11 + $0x40] sm:$0xff]  ;;  %v1820_v40 = vld [vmem:[#allocation11 + $0x58] sm:$0xff] }
 0x7c0   :  { %5005 = vmatprep.subr.bf16.mxu0 %v5004_v19  ;;  %5037 = vmatprep.subr.bf16.mxu1 %v5036_v25  ;;  %v1825_v19 = vld [vmem:[#allocation11 + $0x80] sm:$0xff] }
 0x7c3   :  { %5007 = vmatpush1.bf16.msra.mxu0 %v5006_v50  ;;  %5039 = vmatpush3.bf16.msra.mxu1 %v5036_v25  ;;  %v6595_v25 = vpack.c.bf16 %v1825_v19, %v1822_v18  ;;  %v1827_v50 = vld [vmem:[#allocation11 + $0x90] sm:$0xff]  ;;  %v6647_v18 = vpack.c.bf16 %v1838_v9, %v1835_v5  ;;  %v1841_v19 = vld [vmem:[#allocation11 + $0x100] sm:$0xff] }
 0x7c4   :  { %5009 = vmatprep.subr.bf16.mxu0 %v5008_v55  ;;  %5041 = vmatprep.subr.bf16.mxu1 %v5040_v59  ;;  %v1830_v55 = vld [vmem:[#allocation11 + $0xa8] sm:$0xff]  ;;  %v6651_v35 = vpack.c.bf16 %v1844_v27, %v1841_v19 }
 0x7c7   :  { %5011 = vmatpush1.bf16.msra.mxu0 %v5010_v20  ;;  %5043 = vmatpush3.bf16.msra.mxu1 %v5040_v59  ;;  %v6603_v59 = vpack.c.bf16 %v1830_v55, %v1827_v50  ;;  %v1840_v20 = vld [vmem:[#allocation11 + $0xf8] sm:$0xff]  ;;  %v6655_v50 = vpack.c.bf16 %v1850_v45, %v1847_v39  ;;  %v1853_v55 = vld [vmem:[#allocation11 + $0x160] sm:$0xff] }
 0x7c8   :  { %5013 = vmatprep.subr.bf16.mxu0 %v5012_v23  ;;  %5045 = vmatprep.subr.bf16.mxu1 %v5044_v28  ;;  %v1843_v23 = vld [vmem:[#allocation11 + $0x110] sm:$0xff]  ;;  %v6659_v3 = vpack.c.bf16 %v1856_v61, %v1853_v55 }
 0x7cb   :  { %5015 = vmatpush1.bf16.msra.mxu0 %v5014_v24  ;;  %5047 = vmatpush3.bf16.msra.mxu1 %v5044_v28  ;;  %v6613_v28 = vpack.c.bf16 %v1843_v23, %v1840_v20  ;;  %v6618_v24 = vpack.c.bf16 %v1849_v51, %v1846_v15 }
 0x7cc   :  { %5017 = vmatprep.subr.bf16.mxu0 %v5016_v42  ;;  %5049 = vmatprep.subr.bf16.mxu1 %v5048_v29  ;;  %v1848_v42 = vld [vmem:[#allocation11 + $0x138] sm:$0xff] }
 0x7cd   :  { %v6621_v44 = vpack.c.bf16 %v1848_v42, %v1845_v22 }
 0x7cf   :  { %5019 = vmatpush1.bf16.msra.mxu0 %v5018_v48  ;;  %5051 = vmatpush3.bf16.msra.mxu1 %v5048_v29  ;;  %v1811_v29 = vld [vmem:[#allocation11 + $0x10] sm:$0xff] }
 0x7d0   :  { %5021 = vmatprep.subr.bf16.mxu0 %v5020_v8  ;;  %5053 = vmatprep.subr.bf16.mxu1 %v5052_v52  ;;  %v6623_v41 = vpack.c.bf16 %v1814_v32, %v1811_v29  ;;  %v1851_v48 = vld [vmem:[#allocation11 + $0x150] sm:$0xff]  ;;  %v1854_v8 = vld [vmem:[#allocation11 + $0x168] sm:$0xff] }
 0x7d1   :  { %v5765_v32 = vld [vmem:[%s7099_s4] ss:$0 sm:$0xff] }
 0x7d3   :  { %5023 = vmatpush1.bf16.msra.mxu0 %v5022_v60  ;;  %5055 = vmatpush3.bf16.msra.mxu1 %v5052_v52  ;;  %v6631_v52 = vpack.c.bf16 %v1854_v8, %v1851_v48  ;;  %v6634_v60 = vpack.c.bf16 %v1820_v40, %v1817_v33 }
 0x7d4   :  { %5088 = vmatprep.subr.bf16.mxu1 %v5939_v34 }
 0x7d6   :  { %1948 = vmatmul.mubr.f32.vlgmr.msra.gmra.mrb[16].mxu0 %v6294_v54  ;;  %4218 = vmatmul.mubr.f32.vlgmr.msra.gmra.mrb[24].mxu1 %v6338_v46  ;;  %v1810_v54 = vld [vmem:[#allocation11 + $0x8] sm:$0xff] }
 0x7d7   :  { %4220 = vmatprep.mubr.f32.mxu1 %v6382_v36  ;;  %1953 = vmatprep.mubr.f32.mxu0 %v5938_v0 }
 0x7d8   :  { %5090 = vmatpush3.bf16.msra.mxu1 %v6623_v41 }
 0x7d9   :  { %5091 = vmatprep.subr.bf16.mxu1 %v5939_v34 }
 0x7da   :  { %1954 = vmatmul.mubr.f32.gmra.mrb[18].mxu0 %v6338_v46  ;;  %4221 = vmatmul.mubr.f32.gmra.mrb[26].mxu1 %v6426_v26  ;;  %v1813_v46 = vld [vmem:[#allocation11 + $0x20] sm:$0xff] }
 0x7db   :  { %4223 = vmatprep.mubr.f32.mxu1 %v6470_v16  ;;  %1959 = vmatprep.mubr.f32.mxu0 %v5938_v0 }
 0x7dc   :  { %5093 = vmatpush3.bf16.msra.mxu1 %v6634_v60 }
 0x7dd   :  { %5094 = vmatprep.subr.bf16.mxu1 %v5939_v34 }
 0x7de   :  { %1960 = vmatmul.mubr.f32.gmra.mrb[20].mxu0 %v6382_v36  ;;  %4224 = vmatmul.mubr.f32.gmra.mrb[28].mxu1 %v6514_v7  ;;  %v6583_v36 = vpack.c.bf16 %v1813_v46, %v1810_v54  ;;  %v1823_v54 = vld [vmem:[#allocation11 + $0x70] sm:$0xff]  ;;  %v1826_v46 = vld [vmem:[#allocation11 + $0x88] sm:$0xff] }
 0x7df   :  { %4226 = vmatprep.mubr.f32.mxu1 %v6556_v21  ;;  %1965 = vmatprep.mubr.f32.mxu0 %v5938_v0 }
 0x7e0   :  { %5057 = vmatprep.subr.bf16.mxu0 %v6583_v36 }
 0x7e2   :  { %1966 = vmatmul.mubr.f32.gmra.mrb[22].mxu0 %v6426_v26  ;;  %v1812_v26 = vld [vmem:[#allocation11 + $0x18] sm:$0xff] }
 0x7e3   :  { %1971 = vmatprep.mubr.f32.mxu0 %v5938_v0  ;;  %v6585_v1 = vpack.c.bf16 %v1812_v26, %v1809_v62  ;;  %v1829_v62 = vld [vmem:[#allocation11 + $0xa0] sm:$0xff]  ;;  %v6640_v26 = vpack.c.bf16 %v1826_v46, %v1823_v54 }
 0x7e5   :  { %5059 = vmatpush1.bf16.msra.mxu0 %v6585_v1  ;;  %5096 = vmatpush3.bf16.msra.mxu1 %v6640_v26 }
 0x7e6   :  { %1972 = vmatmul.mubr.f32.gmra.mrb[24].mxu0 %v6470_v16  ;;  %v1816_v16 = vld [vmem:[#allocation11 + $0x38] sm:$0xff]  ;;  %5097 = vmatprep.subr.bf16.mxu1 %v5939_v34 }
 0x7e7   :  { %1977 = vmatprep.mubr.f32.mxu0 %v5938_v0 }
 0x7ea   :  { %1978 = vmatmul.mubr.f32.gmra.mrb[26].mxu0 %v6514_v7  ;;  %v1819_v7 = vld [vmem:[#allocation11 + $0x50] sm:$0xff] }
 0x7eb   :  { %1983 = vmatprep.mubr.f32.mxu0 %v5938_v0  ;;  %v6589_v2 = vpack.c.bf16 %v1819_v7, %v1816_v16  ;;  %v1832_v16 = vld [vmem:[#allocation11 + $0xb8] sm:$0xff] }
 0x7ec   :  { %v6643_v7 = vpack.c.bf16 %v1832_v16, %v1829_v62 }
 0x7ed   :  { %5061 = vmatprep.subr.bf16.mxu0 %v6589_v2 }
 0x7ee   :  { %1984 = vmatmul.mubr.f32.gmra.mrb[28].mxu0 %v6556_v21  ;;  %5099 = vmatpush3.bf16.msra.mxu1 %v6643_v7 }
 0x7ef   :  { %1989 = vmatprep.mubr.f32.mxu0 %v5938_v0  ;;  %5063 = vmatpush1.bf16.msra.mxu0 %v6591_v12 }
 0x7f0   :  { %5065 = vmatprep.subr.bf16.mxu0 %v6595_v25  ;;  %5100 = vmatprep.subr.bf16.mxu1 %v5939_v34 }
 0x7f2   :  { %5102 = vmatpush3.bf16.msra.mxu1 %v6647_v18 }
 0x7f3   :  { %5067 = vmatpush1.bf16.msra.mxu0 %v6597_v37  ;;  %5103 = vmatprep.subr.bf16.mxu1 %v5939_v34 }
 0x7f4   :  { %5069 = vmatprep.subr.bf16.mxu0 %v6601_v49 }
 0x7f6   :  { %5105 = vmatpush3.bf16.msra.mxu1 %v6651_v35 }
 0x7f7   :  { %5071 = vmatpush1.bf16.msra.mxu0 %v6603_v59  ;;  %5106 = vmatprep.subr.bf16.mxu1 %v5939_v34 }
 0x7f8   :  { %5073 = vmatprep.subr.bf16.mxu0 %v6607_v6 }
 0x7fa   :  { %5108 = vmatpush3.bf16.msra.mxu1 %v6655_v50 }
 0x7fb   :  { %5075 = vmatpush1.bf16.msra.mxu0 %v6609_v17  ;;  %5109 = vmatprep.subr.bf16.mxu1 %v5939_v34 }
 0x7fc   :  { %5077 = vmatprep.subr.bf16.mxu0 %v6613_v28 }
 0x7fe   :  { %5111 = vmatpush3.bf16.msra.mxu1 %v6659_v3 }
 0x7ff   :  { %5079 = vmatpush1.bf16.msra.mxu0 %v6615_v13  ;;  %5144 = vmatprep.subr.bf16.mxu1 %v5939_v34 }
 0x800   :  { %5081 = vmatprep.subr.bf16.mxu0 %v6618_v24 }
 0x803   :  { %5083 = vmatpush1.bf16.msra.mxu0 %v6621_v44 }
 0x804   :  { %5085 = vmatprep.subr.bf16.mxu0 %v6629_v38 }
 0x807   :  { %5087 = vmatpush1.bf16.msra.mxu0 %v6631_v52 }
 0x808   :  { %5113 = vmatprep.subr.bf16.mxu0 %v6583_v36 }
 0x889   :  { %v1663_v10 = vpop.f32.mrb[14].mxu0  ;;  %v1734_v14 = vpop.f32.mrb[22].mxu1 }
 0x88a   :  { %v5542_v20 = vadd.f32 %v1663_v10, %v6279_v58  ;;  %v1665_v23 = vpop.f32.mrb[15].mxu0  ;;  %v4184_v47 = vpop.f32.mrb[23].mxu1  ;;  %v1752_v56 = vadd.f32 %v5765_v32, %v1734_v14 }
 0x88b   :  { %v5543_v15 = vadd.f32 %v1665_v23, %v6285_v4 }
 0x88c   :  { %v3549_v11 = vmul.f32 -1.442695, %v5542_v20 }
 0x88d   :  { %v3550_v51 = vmul.f32 -1.442695, %v5543_v15 }
 0x88e   :  { %5675 = vpow2.f32 %v3549_v11 }
 0x88f   :  { %5677 = vpow2.f32 %v3550_v51 }
 0x898   :  { %v5676_v22 = vpop.eup %5675 }
 0x899   :  { %v1742_v42 = vadd.f32 1.0, %v5676_v22  ;;  %v5678_v29 = vpop.eup %5677 }
 0x89a   :  { %v1749_v8 = vadd.f32 1.0, %v5678_v29 }
 0x89b   :  { %5679 = vrcp.f32 %v1742_v42 }
 0x8a5   :  { %v5680_v43 = vpop.eup %5679 }
 0x8a6   :  { %v1753_v48 = vmul.f32 %v5680_v43, %v1752_v56 }
 0x8a8   :  { %v1754_v58 = vadd.f32 %v1753_v48, %v6272_v53 }
 0x8a9   :  { %v6670_v33 = vpop.f32.mrb[24].mxu1 }
 0x8aa   :  { %5681 = vtanh.f32 %v1754_v58  ;;  %v6672_v4 = vpop.f32.mrb[25].mxu1 }
 0x8ab   :  { %5683 = vrcp.f32 %v1749_v8 }
 0x8ad   :  { %v6674_v40 = vpop.f32.mrb[26].mxu1 }
 0x8ae   :  { %v6676_v54 = vpop.f32.mrb[27].mxu1 }
 0x8b1   :  { %v6678_v46 = vpop.f32.mrb[28].mxu1 }
 0x8b2   :  { %v6680_v62 = vpop.f32.mrb[29].mxu1 }
 0x8b4   :  { %v5682_v16 = vpop.eup %5681 }
 0x8b5   :  { %v1756_v5 = vsub.f32 %v6556_v21, %v5682_v16  ;;  %v5684_v9 = vpop.eup %5683  ;;  %v1857_v21 = vld [vmem:[#allocation12] sm:$0x7] }
 0x8b6   :  { %v6729_v45 = vrot.slane %v1857_v21, %v178_v57  ;;  %v6734_v47 = vrot.slane %v1857_v21, %v182_v63  ;;  %v6740_v57 = vld [vmem:[%s7103_s8] ss:$0 sm:$0xff]  ;;  %v6744_v42 = vrot.slane %v1857_v21, %v186_v31 }
 0x8b7   :  { %v1757_v53 = vmul.f32 %v5684_v9, %v1756_v5 }
 0x8b8   :  { %v2063_v56 = vadd.f32 %v6672_v4, %v6744_v42 }
 0x8b9   :  { %v1758_v19 = vadd.f32 %v5682_v16, %v1757_v53 }
 0x8bb   :  { %1990 = vmatmul.mubr.f32.gmra.mrb[30].mxu0 %v1758_v19  ;;  %4227 = vmatmul.mubr.f32.gmra.mrb[30].mxu1 %v1758_v19 }
 0x8bc   :  { %2165 = vmatprep.mubr.f32.mxu0 %v5938_v0  ;;  %4261 = vmatprep.mubr.msk.f32.mxu1 %vm5940_vm2, %v5938_v0 }
 0x8bf   :  { %2166 = vmatmul.mubr.f32.vlgmr.msra.gmra.mrb[16].mxu0 %v5938_v0  ;;  %4262 = vmatmul.mubr.f32.vlgmr.msra.gmra.mrb[32].mxu1 %v5938_v0 }
 0x8c0   :  { %5115 = vmatpush1.bf16.msra.mxu0 %v6585_v1  ;;  %5146 = vmatpush3.bf16.msra.mxu1 %v6623_v41 }
 0x8c1   :  { %5117 = vmatprep.subr.bf16.mxu0 %v6589_v2  ;;  %5147 = vmatprep.subr.bf16.mxu1 %v5939_v34 }
 0x8c2   :  { %2333 = vmatprep.mubr.f32.mxu0 %v5938_v0  ;;  %4296 = vmatprep.mubr.msk.f32.mxu1 %vm5940_vm2, %v5938_v0 }
 0x8c4   :  { %5119 = vmatpush1.bf16.msra.mxu0 %v6591_v12  ;;  %5149 = vmatpush3.bf16.msra.mxu1 %v6634_v60 }
 0x8c5   :  { %5121 = vmatprep.subr.bf16.mxu0 %v6595_v25  ;;  %5150 = vmatprep.subr.bf16.mxu1 %v5939_v34 }
 0x8c8   :  { %5123 = vmatpush1.bf16.msra.mxu0 %v6597_v37  ;;  %5152 = vmatpush3.bf16.msra.mxu1 %v6640_v26 }
 0x8c9   :  { %5125 = vmatprep.subr.bf16.mxu0 %v6601_v49  ;;  %5153 = vmatprep.subr.bf16.mxu1 %v5939_v34 }
 0x8cc   :  { %5127 = vmatpush1.bf16.msra.mxu0 %v6603_v59  ;;  %5155 = vmatpush3.bf16.msra.mxu1 %v6643_v7 }
 0x8cd   :  { %5129 = vmatprep.subr.bf16.mxu0 %v6607_v6  ;;  %5156 = vmatprep.subr.bf16.mxu1 %v5939_v34 }
 0x8d0   :  { %5131 = vmatpush1.bf16.msra.mxu0 %v6609_v17  ;;  %5158 = vmatpush3.bf16.msra.mxu1 %v6647_v18 }
 0x8d1   :  { %5133 = vmatprep.subr.bf16.mxu0 %v6613_v28  ;;  %5159 = vmatprep.subr.bf16.mxu1 %v5939_v34 }
 0x8d4   :  { %5135 = vmatpush1.bf16.msra.mxu0 %v6615_v13  ;;  %5161 = vmatpush3.bf16.msra.mxu1 %v6651_v35 }
 0x8d5   :  { %5137 = vmatprep.subr.bf16.mxu0 %v6618_v24  ;;  %5162 = vmatprep.subr.bf16.mxu1 %v5939_v34 }
 0x8d8   :  { %5139 = vmatpush1.bf16.msra.mxu0 %v6621_v44  ;;  %5164 = vmatpush3.bf16.msra.mxu1 %v6655_v50 }
 0x8d9   :  { %5141 = vmatprep.subr.bf16.mxu0 %v6629_v38  ;;  %5165 = vmatprep.subr.bf16.mxu1 %v5939_v34 }
 0x8dc   :  { %5143 = vmatpush1.bf16.msra.mxu0 %v6631_v52  ;;  %5167 = vmatpush3.bf16.msra.mxu1 %v6659_v3 }
 0x8dd   :  { %5169 = vmatprep.subr.bf16.mxu0 %v6583_v36  ;;  %5200 = vmatprep.subr.bf16.mxu1 %v5939_v34 }
 0x98e   :  { %v6723_v27 = vpop.f32.mrb[30].mxu1 }
 0x98f   :  { %v6725_v39 = vpop.f32.mrb[31].mxu1 }
 0x992   :  { %v2167_v55 = vpop.f32.mrb[16].mxu0  ;;  %v2238_v61 = vpop.f32.mrb[32].mxu1 }
 0x993   :  { %v5544_v10 = vadd.f32 %v2167_v55, %v6729_v45  ;;  %v2169_v14 = vpop.f32.mrb[17].mxu0  ;;  %v4263_v20 = vpop.f32.mrb[33].mxu1  ;;  %v2262_v29 = vadd.f32 %v6740_v57, %v2238_v61 }
 0x994   :  { %v5545_v11 = vadd.f32 %v2169_v14, %v6734_v47 }
 0x995   :  { %v3551_v23 = vmul.f32 -1.442695, %v5544_v10 }
 0x996   :  { %v3552_v15 = vmul.f32 -1.442695, %v5545_v11 }
 0x997   :  { %5685 = vpow2.f32 %v3551_v23 }
 0x998   :  { %5687 = vpow2.f32 %v3552_v15 }
 0x9a1   :  { %v5686_v51 = vpop.eup %5685 }
 0x9a2   :  { %v2246_v22 = vadd.f32 1.0, %v5686_v51  ;;  %v5688_v63 = vpop.eup %5687  ;;  %v2068_v51 = vadd.f32 %v6670_v33, %v6744_v42 }
 0x9a3   :  { %v2253_v48 = vadd.f32 1.0, %v5688_v63 }
 0x9a4   :  { %5689 = vrcp.f32 %v2246_v22 }
 0x9ae   :  { %v5690_v32 = vpop.eup %5689 }
 0x9af   :  { %v2263_v43 = vmul.f32 %v5690_v32, %v2262_v29 }
 0x9b1   :  { %v2264_v58 = vadd.f32 %v2263_v43, %v2063_v56 }
 0x9b3   :  { %5691 = vtanh.f32 %v2264_v58 }
 0x9b4   :  { %5693 = vrcp.f32 %v2253_v48 }
 0x9bd   :  { %v5692_v8 = vpop.eup %5691 }
 0x9be   :  { %v2266_v16 = vsub.f32 0.0, %v5692_v8  ;;  %v5694_v5 = vpop.eup %5693 }
 0x9c0   :  { %v2267_v9 = vmul.f32 %v5694_v5, %v2266_v16 }
 0x9c2   :  { %v6749_v53 = vadd.f32 %v5692_v8, %v2267_v9 }
 0x9c4   :  { %2334 = vmatmul.mubr.f32.vlgmr.msra.gmra.mrb[18].mxu0 %v6749_v53  ;;  %4297 = vmatmul.mubr.f32.vlgmr.msra.gmra.mrb[34].mxu1 %v6749_v53 }
 0x9c5   :  { %5171 = vmatpush1.bf16.msra.mxu0 %v6585_v1  ;;  %5202 = vmatpush3.bf16.msra.mxu1 %v6623_v41 }
 0x9c6   :  { %5173 = vmatprep.subr.bf16.mxu0 %v6589_v2  ;;  %5203 = vmatprep.subr.bf16.mxu1 %v5939_v34 }
 0x9c7   :  { %2495 = vmatprep.mubr.f32.mxu0 %v5938_v0  ;;  %4331 = vmatprep.mubr.msk.f32.mxu1 %vm5940_vm2, %v5938_v0 }
 0x9c9   :  { %5175 = vmatpush1.bf16.msra.mxu0 %v6591_v12  ;;  %5205 = vmatpush3.bf16.msra.mxu1 %v6634_v60 }
 0x9ca   :  { %5177 = vmatprep.subr.bf16.mxu0 %v6595_v25  ;;  %5206 = vmatprep.subr.bf16.mxu1 %v5939_v34 }
 0x9cd   :  { %5179 = vmatpush1.bf16.msra.mxu0 %v6597_v37  ;;  %5208 = vmatpush3.bf16.msra.mxu1 %v6640_v26 }
 0x9ce   :  { %5181 = vmatprep.subr.bf16.mxu0 %v6601_v49  ;;  %5209 = vmatprep.subr.bf16.mxu1 %v5939_v34 }
 0x9d1   :  { %5183 = vmatpush1.bf16.msra.mxu0 %v6603_v59  ;;  %5211 = vmatpush3.bf16.msra.mxu1 %v6643_v7 }
 0x9d2   :  { %5185 = vmatprep.subr.bf16.mxu0 %v6607_v6  ;;  %5212 = vmatprep.subr.bf16.mxu1 %v5939_v34 }
 0x9d5   :  { %5187 = vmatpush1.bf16.msra.mxu0 %v6609_v17  ;;  %5214 = vmatpush3.bf16.msra.mxu1 %v6647_v18 }
 0x9d6   :  { %5189 = vmatprep.subr.bf16.mxu0 %v6613_v28  ;;  %5215 = vmatprep.subr.bf16.mxu1 %v5939_v34 }
 0x9d9   :  { %5191 = vmatpush1.bf16.msra.mxu0 %v6615_v13  ;;  %5217 = vmatpush3.bf16.msra.mxu1 %v6651_v35 }
 0x9da   :  { %5193 = vmatprep.subr.bf16.mxu0 %v6618_v24  ;;  %5218 = vmatprep.subr.bf16.mxu1 %v5939_v34 }
 0x9dd   :  { %5195 = vmatpush1.bf16.msra.mxu0 %v6621_v44  ;;  %5220 = vmatpush3.bf16.msra.mxu1 %v6655_v50 }
 0x9de   :  { %5197 = vmatprep.subr.bf16.mxu0 %v6629_v38  ;;  %5221 = vmatprep.subr.bf16.mxu1 %v5939_v34 }
 0x9e1   :  { %5199 = vmatpush1.bf16.msra.mxu0 %v6631_v52  ;;  %5223 = vmatpush3.bf16.msra.mxu1 %v6659_v3 }
 0x9e2   :  { %5225 = vmatprep.subr.bf16.mxu0 %v6583_v36  ;;  %5256 = vmatprep.subr.bf16.mxu1 %v5939_v34 }
 0xa97   :  { %v2335_v30 = vpop.f32.mrb[18].mxu0  ;;  %v2406_v31 = vpop.f32.mrb[34].mxu1 }
 0xa98   :  { %v5546_v4 = vadd.f32 %v2335_v30, %v6729_v45  ;;  %v2337_v19 = vpop.f32.mrb[19].mxu0  ;;  %v4298_v21 = vpop.f32.mrb[35].mxu1  ;;  %v2424_v11 = vadd.f32 %v6740_v57, %v2406_v31 }
 0xa99   :  { %v5547_v61 = vadd.f32 %v2337_v19, %v6734_v47 }
 0xa9a   :  { %v3554_v55 = vmul.f32 -1.442695, %v5546_v4 }
 0xa9b   :  { %v3555_v10 = vmul.f32 -1.442695, %v5547_v61 }
 0xa9c   :  { %5695 = vpow2.f32 %v3554_v55 }
 0xa9d   :  { %5697 = vpow2.f32 %v3555_v10  ;;  %v2073_v10 = vadd.f32 %v6676_v54, %v6744_v42 }
 0xaa6   :  { %v5696_v14 = vpop.eup %5695 }
 0xaa7   :  { %v2414_v20 = vadd.f32 1.0, %v5696_v14  ;;  %v5698_v23 = vpop.eup %5697 }
 0xaa8   :  { %v2421_v63 = vadd.f32 1.0, %v5698_v23 }
 0xaa9   :  { %5699 = vrcp.f32 %v2414_v20 }
 0xab3   :  { %v5700_v15 = vpop.eup %5699 }
 0xab4   :  { %v2425_v22 = vmul.f32 %v5700_v15, %v2424_v11 }
 0xab6   :  { %v2426_v29 = vadd.f32 %v2425_v22, %v2068_v51 }
 0xab8   :  { %5701 = vtanh.f32 %v2426_v29 }
 0xab9   :  { %5703 = vrcp.f32 %v2421_v63 }
 0xac2   :  { %v5702_v32 = vpop.eup %5701 }
 0xac3   :  { %v2428_v56 = vsub.f32 %v6749_v53, %v5702_v32  ;;  %v5704_v43 = vpop.eup %5703 }
 0xac5   :  { %v2429_v48 = vmul.f32 %v5704_v43, %v2428_v56 }
 0xac7   :  { %v6794_v58 = vadd.f32 %v5702_v32, %v2429_v48 }
 0xac9   :  { %2496 = vmatmul.mubr.f32.vlgmr.msra.gmra.mrb[20].mxu0 %v6794_v58  ;;  %4332 = vmatmul.mubr.f32.vlgmr.msra.gmra.mrb[36].mxu1 %v6794_v58 }
 0xaca   :  { %5227 = vmatpush1.bf16.msra.mxu0 %v6585_v1  ;;  %5258 = vmatpush3.bf16.msra.mxu1 %v6623_v41 }
 0xacb   :  { %5229 = vmatprep.subr.bf16.mxu0 %v6589_v2  ;;  %5259 = vmatprep.subr.bf16.mxu1 %v5939_v34 }
 0xacc   :  { %2657 = vmatprep.mubr.f32.mxu0 %v5938_v0  ;;  %4366 = vmatprep.mubr.msk.f32.mxu1 %vm5940_vm2, %v5938_v0 }
 0xace   :  { %5231 = vmatpush1.bf16.msra.mxu0 %v6591_v12  ;;  %5261 = vmatpush3.bf16.msra.mxu1 %v6634_v60 }
 0xacf   :  { %5233 = vmatprep.subr.bf16.mxu0 %v6595_v25  ;;  %5262 = vmatprep.subr.bf16.mxu1 %v5939_v34 }
 0xad2   :  { %5235 = vmatpush1.bf16.msra.mxu0 %v6597_v37  ;;  %5264 = vmatpush3.bf16.msra.mxu1 %v6640_v26 }
 0xad3   :  { %5237 = vmatprep.subr.bf16.mxu0 %v6601_v49  ;;  %5265 = vmatprep.subr.bf16.mxu1 %v5939_v34 }
 0xad6   :  { %5239 = vmatpush1.bf16.msra.mxu0 %v6603_v59  ;;  %5267 = vmatpush3.bf16.msra.mxu1 %v6643_v7 }
 0xad7   :  { %5241 = vmatprep.subr.bf16.mxu0 %v6607_v6  ;;  %5268 = vmatprep.subr.bf16.mxu1 %v5939_v34 }
 0xada   :  { %5243 = vmatpush1.bf16.msra.mxu0 %v6609_v17  ;;  %5270 = vmatpush3.bf16.msra.mxu1 %v6647_v18 }
 0xadb   :  { %5245 = vmatprep.subr.bf16.mxu0 %v6613_v28  ;;  %5271 = vmatprep.subr.bf16.mxu1 %v5939_v34 }
 0xade   :  { %5247 = vmatpush1.bf16.msra.mxu0 %v6615_v13  ;;  %5273 = vmatpush3.bf16.msra.mxu1 %v6651_v35 }
 0xadf   :  { %5249 = vmatprep.subr.bf16.mxu0 %v6618_v24  ;;  %5274 = vmatprep.subr.bf16.mxu1 %v5939_v34 }
 0xae2   :  { %5251 = vmatpush1.bf16.msra.mxu0 %v6621_v44  ;;  %5276 = vmatpush3.bf16.msra.mxu1 %v6655_v50 }
 0xae3   :  { %5253 = vmatprep.subr.bf16.mxu0 %v6629_v38  ;;  %5277 = vmatprep.subr.bf16.mxu1 %v5939_v34 }
 0xae6   :  { %5255 = vmatpush1.bf16.msra.mxu0 %v6631_v52  ;;  %5279 = vmatpush3.bf16.msra.mxu1 %v6659_v3 }
 0xae7   :  { %5281 = vmatprep.subr.bf16.mxu0 %v6583_v36  ;;  %5312 = vmatprep.subr.bf16.mxu1 %v5939_v34 }
 0xb9c   :  { %v2497_v33 = vpop.f32.mrb[20].mxu0  ;;  %v2568_v8 = vpop.f32.mrb[36].mxu1 }
 0xb9d   :  { %v5548_v16 = vadd.f32 %v2497_v33, %v6729_v45  ;;  %v2499_v5 = vpop.f32.mrb[21].mxu0  ;;  %v4333_v9 = vpop.f32.mrb[37].mxu1  ;;  %v2586_v55 = vadd.f32 %v6740_v57, %v2568_v8 }
 0xb9e   :  { %v5549_v30 = vadd.f32 %v2499_v5, %v6734_v47 }
 0xb9f   :  { %v3556_v53 = vmul.f32 -1.442695, %v5548_v16 }
 0xba0   :  { %v3557_v31 = vmul.f32 -1.442695, %v5549_v30  ;;  %v2078_v30 = vadd.f32 %v6674_v40, %v6744_v42 }
 0xba1   :  { %5705 = vpow2.f32 %v3556_v53 }
 0xba2   :  { %5707 = vpow2.f32 %v3557_v31 }
 0xbab   :  { %v5706_v4 = vpop.eup %5705 }
 0xbac   :  { %v2576_v19 = vadd.f32 1.0, %v5706_v4  ;;  %v5708_v21 = vpop.eup %5707 }
 0xbad   :  { %v2583_v23 = vadd.f32 1.0, %v5708_v21 }
 0xbae   :  { %5709 = vrcp.f32 %v2576_v19 }
 0xbb8   :  { %v5710_v61 = vpop.eup %5709 }
 0xbb9   :  { %v2587_v14 = vmul.f32 %v5710_v61, %v2586_v55 }
 0xbbb   :  { %v2588_v20 = vadd.f32 %v2587_v14, %v2073_v10 }
 0xbbd   :  { %5711 = vtanh.f32 %v2588_v20 }
 0xbbe   :  { %5713 = vrcp.f32 %v2583_v23 }
 0xbc7   :  { %v5712_v11 = vpop.eup %5711 }
 0xbc8   :  { %v2590_v15 = vsub.f32 %v6794_v58, %v5712_v11  ;;  %v5714_v51 = vpop.eup %5713 }
 0xbca   :  { %v2591_v22 = vmul.f32 %v5714_v51, %v2590_v15 }
 0xbcc   :  { %v6839_v29 = vadd.f32 %v5712_v11, %v2591_v22 }
 0xbce   :  { %2658 = vmatmul.mubr.f32.vlgmr.msra.gmra.mrb[22].mxu0 %v6839_v29  ;;  %4367 = vmatmul.mubr.f32.vlgmr.msra.gmra.mrb[38].mxu1 %v6839_v29 }
 0xbcf   :  { %5283 = vmatpush1.bf16.msra.mxu0 %v6585_v1  ;;  %5314 = vmatpush3.bf16.msra.mxu1 %v6623_v41 }
 0xbd0   :  { %5285 = vmatprep.subr.bf16.mxu0 %v6589_v2  ;;  %5315 = vmatprep.subr.bf16.mxu1 %v5939_v34 }
 0xbd1   :  { %2819 = vmatprep.mubr.f32.mxu0 %v5938_v0  ;;  %4401 = vmatprep.mubr.msk.f32.mxu1 %vm5940_vm2, %v5938_v0 }
 0xbd3   :  { %5287 = vmatpush1.bf16.msra.mxu0 %v6591_v12  ;;  %5317 = vmatpush3.bf16.msra.mxu1 %v6634_v60 }
 0xbd4   :  { %5289 = vmatprep.subr.bf16.mxu0 %v6595_v25  ;;  %5318 = vmatprep.subr.bf16.mxu1 %v5939_v34 }
 0xbd7   :  { %5291 = vmatpush1.bf16.msra.mxu0 %v6597_v37  ;;  %5320 = vmatpush3.bf16.msra.mxu1 %v6640_v26 }
 0xbd8   :  { %5293 = vmatprep.subr.bf16.mxu0 %v6601_v49  ;;  %5321 = vmatprep.subr.bf16.mxu1 %v5939_v34 }
 0xbdb   :  { %5295 = vmatpush1.bf16.msra.mxu0 %v6603_v59  ;;  %5323 = vmatpush3.bf16.msra.mxu1 %v6643_v7 }
 0xbdc   :  { %5297 = vmatprep.subr.bf16.mxu0 %v6607_v6  ;;  %5324 = vmatprep.subr.bf16.mxu1 %v5939_v34 }
 0xbdf   :  { %5299 = vmatpush1.bf16.msra.mxu0 %v6609_v17  ;;  %5326 = vmatpush3.bf16.msra.mxu1 %v6647_v18 }
 0xbe0   :  { %5301 = vmatprep.subr.bf16.mxu0 %v6613_v28  ;;  %5327 = vmatprep.subr.bf16.mxu1 %v5939_v34 }
 0xbe3   :  { %5303 = vmatpush1.bf16.msra.mxu0 %v6615_v13  ;;  %5329 = vmatpush3.bf16.msra.mxu1 %v6651_v35 }
 0xbe4   :  { %5305 = vmatprep.subr.bf16.mxu0 %v6618_v24  ;;  %5330 = vmatprep.subr.bf16.mxu1 %v5939_v34 }
 0xbe7   :  { %5307 = vmatpush1.bf16.msra.mxu0 %v6621_v44  ;;  %5332 = vmatpush3.bf16.msra.mxu1 %v6655_v50 }
 0xbe8   :  { %5309 = vmatprep.subr.bf16.mxu0 %v6629_v38  ;;  %5333 = vmatprep.subr.bf16.mxu1 %v5939_v34 }
 0xbeb   :  { %5311 = vmatpush1.bf16.msra.mxu0 %v6631_v52  ;;  %5335 = vmatpush3.bf16.msra.mxu1 %v6659_v3 }
 0xbec   :  { %5337 = vmatprep.subr.bf16.mxu0 %v6583_v36  ;;  %5368 = vmatprep.subr.bf16.mxu1 %v5939_v34 }
 0xca1   :  { %v2659_v54 = vpop.f32.mrb[22].mxu0  ;;  %v2730_v63 = vpop.f32.mrb[38].mxu1 }
 0xca2   :  { %v5550_v32 = vadd.f32 %v2659_v54, %v6729_v45  ;;  %v2661_v56 = vpop.f32.mrb[23].mxu0  ;;  %v4368_v43 = vpop.f32.mrb[39].mxu1  ;;  %v2748_v9 = vadd.f32 %v6740_v57, %v2730_v63 }
 0xca3   :  { %v5551_v58 = vadd.f32 %v2661_v56, %v6734_v47 }
 0xca4   :  { %v3558_v48 = vmul.f32 -1.442695, %v5550_v32 }
 0xca5   :  { %v3559_v33 = vmul.f32 -1.442695, %v5551_v58 }
 0xca6   :  { %5715 = vpow2.f32 %v3558_v48  ;;  %v2083_v48 = vadd.f32 %v6680_v62, %v6744_v42 }
 0xca7   :  { %5717 = vpow2.f32 %v3559_v33 }
 0xcb0   :  { %v5716_v8 = vpop.eup %5715 }
 0xcb1   :  { %v2738_v16 = vadd.f32 1.0, %v5716_v8  ;;  %v5718_v5 = vpop.eup %5717 }
 0xcb2   :  { %v2745_v19 = vadd.f32 1.0, %v5718_v5 }
 0xcb3   :  { %5719 = vrcp.f32 %v2738_v16 }
 0xcbd   :  { %v5720_v53 = vpop.eup %5719 }
 0xcbe   :  { %v2749_v31 = vmul.f32 %v5720_v53, %v2748_v9 }
 0xcc0   :  { %v2750_v4 = vadd.f32 %v2749_v31, %v2078_v30 }
 0xcc2   :  { %5721 = vtanh.f32 %v2750_v4 }
 0xcc3   :  { %5723 = vrcp.f32 %v2745_v19 }
 0xccc   :  { %v5722_v21 = vpop.eup %5721 }
 0xccd   :  { %v2752_v55 = vsub.f32 %v6839_v29, %v5722_v21  ;;  %v5724_v61 = vpop.eup %5723 }
 0xccf   :  { %v2753_v10 = vmul.f32 %v5724_v61, %v2752_v55 }
 0xcd1   :  { %v6884_v14 = vadd.f32 %v5722_v21, %v2753_v10 }
 0xcd3   :  { %2820 = vmatmul.mubr.f32.vlgmr.msra.gmra.mrb[24].mxu0 %v6884_v14  ;;  %4402 = vmatmul.mubr.f32.vlgmr.msra.gmra.mrb[40].mxu1 %v6884_v14 }
 0xcd4   :  { %5339 = vmatpush1.bf16.msra.mxu0 %v6585_v1  ;;  %5370 = vmatpush3.bf16.msra.mxu1 %v6623_v41 }
 0xcd5   :  { %5341 = vmatprep.subr.bf16.mxu0 %v6589_v2  ;;  %5371 = vmatprep.subr.bf16.mxu1 %v5939_v34 }
 0xcd6   :  { %2981 = vmatprep.mubr.f32.mxu0 %v5938_v0  ;;  %4436 = vmatprep.mubr.msk.f32.mxu1 %vm5940_vm2, %v5938_v0 }
 0xcd8   :  { %5343 = vmatpush1.bf16.msra.mxu0 %v6591_v12  ;;  %5373 = vmatpush3.bf16.msra.mxu1 %v6634_v60 }
 0xcd9   :  { %5345 = vmatprep.subr.bf16.mxu0 %v6595_v25  ;;  %5374 = vmatprep.subr.bf16.mxu1 %v5939_v34 }
 0xcdc   :  { %5347 = vmatpush1.bf16.msra.mxu0 %v6597_v37  ;;  %5376 = vmatpush3.bf16.msra.mxu1 %v6640_v26 }
 0xcdd   :  { %5349 = vmatprep.subr.bf16.mxu0 %v6601_v49  ;;  %5377 = vmatprep.subr.bf16.mxu1 %v5939_v34 }
 0xce0   :  { %5351 = vmatpush1.bf16.msra.mxu0 %v6603_v59  ;;  %5379 = vmatpush3.bf16.msra.mxu1 %v6643_v7 }
 0xce1   :  { %5353 = vmatprep.subr.bf16.mxu0 %v6607_v6  ;;  %5380 = vmatprep.subr.bf16.mxu1 %v5939_v34 }
 0xce4   :  { %5355 = vmatpush1.bf16.msra.mxu0 %v6609_v17  ;;  %5382 = vmatpush3.bf16.msra.mxu1 %v6647_v18 }
 0xce5   :  { %5357 = vmatprep.subr.bf16.mxu0 %v6613_v28  ;;  %5383 = vmatprep.subr.bf16.mxu1 %v5939_v34 }
 0xce8   :  { %5359 = vmatpush1.bf16.msra.mxu0 %v6615_v13  ;;  %5385 = vmatpush3.bf16.msra.mxu1 %v6651_v35 }
 0xce9   :  { %5361 = vmatprep.subr.bf16.mxu0 %v6618_v24  ;;  %5386 = vmatprep.subr.bf16.mxu1 %v5939_v34 }
 0xcec   :  { %5363 = vmatpush1.bf16.msra.mxu0 %v6621_v44  ;;  %5388 = vmatpush3.bf16.msra.mxu1 %v6655_v50 }
 0xced   :  { %5365 = vmatprep.subr.bf16.mxu0 %v6629_v38  ;;  %5389 = vmatprep.subr.bf16.mxu1 %v5939_v34 }
 0xcf0   :  { %5367 = vmatpush1.bf16.msra.mxu0 %v6631_v52  ;;  %5391 = vmatpush3.bf16.msra.mxu1 %v6659_v3 }
 0xcf1   :  { %5393 = vmatprep.subr.bf16.mxu0 %v6583_v36  ;;  %5424 = vmatprep.subr.bf16.mxu1 %v5939_v34 }
 0xda6   :  { %v2821_v40 = vpop.f32.mrb[24].mxu0  ;;  %v2892_v20 = vpop.f32.mrb[40].mxu1 }
 0xda7   :  { %v5552_v23 = vadd.f32 %v2821_v40, %v6729_v45  ;;  %v2823_v11 = vpop.f32.mrb[25].mxu0  ;;  %v4403_v15 = vpop.f32.mrb[41].mxu1  ;;  %v2910_v56 = vadd.f32 %v6740_v57, %v2892_v20 }
 0xda8   :  { %v5553_v22 = vadd.f32 %v2823_v11, %v6734_v47  ;;  %v2088_v11 = vadd.f32 %v6678_v46, %v6744_v42  ;;  %v3404_v46 = vld [vmem:[%s7104_s9 + $0x8] sm:$0xff] }
 0xda9   :  { %v3560_v51 = vmul.f32 -1.442695, %v5552_v23 }
 0xdaa   :  { %v3561_v29 = vmul.f32 -1.442695, %v5553_v22 }
 0xdab   :  { %5725 = vpow2.f32 %v3560_v51 }
 0xdac   :  { %5727 = vpow2.f32 %v3561_v29 }
 0xdb5   :  { %v5726_v54 = vpop.eup %5725 }
 0xdb6   :  { %v2900_v63 = vadd.f32 1.0, %v5726_v54  ;;  %v5728_v32 = vpop.eup %5727 }
 0xdb7   :  { %v2907_v8 = vadd.f32 1.0, %v5728_v32 }
 0xdb8   :  { %5729 = vrcp.f32 %v2900_v63 }
 0xdc2   :  { %v5730_v43 = vpop.eup %5729 }
 0xdc3   :  { %v2911_v58 = vmul.f32 %v5730_v43, %v2910_v56  ;;  %v3405_v43 = vld [vmem:[%s7104_s9 + $0x10] sm:$0xff] }
 0xdc5   :  { %v2912_v33 = vadd.f32 %v2911_v58, %v2083_v48  ;;  %v3407_v58 = vld [vmem:[%s7104_s9 + $0x20] sm:$0xff] }
 0xdc7   :  { %5731 = vtanh.f32 %v2912_v33  ;;  %v3408_v33 = vld [vmem:[%s7104_s9 + $0x28] sm:$0xff] }
 0xdc8   :  { %5733 = vrcp.f32 %v2907_v8  ;;  %v5511_v8 = vpack.c.bf16 %v3408_v33, %v3407_v58 }
 0xdd1   :  { %v5732_v16 = vpop.eup %5731 }
 0xdd2   :  { %v2914_v5 = vsub.f32 %v6884_v14, %v5732_v16  ;;  %v5734_v9 = vpop.eup %5733 }
 0xdd4   :  { %v2915_v53 = vmul.f32 %v5734_v9, %v2914_v5  ;;  %v3410_v5 = vld [vmem:[%s7104_s9 + $0x38] sm:$0xff] }
 0xdd6   :  { %v6929_v30 = vadd.f32 %v5732_v16, %v2915_v53  ;;  %v3409_v16 = vld [vmem:[%s7104_s9 + $0x30] sm:$0xff]  ;;  %v3411_v53 = vld [vmem:[%s7104_s9 + $0x40] sm:$0xff] }
 0xdd7   :  { %v5514_v9 = vpack.c.bf16 %v3410_v5, %v3409_v16 }
 0xdd8   :  { %2982 = vmatmul.mubr.f32.vlgmr.msra.gmra.mrb[26].mxu0 %v6929_v30  ;;  %4437 = vmatmul.mubr.f32.vlgmr.msra.gmra.mrb[42].mxu1 %v6929_v30 }
 0xdd9   :  { %5395 = vmatpush1.bf16.msra.mxu0 %v6585_v1  ;;  %5426 = vmatpush3.bf16.msra.mxu1 %v6623_v41 }
 0xdda   :  { %5397 = vmatprep.subr.bf16.mxu0 %v6589_v2  ;;  %5427 = vmatprep.subr.bf16.mxu1 %v5939_v34 }
 0xddb   :  { %3143 = vmatprep.mubr.f32.mxu0 %v5938_v0  ;;  %4471 = vmatprep.mubr.msk.f32.mxu1 %vm5940_vm2, %v5938_v0 }
 0xddd   :  { %5399 = vmatpush1.bf16.msra.mxu0 %v6591_v12  ;;  %5429 = vmatpush3.bf16.msra.mxu1 %v6634_v60 }
 0xdde   :  { %5401 = vmatprep.subr.bf16.mxu0 %v6595_v25  ;;  %5430 = vmatprep.subr.bf16.mxu1 %v5939_v34 }
 0xde1   :  { %5403 = vmatpush1.bf16.msra.mxu0 %v6597_v37  ;;  %5432 = vmatpush3.bf16.msra.mxu1 %v6640_v26 }
 0xde2   :  { %5405 = vmatprep.subr.bf16.mxu0 %v6601_v49  ;;  %5433 = vmatprep.subr.bf16.mxu1 %v5939_v34 }
 0xde5   :  { %5407 = vmatpush1.bf16.msra.mxu0 %v6603_v59  ;;  %5435 = vmatpush3.bf16.msra.mxu1 %v6643_v7 }
 0xde6   :  { %5409 = vmatprep.subr.bf16.mxu0 %v6607_v6  ;;  %5436 = vmatprep.subr.bf16.mxu1 %v5939_v34 }
 0xde9   :  { %5411 = vmatpush1.bf16.msra.mxu0 %v6609_v17  ;;  %5438 = vmatpush3.bf16.msra.mxu1 %v6647_v18 }
 0xdea   :  { %5413 = vmatprep.subr.bf16.mxu0 %v6613_v28  ;;  %5439 = vmatprep.subr.bf16.mxu1 %v5939_v34 }
 0xded   :  { %5415 = vmatpush1.bf16.msra.mxu0 %v6615_v13  ;;  %5441 = vmatpush3.bf16.msra.mxu1 %v6651_v35 }
 0xdee   :  { %5417 = vmatprep.subr.bf16.mxu0 %v6618_v24  ;;  %5442 = vmatprep.subr.bf16.mxu1 %v5939_v34 }
 0xdf1   :  { %5419 = vmatpush1.bf16.msra.mxu0 %v6621_v44  ;;  %5444 = vmatpush3.bf16.msra.mxu1 %v6655_v50 }
 0xdf2   :  { %5421 = vmatprep.subr.bf16.mxu0 %v6629_v38  ;;  %5445 = vmatprep.subr.bf16.mxu1 %v5939_v34 }
 0xdf5   :  { %5423 = vmatpush1.bf16.msra.mxu0 %v6631_v52  ;;  %5447 = vmatpush3.bf16.msra.mxu1 %v6659_v3 }
 0xdf6   :  { %5449 = vmatprep.subr.bf16.mxu0 %v6583_v36  ;;  %5480 = vmatprep.subr.bf16.mxu1 %v5939_v34 }
 0xeab   :  { %v2983_v62 = vpop.f32.mrb[26].mxu0  ;;  %v3054_v31 = vpop.f32.mrb[42].mxu1 }
 0xeac   :  { %v5554_v4 = vadd.f32 %v2983_v62, %v6729_v45  ;;  %v2985_v19 = vpop.f32.mrb[27].mxu0  ;;  %v4438_v21 = vpop.f32.mrb[43].mxu1  ;;  %v3072_v36 = vadd.f32 %v6740_v57, %v3054_v31  ;;  %v3413_v62 = vld [vmem:[%s7104_s9 + $0x50] sm:$0xff] }
 0xead   :  { %v5555_v61 = vadd.f32 %v2985_v19, %v6734_v47  ;;  %v3415_v21 = vld [vmem:[%s7104_s9 + $0x60] sm:$0xff] }
 0xeae   :  { %v3562_v55 = vmul.f32 -1.442695, %v5554_v4  ;;  %v3414_v4 = vld [vmem:[%s7104_s9 + $0x58] sm:$0xff] }
 0xeaf   :  { %v3563_v10 = vmul.f32 -1.442695, %v5555_v61  ;;  %v5520_v19 = vpack.c.bf16 %v3414_v4, %v3413_v62 }
 0xeb0   :  { %5735 = vpow2.f32 %v3562_v55  ;;  %v3416_v55 = vld [vmem:[%s7104_s9 + $0x68] sm:$0xff] }
 0xeb1   :  { %5737 = vpow2.f32 %v3563_v10  ;;  %v5523_v61 = vpack.c.bf16 %v3416_v55, %v3415_v21  ;;  %v3417_v10 = vld [vmem:[%s7104_s9 + $0x70] sm:$0xff] }
 0xeba   :  { %v5736_v14 = vpop.eup %5735 }
 0xebb   :  { %v3062_v40 = vadd.f32 1.0, %v5736_v14  ;;  %v5738_v20 = vpop.eup %5737  ;;  %v3418_v14 = vld [vmem:[%s7104_s9 + $0x78] sm:$0xff] }
 0xebc   :  { %v3069_v22 = vadd.f32 1.0, %v5738_v20 }
 0xebd   :  { %5739 = vrcp.f32 %v3062_v40  ;;  %v5526_v40 = vpack.c.bf16 %v3418_v14, %v3417_v10 }
 0xec7   :  { %v5740_v23 = vpop.eup %5739 }
 0xec8   :  { %v3073_v15 = vmul.f32 %v5740_v23, %v3072_v36 }
 0xeca   :  { %v3074_v51 = vadd.f32 %v3073_v15, %v2088_v11 }
 0xecc   :  { %5741 = vtanh.f32 %v3074_v51 }
 0xecd   :  { %5743 = vrcp.f32 %v3069_v22 }
 0xed6   :  { %v5742_v29 = vpop.eup %5741 }
 0xed7   :  { %v3076_v54 = vsub.f32 %v6929_v30, %v5742_v29  ;;  %v5744_v63 = vpop.eup %5743  ;;  %v3412_v30 = vld [vmem:[%s7104_s9 + $0x48] sm:$0xff] }
 0xed8   :  { %v5517_v31 = vpack.c.bf16 %v3412_v30, %v3411_v53 }
 0xed9   :  { %v3077_v32 = vmul.f32 %v5744_v63, %v3076_v54 }
 0xedb   :  { %v3078_v56 = vadd.f32 %v5742_v29, %v3077_v32 }
 0xedd   :  { %3144 = vmatmul.mubr.f32.vlgmr.msra.gmra.mrb[28].mxu0 %v3078_v56  ;;  %4472 = vmatmul.mubr.f32.vlgmr.msra.gmra.mrb[44].mxu1 %v3078_v56 }
 0xede   :  { %5451 = vmatpush1.bf16.msra.mxu0 %v6585_v1  ;;  %5482 = vmatpush3.bf16.msra.mxu1 %v6623_v41  ;;  %v2093_v41 = vadd.f32 %v6725_v39, %v6744_v42 }
 0xedf   :  { %5453 = vmatprep.subr.bf16.mxu0 %v6589_v2  ;;  %5483 = vmatprep.subr.bf16.mxu1 %v5939_v34 }
 0xee0   :  { %3305 = vmatprep.mubr.f32.mxu0 %v5938_v0  ;;  %4506 = vmatprep.mubr.msk.f32.mxu1 %vm5940_vm2, %v5938_v0 }
 0xee2   :  { %5455 = vmatpush1.bf16.msra.mxu0 %v6591_v12  ;;  %5485 = vmatpush3.bf16.msra.mxu1 %v6634_v60 }
 0xee3   :  { %5457 = vmatprep.subr.bf16.mxu0 %v6595_v25  ;;  %5486 = vmatprep.subr.bf16.mxu1 %v5939_v34 }
 0xee6   :  { %5459 = vmatpush1.bf16.msra.mxu0 %v6597_v37  ;;  %5488 = vmatpush3.bf16.msra.mxu1 %v6640_v26 }
 0xee7   :  { %5461 = vmatprep.subr.bf16.mxu0 %v6601_v49  ;;  %5489 = vmatprep.subr.bf16.mxu1 %v5939_v34 }
 0xeea   :  { %5463 = vmatpush1.bf16.msra.mxu0 %v6603_v59  ;;  %5491 = vmatpush3.bf16.msra.mxu1 %v6643_v7 }
 0xeeb   :  { %5465 = vmatprep.subr.bf16.mxu0 %v6607_v6  ;;  %5492 = vmatprep.subr.bf16.mxu1 %v5939_v34 }
 0xeee   :  { %5467 = vmatpush1.bf16.msra.mxu0 %v6609_v17  ;;  %5494 = vmatpush3.bf16.msra.mxu1 %v6647_v18 }
 0xeef   :  { %5469 = vmatprep.subr.bf16.mxu0 %v6613_v28  ;;  %5495 = vmatprep.subr.bf16.mxu1 %v5939_v34 }
 0xef2   :  { %5471 = vmatpush1.bf16.msra.mxu0 %v6615_v13  ;;  %5497 = vmatpush3.bf16.msra.mxu1 %v6651_v35 }
 0xef3   :  { %5473 = vmatprep.subr.bf16.mxu0 %v6618_v24  ;;  %5498 = vmatprep.subr.bf16.mxu1 %v5939_v34 }
 0xef6   :  { %5475 = vmatpush1.bf16.msra.mxu0 %v6621_v44  ;;  %5500 = vmatpush3.bf16.msra.mxu1 %v6655_v50 }
 0xef7   :  { %5477 = vmatprep.subr.bf16.mxu0 %v6629_v38  ;;  %5501 = vmatprep.subr.bf16.mxu1 %v5939_v34 }
 0xefa   :  { %5479 = vmatpush1.bf16.msra.mxu0 %v6631_v52  ;;  %5503 = vmatpush3.bf16.msra.mxu1 %v6659_v3  ;;  %v3403_v3 = vld [vmem:[%s7104_s9] sm:$0xff] }
 0xefb   :  { %5504 = vmatprep.subr.bf16.mxu0 %v5939_v34  ;;  %v5505_v39 = vpack.c.bf16 %v3404_v46, %v3403_v3 }
 0xfb0   :  { %v3145_v1 = vpop.f32.mrb[28].mxu0  ;;  %v3216_v2 = vpop.f32.mrb[44].mxu1 }
 0xfb1   :  { %v5556_v12 = vadd.f32 %v3145_v1, %v6729_v45  ;;  %v3147_v25 = vpop.f32.mrb[29].mxu0  ;;  %v4473_v37 = vpop.f32.mrb[45].mxu1  ;;  %v3234_v24 = vadd.f32 %v6740_v57, %v3216_v2  ;;  %v2098_v1 = vadd.f32 %v6723_v27, %v6744_v42 }
 0xfb2   :  { %v5557_v59 = vadd.f32 %v3147_v25, %v6734_v47 }
 0xfb3   :  { %v3564_v49 = vmul.f32 -1.442695, %v5556_v12 }
 0xfb4   :  { %v3565_v6 = vmul.f32 -1.442695, %v5557_v59 }
 0xfb5   :  { %5745 = vpow2.f32 %v3564_v49 }
 0xfb6   :  { %5747 = vpow2.f32 %v3565_v6 }
 0xfbf   :  { %v5746_v17 = vpop.eup %5745 }
 0xfc0   :  { %v3224_v28 = vadd.f32 1.0, %v5746_v17  ;;  %v5748_v13 = vpop.eup %5747 }
 0xfc1   :  { %v3231_v60 = vadd.f32 1.0, %v5748_v13 }
 0xfc2   :  { %5749 = vrcp.f32 %v3224_v28 }
 0xfcc   :  { %v5750_v44 = vpop.eup %5749 }
 0xfcd   :  { %v3235_v38 = vmul.f32 %v5750_v44, %v3234_v24 }
 0xfcf   :  { %v3236_v52 = vadd.f32 %v3235_v38, %v2093_v41 }
 0xfd1   :  { %5751 = vtanh.f32 %v3236_v52 }
 0xfd2   :  { %5753 = vrcp.f32 %v3231_v60 }
 0xfdb   :  { %v5752_v26 = vpop.eup %5751 }
 0xfdc   :  { %v3238_v7 = vsub.f32 %v3078_v56, %v5752_v26  ;;  %v5754_v18 = vpop.eup %5753 }
 0xfde   :  { %v3239_v35 = vmul.f32 %v5754_v18, %v3238_v7 }
 0xfe0   :  { %v7013_v50 = vadd.f32 %v5752_v26, %v3239_v35 }
 0xfe2   :  { %3306 = vmatmul.mubr.f32.vlgmr.msra.gmra.mrb[30].mxu0 %v7013_v50  ;;  %4507 = vmatmul.mubr.f32.vlgmr.msra.gmra.mrb[46].mxu1 %v7013_v50 }
 0xfe3   :  { %4541 = vmatprep.mubr.msk.f32.mxu0 %vm5940_vm2, %v5938_v0  ;;  %5506 = vmatpush3.bf16.msra.mxu0 %v5505_v39  ;;  %v3406_v0 = vld [vmem:[%s7104_s9 + $0x18] sm:$0xff] }
 0xfe4   :  { %5507 = vmatprep.subr.bf16.mxu0 %v5939_v34  ;;  %v5508_v48 = vpack.c.bf16 %v3406_v0, %v3405_v43 }
 0xfe7   :  { %5509 = vmatpush3.bf16.msra.mxu0 %v5508_v48 }
 0xfe8   :  { %5510 = vmatprep.subr.bf16.mxu0 %v5939_v34 }
 0xfeb   :  { %5512 = vmatpush3.bf16.msra.mxu0 %v5511_v8 }
 0xfec   :  { %5513 = vmatprep.subr.bf16.mxu0 %v5939_v34 }
 0xfef   :  { %5515 = vmatpush3.bf16.msra.mxu0 %v5514_v9 }
 0xff0   :  { %5516 = vmatprep.subr.bf16.mxu0 %v5939_v34 }
 0xff3   :  { %5518 = vmatpush3.bf16.msra.mxu0 %v5517_v31 }
 0xff4   :  { %5519 = vmatprep.subr.bf16.mxu0 %v5939_v34 }
 0xff7   :  { %5521 = vmatpush3.bf16.msra.mxu0 %v5520_v19 }
 0xff8   :  { %5522 = vmatprep.subr.bf16.mxu0 %v5939_v34 }
 0xffb   :  { %5524 = vmatpush3.bf16.msra.mxu0 %v5523_v61 }
 0xffc   :  { %5525 = vmatprep.subr.bf16.mxu0 %v5939_v34 }
 0xfff   :  { %5527 = vmatpush3.bf16.msra.mxu0 %v5526_v40 }
0x10b5   :  { %v3307_v20 = vpop.f32.mrb[30].mxu0  ;;  %v3378_v36 = vpop.f32.mrb[46].mxu1 }
0x10b6   :  { %v5558_v23 = vadd.f32 %v3307_v20, %v6729_v45  ;;  %v3309_v11 = vpop.f32.mrb[31].mxu0  ;;  %v4508_v15 = vpop.f32.mrb[47].mxu1  ;;  %v3396_v56 = vadd.f32 %v6740_v57, %v3378_v36  ;;  %v3568_v57 = vld [vmem:[%s7105_s10] ss:$0 sm:$0xff] }
0x10b7   :  { %v5559_v22 = vadd.f32 %v3309_v11, %v6734_v47 }
0x10b8   :  { %v3566_v51 = vmul.f32 -1.442695, %v5558_v23 }
0x10b9   :  { %v3567_v29 = vmul.f32 -1.442695, %v5559_v22 }
0x10ba   :  { %5755 = vpow2.f32 %v3566_v51 }
0x10bb   :  { %5757 = vpow2.f32 %v3567_v29 }
0x10c4   :  { %v5756_v54 = vpop.eup %5755 }
0x10c5   :  { %v3386_v63 = vadd.f32 1.0, %v5756_v54  ;;  %v5758_v32 = vpop.eup %5757 }
0x10c6   :  { %v3393_v12 = vadd.f32 1.0, %v5758_v32 }
0x10c7   :  { %5759 = vrcp.f32 %v3386_v63 }
0x10d1   :  { %v5760_v34 = vpop.eup %5759 }
0x10d2   :  { %v3397_v2 = vmul.f32 %v5760_v34, %v3396_v56 }
0x10d4   :  { %v3398_v45 = vadd.f32 %v3397_v2, %v2098_v1 }
0x10d6   :  { %5761 = vtanh.f32 %v3398_v45 }
0x10d7   :  { %5763 = vrcp.f32 %v3393_v12 }
0x10e0   :  { %v5762_v25 = vpop.eup %5761 }
0x10e1   :  { %v3400_v47 = vsub.f32 %v7013_v50, %v5762_v25  ;;  %v5764_v37 = vpop.eup %5763 }
0x10e3   :  { %v3401_v49 = vmul.f32 %v5764_v37, %v3400_v47 }
0x10e5   :  { %v3402_v59 = vadd.f32 %v5762_v25, %v3401_v49 }
0x10e7   :  { %4542 = vmatmul.mubr.f32.vlgmr.msra.gmra.mrb[32].mxu0 %v3402_v59 }
0x11ba   :  { %v3492_v6 = vpop.f32.mrb[32].mxu0 }
0x11bb   :  { %v3493_v27 = vadd.f32 %v3568_v57, %v3492_v6  ;;  %v4543_v42 = vpop.f32.mrb[33].mxu0 }
0x11bd   :  { %3496 = vst [vmem:[#allocation14] sm:$0xff] %v3493_v27 }
0x11be   :  { %5909 = shalt.err (!%p5906_p10)
}
0x11bf   :  { %s5910_s17 = scalar_lea.hbm %s7106_s11, 128 }
0x11c0   :  { %p5911_p11 = scmp.ne.s32.totalorder %s7106_s11, %s5910_s17  ;;  %p5914_p12 = scmp.lt.u32.totalorder %s5910_s17, %s7106_s11 }
0x11c2   :  { %p5916_p13 = pnand %p5914_p12, %p5911_p11 }
0x11c4   :  { %5919 = shalt.err (!%p5916_p13)
}
0x11c5   :  { %3506 = dma.vmem_to_hbm [thread:$0]  %s3504_s22, 128, %s7106_s11, [#allocation5]  }
0x11c6   :  { %5928 = dma.done.wait [#allocation5], 128  }
0x11c7   :  { %5929 = vsyncadd [#allocation5], 4294967168 }
0x11c8   :  { %3510 = vsyncpa [#allocation4], 1 }
0x11c9   :  { %3511 = vsyncpa [#allocation7], 1 }
0x11ca   :  { %3512 = vsyncpa [#allocation10], 1 }
0x11cb   :  { %3513 = vsyncpa [#allocation13], 1 }
0x11cc   :  { %3514 = vsyncpa [#allocation5], 1 }

</bundles_post_ra>
